<compile_context>
chip_gen: v5e
topology: v5e:2x2
jax: 0.10.0
libtpu: 0.0.40
codegen_flags: <defaults>
</compile_context>

<pallas_src>
import functools

import jax
import jax.numpy as jnp
from jax.experimental import pallas as pl
from jax.experimental.pallas import tpu as pltpu

CP = 128    # padded conv channel width (lane-dense, MXU-friendly)
DP = 128    # padded embedding width
K1 = 128    # padded conv1 im2col depth (9*cin + 1 bias feature, zero padded)
SUB = 16    # bf16 sublane granularity used for scratch alignment


# ----------------------------------------------------------------------------
# Fused backbone kernel: conv3x3+BN+ReLU -> conv3x3+BN+ReLU -> GAP -> linear
# One grid step = one image; everything stays VMEM-resident.
# ----------------------------------------------------------------------------
def _fused_backbone_kernel(p_ref, w1_ref, w2_ref, b2_ref, we_ref, be_ref,
                           gw_ref, o_ref, a1_ref, *, h, w):
    # p_ref:  (1, h*(w+2), K1) bf16  conv1 im2col patches (padded-row layout)
    # w1_ref: (K1, CP)         bf16  conv1 weight, BN1 + bias folded in
    # w2_ref: (9, CP, CP)      bf16  conv2 weight per tap, BN2 folded
    # b2_ref: (1, CP)          f32   conv2 bias
    # we_ref: (CP, DP)         bf16  embedding head weight
    # be_ref: (1, DP)          f32   embedding head bias
    # gw_ref: (h*(w+2), CP)    f32   GAP weights: valid/(h*w), 0 at pad columns
    # o_ref:  (1, 8, DP)       f32   embedding broadcast over 8 sublanes
    # a1_ref: (nrows, CP)      bf16  flat conv1 activation scratch (zero halo)
    wp = w + 2                 # padded row width of the activation grid
    m = h * wp                 # rows of the flattened activation / output
    cp = w2_ref.shape[1]
    orig = (-wp) % SUB         # scratch row of padded coordinate (0, 0)
    y1_start = orig + wp       # scratch row of padded coord (1, 0); 16-aligned
    nrows = a1_ref.shape[0]

    # ---- conv1: one dense K=128 matmul over the wrapper-built patches -------
    # The "1 at valid pixels" feature carries the (BN-folded) conv1 bias, so
    # the halo columns come out exactly zero after the ReLU.
    y1 = jnp.dot(p_ref[0], w1_ref[...], preferred_element_type=jnp.float32)
    y1 = jnp.maximum(y1, 0.0)

    # ---- stage conv1 output in bf16 in the flat scratch ----------------------
    # Zero only the top/bottom halo slabs (interior fully overwritten each
    # step); done unconditionally so each core's private scratch is valid.
    a1_ref[0:y1_start, :] = jnp.zeros((y1_start, cp), jnp.bfloat16)
    a1_ref[y1_start + m:nrows, :] = jnp.zeros((nrows - y1_start - m, cp),
                                              jnp.bfloat16)
    a1_ref[y1_start:y1_start + m, :] = y1.astype(jnp.bfloat16)

    # ---- conv2 + GAP: 9 tap-shifted contiguous-slab matmuls ------------------
    # In the flat row-major layout a (dh, dw) tap is a constant row offset, so
    # each tap load is a contiguous (rows, 128) bf16 slab (sublane shift only,
    # no reshape/relayout copies).  Row-blocked to bound the f32 accumulator.
    n_blk = 2 if m % 2 == 0 else 1
    mb = m // n_blk
    pooled = jnp.zeros((1, cp), jnp.float32)
    for s in range(n_blk):
        base = s * mb
        acc = jnp.zeros((mb, cp), jnp.float32)
        for dh in range(3):
            for dw in range(3):
                off = orig + base + dh * wp + dw
                acc = acc + jnp.dot(a1_ref[off:off + mb, :],
                                    w2_ref[3 * dh + dw],
                                    preferred_element_type=jnp.float32)
        y2 = jnp.maximum(acc + b2_ref[...], 0.0)
        # gw zeroes the 2 garbage columns per padded row and applies the
        # global-average-pool 1/(h*w) scale in the same multiply.
        pooled = pooled + jnp.sum(y2 * gw_ref[base:base + mb, :],
                                  axis=0, keepdims=True)

    # ---- embedding head (dense 8-sublane, 128-lane store) --------------------
    pooled8 = jnp.broadcast_to(pooled, (8, cp)).astype(jnp.bfloat16)
    emb = jnp.dot(pooled8, we_ref[...], preferred_element_type=jnp.float32)
    emb = emb + be_ref[...]
    o_ref[...] = emb[None, :, :].astype(o_ref.dtype)


def fused_backbone(patches, kp, gap_w, h, w):
    """patches: (N, h*(w+2), K1) bf16; returns (N, 8, DP) f32."""
    n, m, k1 = patches.shape
    cp = kp["w2"].shape[1]
    dp = kp["w_emb"].shape[1]
    wp = w + 2
    orig = (-wp) % SUB
    # scratch rows: top/bottom zero halo + interior + 2 trailing rows touched
    # by the bottom-right taps of the (discarded) pad-column outputs.
    nrows = orig + (h + 2) * wp + 2
    nrows = ((nrows + SUB - 1) // SUB) * SUB

    kernel = functools.partial(_fused_backbone_kernel, h=h, w=w)
    return pl.pallas_call(
        kernel,
        out_shape=jax.ShapeDtypeStruct((n, 8, dp), jnp.float32),
        grid_spec=pltpu.PrefetchScalarGridSpec(
            num_scalar_prefetch=0,
            grid=(n,),
            in_specs=[
                pl.BlockSpec((1, m, k1), lambda i: (i, 0, 0)),
                pl.BlockSpec(kp["w1"].shape, lambda i: (0, 0)),
                pl.BlockSpec(kp["w2"].shape, lambda i: (0, 0, 0)),
                pl.BlockSpec(kp["b2"].shape, lambda i: (0, 0)),
                pl.BlockSpec(kp["w_emb"].shape, lambda i: (0, 0)),
                pl.BlockSpec(kp["b_emb"].shape, lambda i: (0, 0)),
                pl.BlockSpec(gap_w.shape, lambda i: (0, 0)),
            ],
            out_specs=pl.BlockSpec((1, 8, dp), lambda i: (i, 0, 0)),
            scratch_shapes=[pltpu.VMEM((nrows, cp), jnp.bfloat16)],
        ),
        compiler_params=pltpu.CompilerParams(
            dimension_semantics=("parallel",),
            vmem_limit_bytes=32 * 1024 * 1024),
    )(patches, kp["w1"], kp["w2"], kp["b2"], kp["w_emb"], kp["b_emb"], gap_w)


# ----------------------------------------------------------------------------
# Wrapper-side input preparation (tiny XLA ops; fused by the jit)
# ----------------------------------------------------------------------------
def _build_conv1_patches(images_nchw):
    """NCHW f32 -> (N, h*(w+2), K1) bf16 conv1 im2col in padded-row layout."""
    n, cin, h, w = images_nchw.shape
    assert 9 * cin + 1 <= K1
    x = jnp.transpose(images_nchw, (0, 2, 3, 1)).astype(jnp.float32)   # NHWC
    xp = jnp.pad(x, ((0, 0), (1, 1), (1, 1), (0, 0)))                  # halo 1
    taps = [xp[:, dh:dh + h, dw:dw + w, :]
            for dh in range(3) for dw in range(3)]
    ones = jnp.ones((n, h, w, 1), jnp.float32)      # bias / "valid pixel" feat
    feats = jnp.concatenate(taps + [ones], axis=-1)  # (n, h, w, 9*cin+1)
    wp = w + 2
    patches = jnp.zeros((n, h, wp, K1), jnp.float32)
    patches = patches.at[:, :, 1:w + 1, :9 * cin + 1].set(feats)
    return patches.reshape(n, h * wp, K1).astype(jnp.bfloat16)


def _build_gap_weights(h, w, cp):
    """(h*(w+2), cp) f32: 1/(h*w) at real output pixels, 0 at pad columns."""
    wp = w + 2
    row = jnp.where(jnp.arange(wp) < w, 1.0 / (h * w), 0.0).astype(jnp.float32)
    return jnp.tile(row[None, :, None], (h, 1, cp)).reshape(h * wp, cp)


# ----------------------------------------------------------------------------
# Parameters: raw (PyTorch-like) init + offline BN-fold / lane-pad / bf16 cast
# ----------------------------------------------------------------------------
def init_params(key, cin=3, c_mid=32, emb_dim=64):
    ks = jax.random.split(key, 3)
    w1 = jax.random.normal(ks[0], (3, 3, cin, c_mid), jnp.float32) * 0.1
    w2 = jax.random.normal(ks[1], (3, 3, c_mid, c_mid), jnp.float32) * 0.1
    # folded BN: scale = gamma / sqrt(var + eps), bias = beta - mean * scale
    bn1_scale = jnp.ones((c_mid,), jnp.float32)
    bn1_bias = jnp.zeros((c_mid,), jnp.float32)
    bn2_scale = jnp.ones((c_mid,), jnp.float32)
    bn2_bias = jnp.zeros((c_mid,), jnp.float32)
    w_emb = jax.random.normal(ks[2], (c_mid, emb_dim), jnp.float32) * 0.1
    b_emb = jnp.zeros((emb_dim,), jnp.float32)
    # pixel_mean / pixel_std are registered buffers on the module but unused
    # in forward(); kept only for parity.
    pixel_mean = jnp.array([0.485, 0.456, 0.406], jnp.float32).reshape(1, -1, 1, 1)
    pixel_std = jnp.array([0.229, 0.224, 0.225], jnp.float32).reshape(1, -1, 1, 1)
    return dict(w1=w1, w2=w2,
                bn1_scale=bn1_scale, bn1_bias=bn1_bias,
                bn2_scale=bn2_scale, bn2_bias=bn2_bias,
                w_emb=w_emb, b_emb=b_emb,
                pixel_mean=pixel_mean, pixel_std=pixel_std)


def prepare_kernel_params(raw):
    """Fold BN into conv weights, pack conv1 bias into the im2col weight,
    zero-pad to 128-lane shapes and cast matmul operands to bf16."""
    _, _, cin, cmid = raw["w1"].shape
    emb = raw["w_emb"].shape[1]
    assert cmid <= CP and emb <= DP and 9 * cin + 1 <= K1

    w1f = (raw["w1"] * raw["bn1_scale"]).reshape(9 * cin, cmid)
    w2f = (raw["w2"] * raw["bn2_scale"]).reshape(9, cmid, cmid)

    w1p = jnp.zeros((K1, CP), jnp.float32)
    w1p = w1p.at[:9 * cin, :cmid].set(w1f)
    w1p = w1p.at[9 * cin, :cmid].set(raw["bn1_bias"])   # bias rides the "1" feature

    w2p = jnp.zeros((9, CP, CP), jnp.float32).at[:, :cmid, :cmid].set(w2f)
    wep = jnp.zeros((CP, DP), jnp.float32).at[:cmid, :emb].set(raw["w_emb"])

    b2p = jnp.zeros((1, CP), jnp.float32).at[0, :cmid].set(raw["bn2_bias"])
    bep = jnp.zeros((1, DP), jnp.float32).at[0, :emb].set(raw["b_emb"])

    return dict(w1=w1p.astype(jnp.bfloat16),
                w2=w2p.astype(jnp.bfloat16),
                b2=b2p,
                w_emb=wep.astype(jnp.bfloat16),
                b_emb=bep)


# ----------------------------------------------------------------------------
# Baseline (eval-mode) forward
# ----------------------------------------------------------------------------
@functools.partial(jax.jit, static_argnames=("emb_dim",))
def baseline_forward(kernel_params, images_nchw, emb_dim=64):
    # preprocess_image: the reference only moves the tensor to device; no
    # pixel_mean / pixel_std normalization is applied in forward().
    n, cin, h, w = images_nchw.shape
    patches = _build_conv1_patches(images_nchw)       # (n, h*(w+2), K1) bf16
    gap_w = _build_gap_weights(h, w, CP)              # (h*(w+2), CP) f32
    feats_padded = fused_backbone(patches, kernel_params, gap_w, h, w)
    return feats_padded[:, 0, :emb_dim]               # (n, emb_dim) f32


def reference_forward(raw, images_nchw, emb_dim):
    """Pure-JAX f32 reference of the stand-in backbone (tolerance check)."""
    dn = ("NHWC", "HWIO", "NHWC")
    hi = jax.lax.Precision.HIGHEST
    x = jnp.transpose(images_nchw, (0, 2, 3, 1)).astype(jnp.float32)
    y1 = jax.lax.conv_general_dilated(x, raw["w1"] * raw["bn1_scale"], (1, 1),
                                      "SAME", dimension_numbers=dn, precision=hi)
    y1 = jnp.maximum(y1 + raw["bn1_bias"], 0.0)
    y2 = jax.lax.conv_general_dilated(y1, raw["w2"] * raw["bn2_scale"], (1, 1),
                                      "SAME", dimension_numbers=dn, precision=hi)
    y2 = jnp.maximum(y2 + raw["bn2_bias"], 0.0)
    pooled = jnp.mean(y2, axis=(1, 2))
    return (jnp.dot(pooled, raw["w_emb"], precision=hi) + raw["b_emb"])[:, :emb_dim]


if __name__ == "__main__":
    key = jax.random.PRNGKey(0)
    k_param, k_img = jax.random.split(key)
    raw_params = init_params(k_param, cin=3, c_mid=32, emb_dim=64)
    kparams = prepare_kernel_params(raw_params)

    # Small deterministic input: batch=2, channels=3, spatial=16x16 (NCHW).
    images = jax.random.normal(k_img, (2, 3, 16, 16), jnp.float32)

    feats = baseline_forward(kparams, images, emb_dim=64)
    jax.block_until_ready(feats)
    assert feats.shape == (2, 64) and feats.dtype == jnp.float32

    ref = reference_forward(raw_params, images, emb_dim=64)
    max_err = float(jnp.max(jnp.abs(feats - ref)))
    assert max_err < 5e-2, f"kernel deviates from f32 reference: {max_err}"
    print("KERNEL_OK")
</pallas_src>

<mosaic_0001>
module attributes {stable_mosaic.version = 11 : i64} {
  func.func @_fused_backbone_kernel(%arg0: i32, %arg1: memref<1x288x128xbf16, #tpu.memory_space<vmem>>, %arg2: memref<128x128xbf16, #tpu.memory_space<vmem>>, %arg3: memref<9x128x128xbf16, #tpu.memory_space<vmem>>, %arg4: memref<1x128xf32, #tpu.memory_space<vmem>>, %arg5: memref<128x128xbf16, #tpu.memory_space<vmem>>, %arg6: memref<1x128xf32, #tpu.memory_space<vmem>>, %arg7: memref<288x128xf32, #tpu.memory_space<vmem>>, %arg8: memref<1x8x128xf32, #tpu.memory_space<vmem>>, %arg9: memref<352x128xbf16, #tpu.memory_space<vmem>>) attributes {dimension_semantics = [#tpu.dimension_semantics<parallel>], iteration_bounds = array<i64: 2>, scalar_prefetch = 0 : i64, scratch_operands = 1 : i64, tpu.core_type = #tpu.core_type<tc>, window_params = [{transform_indices = @transform_0, window_bounds = array<i64: 1, 288, 128>}, {pipeline_mode = #tpu.pipeline_mode<synchronous>, transform_indices = @transform_1, window_bounds = array<i64: 128, 128>}, {pipeline_mode = #tpu.pipeline_mode<synchronous>, transform_indices = @transform_2, window_bounds = array<i64: 9, 128, 128>}, {pipeline_mode = #tpu.pipeline_mode<synchronous>, transform_indices = @transform_3, window_bounds = array<i64: 1, 128>}, {pipeline_mode = #tpu.pipeline_mode<synchronous>, transform_indices = @transform_4, window_bounds = array<i64: 128, 128>}, {pipeline_mode = #tpu.pipeline_mode<synchronous>, transform_indices = @transform_5, window_bounds = array<i64: 1, 128>}, {pipeline_mode = #tpu.pipeline_mode<synchronous>, transform_indices = @transform_6, window_bounds = array<i64: 288, 128>}, {transform_indices = @transform_7, window_bounds = array<i64: 1, 8, 128>}]} {
    %c0 = arith.constant 0 : index
    %c0_0 = arith.constant 0 : index
    %c0_1 = arith.constant 0 : index
    %0 = vector.load %arg1[%c0, %c0_0, %c0_1] : memref<1x288x128xbf16, #tpu.memory_space<vmem>>, vector<1x288x128xbf16>
    %1 = vector.shape_cast %0 : vector<1x288x128xbf16> to vector<288x128xbf16>
    %c0_2 = arith.constant 0 : index
    %c0_3 = arith.constant 0 : index
    %2 = vector.load %arg2[%c0_2, %c0_3] : memref<128x128xbf16, #tpu.memory_space<vmem>>, vector<128x128xbf16>
    %cst = arith.constant dense<0.000000e+00> : vector<288x128xf32>
    %3 = tpu.matmul %1, %2, %cst {dimension_numbers = #tpu.dot_dimension_numbers<[1], [0], [0], [1], [0, 0, 1, 1], [], []>} : vector<288x128xbf16>, vector<128x128xbf16>, vector<288x128xf32> -> vector<288x128xf32>
    %cst_4 = arith.constant 0.000000e+00 : f32
    %4 = vector.broadcast %cst_4 : f32 to vector<288x128xf32>
    %5 = arith.maximumf %3, %4 : vector<288x128xf32>
    %cst_5 = arith.constant 0.000000e+00 : bf16
    %6 = vector.broadcast %cst_5 : bf16 to vector<32x128xbf16>
    %c0_6 = arith.constant 0 : index
    %c0_7 = arith.constant 0 : index
    %7 = vector.load %arg9[%c0_6, %c0_7] : memref<352x128xbf16, #tpu.memory_space<vmem>>, vector<32x128xbf16>
    tpu.vector_store %arg9[%c0_6, %c0_7], %6 {strides = array<i32>} : memref<352x128xbf16, #tpu.memory_space<vmem>>, vector<32x128xbf16>,
    %cst_8 = arith.constant 0.000000e+00 : bf16
    %8 = vector.broadcast %cst_8 : bf16 to vector<32x128xbf16>
    %c320 = arith.constant 320 : index
    %c0_9 = arith.constant 0 : index
    %9 = vector.load %arg9[%c320, %c0_9] : memref<352x128xbf16, #tpu.memory_space<vmem>>, vector<32x128xbf16>
    tpu.vector_store %arg9[%c320, %c0_9], %8 {strides = array<i32>} : memref<352x128xbf16, #tpu.memory_space<vmem>>, vector<32x128xbf16>,
    %10 = arith.truncf %5 : vector<288x128xf32> to vector<288x128xbf16>
    %c32 = arith.constant 32 : index
    %c0_10 = arith.constant 0 : index
    %11 = vector.load %arg9[%c32, %c0_10] : memref<352x128xbf16, #tpu.memory_space<vmem>>, vector<288x128xbf16>
    tpu.vector_store %arg9[%c32, %c0_10], %10 {strides = array<i32>} : memref<352x128xbf16, #tpu.memory_space<vmem>>, vector<288x128xbf16>,
    %cst_11 = arith.constant 0.000000e+00 : f32
    %12 = vector.broadcast %cst_11 : f32 to vector<1x128xf32>
    %cst_12 = arith.constant 0.000000e+00 : f32
    %13 = vector.broadcast %cst_12 : f32 to vector<144x128xf32>
    %c14 = arith.constant 14 : index
    %c0_13 = arith.constant 0 : index
    %14 = vector.load %arg9[%c14, %c0_13] : memref<352x128xbf16, #tpu.memory_space<vmem>>, vector<144x128xbf16>
    %c0_14 = arith.constant 0 : index
    %c0_15 = arith.constant 0 : index
    %c0_16 = arith.constant 0 : index
    %15 = vector.load %arg3[%c0_14, %c0_15, %c0_16] : memref<9x128x128xbf16, #tpu.memory_space<vmem>>, vector<1x128x128xbf16>
    %16 = vector.shape_cast %15 : vector<1x128x128xbf16> to vector<128x128xbf16>
    %cst_17 = arith.constant dense<0.000000e+00> : vector<144x128xf32>
    %17 = tpu.matmul %14, %16, %cst_17 {dimension_numbers = #tpu.dot_dimension_numbers<[1], [0], [0], [1], [0, 0, 1, 1], [], []>} : vector<144x128xbf16>, vector<128x128xbf16>, vector<144x128xf32> -> vector<144x128xf32>
    %18 = arith.addf %13, %17 : vector<144x128xf32>
    %c15 = arith.constant 15 : index
    %c0_18 = arith.constant 0 : index
    %19 = vector.load %arg9[%c15, %c0_18] : memref<352x128xbf16, #tpu.memory_space<vmem>>, vector<144x128xbf16>
    %c1 = arith.constant 1 : index
    %c0_19 = arith.constant 0 : index
    %c0_20 = arith.constant 0 : index
    %20 = vector.load %arg3[%c1, %c0_19, %c0_20] : memref<9x128x128xbf16, #tpu.memory_space<vmem>>, vector<1x128x128xbf16>
    %21 = vector.shape_cast %20 : vector<1x128x128xbf16> to vector<128x128xbf16>
    %cst_21 = arith.constant dense<0.000000e+00> : vector<144x128xf32>
    %22 = tpu.matmul %19, %21, %cst_21 {dimension_numbers = #tpu.dot_dimension_numbers<[1], [0], [0], [1], [0, 0, 1, 1], [], []>} : vector<144x128xbf16>, vector<128x128xbf16>, vector<144x128xf32> -> vector<144x128xf32>
    %23 = arith.addf %18, %22 : vector<144x128xf32>
    %c16 = arith.constant 16 : index
    %c0_22 = arith.constant 0 : index
    %24 = vector.load %arg9[%c16, %c0_22] : memref<352x128xbf16, #tpu.memory_space<vmem>>, vector<144x128xbf16>
    %c2 = arith.constant 2 : index
    %c0_23 = arith.constant 0 : index
    %c0_24 = arith.constant 0 : index
    %25 = vector.load %arg3[%c2, %c0_23, %c0_24] : memref<9x128x128xbf16, #tpu.memory_space<vmem>>, vector<1x128x128xbf16>
    %26 = vector.shape_cast %25 : vector<1x128x128xbf16> to vector<128x128xbf16>
    %cst_25 = arith.constant dense<0.000000e+00> : vector<144x128xf32>
    %27 = tpu.matmul %24, %26, %cst_25 {dimension_numbers = #tpu.dot_dimension_numbers<[1], [0], [0], [1], [0, 0, 1, 1], [], []>} : vector<144x128xbf16>, vector<128x128xbf16>, vector<144x128xf32> -> vector<144x128xf32>
    %28 = arith.addf %23, %27 : vector<144x128xf32>
    %c32_26 = arith.constant 32 : index
    %c0_27 = arith.constant 0 : index
    %29 = vector.load %arg9[%c32_26, %c0_27] : memref<352x128xbf16, #tpu.memory_space<vmem>>, vector<144x128xbf16>
    %c3 = arith.constant 3 : index
    %c0_28 = arith.constant 0 : index
    %c0_29 = arith.constant 0 : index
    %30 = vector.load %arg3[%c3, %c0_28, %c0_29] : memref<9x128x128xbf16, #tpu.memory_space<vmem>>, vector<1x128x128xbf16>
    %31 = vector.shape_cast %30 : vector<1x128x128xbf16> to vector<128x128xbf16>
    %cst_30 = arith.constant dense<0.000000e+00> : vector<144x128xf32>
    %32 = tpu.matmul %29, %31, %cst_30 {dimension_numbers = #tpu.dot_dimension_numbers<[1], [0], [0], [1], [0, 0, 1, 1], [], []>} : vector<144x128xbf16>, vector<128x128xbf16>, vector<144x128xf32> -> vector<144x128xf32>
    %33 = arith.addf %28, %32 : vector<144x128xf32>
    %c33 = arith.constant 33 : index
    %c0_31 = arith.constant 0 : index
    %34 = vector.load %arg9[%c33, %c0_31] : memref<352x128xbf16, #tpu.memory_space<vmem>>, vector<144x128xbf16>
    %c4 = arith.constant 4 : index
    %c0_32 = arith.constant 0 : index
    %c0_33 = arith.constant 0 : index
    %35 = vector.load %arg3[%c4, %c0_32, %c0_33] : memref<9x128x128xbf16, #tpu.memory_space<vmem>>, vector<1x128x128xbf16>
    %36 = vector.shape_cast %35 : vector<1x128x128xbf16> to vector<128x128xbf16>
    %cst_34 = arith.constant dense<0.000000e+00> : vector<144x128xf32>
    %37 = tpu.matmul %34, %36, %cst_34 {dimension_numbers = #tpu.dot_dimension_numbers<[1], [0], [0], [1], [0, 0, 1, 1], [], []>} : vector<144x128xbf16>, vector<128x128xbf16>, vector<144x128xf32> -> vector<144x128xf32>
    %38 = arith.addf %33, %37 : vector<144x128xf32>
    %c34 = arith.constant 34 : index
    %c0_35 = arith.constant 0 : index
    %39 = vector.load %arg9[%c34, %c0_35] : memref<352x128xbf16, #tpu.memory_space<vmem>>, vector<144x128xbf16>
    %c5 = arith.constant 5 : index
    %c0_36 = arith.constant 0 : index
    %c0_37 = arith.constant 0 : index
    %40 = vector.load %arg3[%c5, %c0_36, %c0_37] : memref<9x128x128xbf16, #tpu.memory_space<vmem>>, vector<1x128x128xbf16>
    %41 = vector.shape_cast %40 : vector<1x128x128xbf16> to vector<128x128xbf16>
    %cst_38 = arith.constant dense<0.000000e+00> : vector<144x128xf32>
    %42 = tpu.matmul %39, %41, %cst_38 {dimension_numbers = #tpu.dot_dimension_numbers<[1], [0], [0], [1], [0, 0, 1, 1], [], []>} : vector<144x128xbf16>, vector<128x128xbf16>, vector<144x128xf32> -> vector<144x128xf32>
    %43 = arith.addf %38, %42 : vector<144x128xf32>
    %c50 = arith.constant 50 : index
    %c0_39 = arith.constant 0 : index
    %44 = vector.load %arg9[%c50, %c0_39] : memref<352x128xbf16, #tpu.memory_space<vmem>>, vector<144x128xbf16>
    %c6 = arith.constant 6 : index
    %c0_40 = arith.constant 0 : index
    %c0_41 = arith.constant 0 : index
    %45 = vector.load %arg3[%c6, %c0_40, %c0_41] : memref<9x128x128xbf16, #tpu.memory_space<vmem>>, vector<1x128x128xbf16>
    %46 = vector.shape_cast %45 : vector<1x128x128xbf16> to vector<128x128xbf16>
    %cst_42 = arith.constant dense<0.000000e+00> : vector<144x128xf32>
    %47 = tpu.matmul %44, %46, %cst_42 {dimension_numbers = #tpu.dot_dimension_numbers<[1], [0], [0], [1], [0, 0, 1, 1], [], []>} : vector<144x128xbf16>, vector<128x128xbf16>, vector<144x128xf32> -> vector<144x128xf32>
    %48 = arith.addf %43, %47 : vector<144x128xf32>
    %c51 = arith.constant 51 : index
    %c0_43 = arith.constant 0 : index
    %49 = vector.load %arg9[%c51, %c0_43] : memref<352x128xbf16, #tpu.memory_space<vmem>>, vector<144x128xbf16>
    %c7 = arith.constant 7 : index
    %c0_44 = arith.constant 0 : index
    %c0_45 = arith.constant 0 : index
    %50 = vector.load %arg3[%c7, %c0_44, %c0_45] : memref<9x128x128xbf16, #tpu.memory_space<vmem>>, vector<1x128x128xbf16>
    %51 = vector.shape_cast %50 : vector<1x128x128xbf16> to vector<128x128xbf16>
    %cst_46 = arith.constant dense<0.000000e+00> : vector<144x128xf32>
    %52 = tpu.matmul %49, %51, %cst_46 {dimension_numbers = #tpu.dot_dimension_numbers<[1], [0], [0], [1], [0, 0, 1, 1], [], []>} : vector<144x128xbf16>, vector<128x128xbf16>, vector<144x128xf32> -> vector<144x128xf32>
    %53 = arith.addf %48, %52 : vector<144x128xf32>
    %c52 = arith.constant 52 : index
    %c0_47 = arith.constant 0 : index
    %54 = vector.load %arg9[%c52, %c0_47] : memref<352x128xbf16, #tpu.memory_space<vmem>>, vector<144x128xbf16>
    %c8 = arith.constant 8 : index
    %c0_48 = arith.constant 0 : index
    %c0_49 = arith.constant 0 : index
    %55 = vector.load %arg3[%c8, %c0_48, %c0_49] : memref<9x128x128xbf16, #tpu.memory_space<vmem>>, vector<1x128x128xbf16>
    %56 = vector.shape_cast %55 : vector<1x128x128xbf16> to vector<128x128xbf16>
    %cst_50 = arith.constant dense<0.000000e+00> : vector<144x128xf32>
    %57 = tpu.matmul %54, %56, %cst_50 {dimension_numbers = #tpu.dot_dimension_numbers<[1], [0], [0], [1], [0, 0, 1, 1], [], []>} : vector<144x128xbf16>, vector<128x128xbf16>, vector<144x128xf32> -> vector<144x128xf32>
    %58 = arith.addf %53, %57 : vector<144x128xf32>
    %c0_51 = arith.constant 0 : index
    %c0_52 = arith.constant 0 : index
    %59 = vector.load %arg4[%c0_51, %c0_52] : memref<1x128xf32, #tpu.memory_space<vmem>>, vector<1x128xf32>
    %60 = vector.broadcast %59 : vector<1x128xf32> to vector<144x128xf32>
    %61 = arith.addf %58, %60 : vector<144x128xf32>
    %cst_53 = arith.constant 0.000000e+00 : f32
    %62 = vector.broadcast %cst_53 : f32 to vector<144x128xf32>
    %63 = arith.maximumf %61, %62 : vector<144x128xf32>
    %c0_54 = arith.constant 0 : index
    %c0_55 = arith.constant 0 : index
    %64 = vector.load %arg7[%c0_54, %c0_55] : memref<288x128xf32, #tpu.memory_space<vmem>>, vector<144x128xf32>
    %65 = arith.mulf %63, %64 : vector<144x128xf32>
    %cst_56 = arith.constant dense<0.000000e+00> : vector<128xf32>
    %66 = vector.multi_reduction <add>, %65, %cst_56 [0] : vector<144x128xf32> to vector<128xf32>
    %67 = vector.shape_cast %66 : vector<128xf32> to vector<1x128xf32>
    %68 = arith.addf %12, %67 : vector<1x128xf32>
    %cst_57 = arith.constant 0.000000e+00 : f32
    %69 = vector.broadcast %cst_57 : f32 to vector<144x128xf32>
    %c158 = arith.constant 158 : index
    %c0_58 = arith.constant 0 : index
    %70 = vector.load %arg9[%c158, %c0_58] : memref<352x128xbf16, #tpu.memory_space<vmem>>, vector<144x128xbf16>
    %c0_59 = arith.constant 0 : index
    %c0_60 = arith.constant 0 : index
    %c0_61 = arith.constant 0 : index
    %71 = vector.load %arg3[%c0_59, %c0_60, %c0_61] : memref<9x128x128xbf16, #tpu.memory_space<vmem>>, vector<1x128x128xbf16>
    %72 = vector.shape_cast %71 : vector<1x128x128xbf16> to vector<128x128xbf16>
    %cst_62 = arith.constant dense<0.000000e+00> : vector<144x128xf32>
    %73 = tpu.matmul %70, %72, %cst_62 {dimension_numbers = #tpu.dot_dimension_numbers<[1], [0], [0], [1], [0, 0, 1, 1], [], []>} : vector<144x128xbf16>, vector<128x128xbf16>, vector<144x128xf32> -> vector<144x128xf32>
    %74 = arith.addf %69, %73 : vector<144x128xf32>
    %c159 = arith.constant 159 : index
    %c0_63 = arith.constant 0 : index
    %75 = vector.load %arg9[%c159, %c0_63] : memref<352x128xbf16, #tpu.memory_space<vmem>>, vector<144x128xbf16>
    %c1_64 = arith.constant 1 : index
    %c0_65 = arith.constant 0 : index
    %c0_66 = arith.constant 0 : index
    %76 = vector.load %arg3[%c1_64, %c0_65, %c0_66] : memref<9x128x128xbf16, #tpu.memory_space<vmem>>, vector<1x128x128xbf16>
    %77 = vector.shape_cast %76 : vector<1x128x128xbf16> to vector<128x128xbf16>
    %cst_67 = arith.constant dense<0.000000e+00> : vector<144x128xf32>
    %78 = tpu.matmul %75, %77, %cst_67 {dimension_numbers = #tpu.dot_dimension_numbers<[1], [0], [0], [1], [0, 0, 1, 1], [], []>} : vector<144x128xbf16>, vector<128x128xbf16>, vector<144x128xf32> -> vector<144x128xf32>
    %79 = arith.addf %74, %78 : vector<144x128xf32>
    %c160 = arith.constant 160 : index
    %c0_68 = arith.constant 0 : index
    %80 = vector.load %arg9[%c160, %c0_68] : memref<352x128xbf16, #tpu.memory_space<vmem>>, vector<144x128xbf16>
    %c2_69 = arith.constant 2 : index
    %c0_70 = arith.constant 0 : index
    %c0_71 = arith.constant 0 : index
    %81 = vector.load %arg3[%c2_69, %c0_70, %c0_71] : memref<9x128x128xbf16, #tpu.memory_space<vmem>>, vector<1x128x128xbf16>
    %82 = vector.shape_cast %81 : vector<1x128x128xbf16> to vector<128x128xbf16>
    %cst_72 = arith.constant dense<0.000000e+00> : vector<144x128xf32>
    %83 = tpu.matmul %80, %82, %cst_72 {dimension_numbers = #tpu.dot_dimension_numbers<[1], [0], [0], [1], [0, 0, 1, 1], [], []>} : vector<144x128xbf16>, vector<128x128xbf16>, vector<144x128xf32> -> vector<144x128xf32>
    %84 = arith.addf %79, %83 : vector<144x128xf32>
    %c176 = arith.constant 176 : index
    %c0_73 = arith.constant 0 : index
    %85 = vector.load %arg9[%c176, %c0_73] : memref<352x128xbf16, #tpu.memory_space<vmem>>, vector<144x128xbf16>
    %c3_74 = arith.constant 3 : index
    %c0_75 = arith.constant 0 : index
    %c0_76 = arith.constant 0 : index
    %86 = vector.load %arg3[%c3_74, %c0_75, %c0_76] : memref<9x128x128xbf16, #tpu.memory_space<vmem>>, vector<1x128x128xbf16>
    %87 = vector.shape_cast %86 : vector<1x128x128xbf16> to vector<128x128xbf16>
    %cst_77 = arith.constant dense<0.000000e+00> : vector<144x128xf32>
    %88 = tpu.matmul %85, %87, %cst_77 {dimension_numbers = #tpu.dot_dimension_numbers<[1], [0], [0], [1], [0, 0, 1, 1], [], []>} : vector<144x128xbf16>, vector<128x128xbf16>, vector<144x128xf32> -> vector<144x128xf32>
    %89 = arith.addf %84, %88 : vector<144x128xf32>
    %c177 = arith.constant 177 : index
    %c0_78 = arith.constant 0 : index
    %90 = vector.load %arg9[%c177, %c0_78] : memref<352x128xbf16, #tpu.memory_space<vmem>>, vector<144x128xbf16>
    %c4_79 = arith.constant 4 : index
    %c0_80 = arith.constant 0 : index
    %c0_81 = arith.constant 0 : index
    %91 = vector.load %arg3[%c4_79, %c0_80, %c0_81] : memref<9x128x128xbf16, #tpu.memory_space<vmem>>, vector<1x128x128xbf16>
    %92 = vector.shape_cast %91 : vector<1x128x128xbf16> to vector<128x128xbf16>
    %cst_82 = arith.constant dense<0.000000e+00> : vector<144x128xf32>
    %93 = tpu.matmul %90, %92, %cst_82 {dimension_numbers = #tpu.dot_dimension_numbers<[1], [0], [0], [1], [0, 0, 1, 1], [], []>} : vector<144x128xbf16>, vector<128x128xbf16>, vector<144x128xf32> -> vector<144x128xf32>
    %94 = arith.addf %89, %93 : vector<144x128xf32>
    %c178 = arith.constant 178 : index
    %c0_83 = arith.constant 0 : index
    %95 = vector.load %arg9[%c178, %c0_83] : memref<352x128xbf16, #tpu.memory_space<vmem>>, vector<144x128xbf16>
    %c5_84 = arith.constant 5 : index
    %c0_85 = arith.constant 0 : index
    %c0_86 = arith.constant 0 : index
    %96 = vector.load %arg3[%c5_84, %c0_85, %c0_86] : memref<9x128x128xbf16, #tpu.memory_space<vmem>>, vector<1x128x128xbf16>
    %97 = vector.shape_cast %96 : vector<1x128x128xbf16> to vector<128x128xbf16>
    %cst_87 = arith.constant dense<0.000000e+00> : vector<144x128xf32>
    %98 = tpu.matmul %95, %97, %cst_87 {dimension_numbers = #tpu.dot_dimension_numbers<[1], [0], [0], [1], [0, 0, 1, 1], [], []>} : vector<144x128xbf16>, vector<128x128xbf16>, vector<144x128xf32> -> vector<144x128xf32>
    %99 = arith.addf %94, %98 : vector<144x128xf32>
    %c194 = arith.constant 194 : index
    %c0_88 = arith.constant 0 : index
    %100 = vector.load %arg9[%c194, %c0_88] : memref<352x128xbf16, #tpu.memory_space<vmem>>, vector<144x128xbf16>
    %c6_89 = arith.constant 6 : index
    %c0_90 = arith.constant 0 : index
    %c0_91 = arith.constant 0 : index
    %101 = vector.load %arg3[%c6_89, %c0_90, %c0_91] : memref<9x128x128xbf16, #tpu.memory_space<vmem>>, vector<1x128x128xbf16>
    %102 = vector.shape_cast %101 : vector<1x128x128xbf16> to vector<128x128xbf16>
    %cst_92 = arith.constant dense<0.000000e+00> : vector<144x128xf32>
    %103 = tpu.matmul %100, %102, %cst_92 {dimension_numbers = #tpu.dot_dimension_numbers<[1], [0], [0], [1], [0, 0, 1, 1], [], []>} : vector<144x128xbf16>, vector<128x128xbf16>, vector<144x128xf32> -> vector<144x128xf32>
    %104 = arith.addf %99, %103 : vector<144x128xf32>
    %c195 = arith.constant 195 : index
    %c0_93 = arith.constant 0 : index
    %105 = vector.load %arg9[%c195, %c0_93] : memref<352x128xbf16, #tpu.memory_space<vmem>>, vector<144x128xbf16>
    %c7_94 = arith.constant 7 : index
    %c0_95 = arith.constant 0 : index
    %c0_96 = arith.constant 0 : index
    %106 = vector.load %arg3[%c7_94, %c0_95, %c0_96] : memref<9x128x128xbf16, #tpu.memory_space<vmem>>, vector<1x128x128xbf16>
    %107 = vector.shape_cast %106 : vector<1x128x128xbf16> to vector<128x128xbf16>
    %cst_97 = arith.constant dense<0.000000e+00> : vector<144x128xf32>
    %108 = tpu.matmul %105, %107, %cst_97 {dimension_numbers = #tpu.dot_dimension_numbers<[1], [0], [0], [1], [0, 0, 1, 1], [], []>} : vector<144x128xbf16>, vector<128x128xbf16>, vector<144x128xf32> -> vector<144x128xf32>
    %109 = arith.addf %104, %108 : vector<144x128xf32>
    %c196 = arith.constant 196 : index
    %c0_98 = arith.constant 0 : index
    %110 = vector.load %arg9[%c196, %c0_98] : memref<352x128xbf16, #tpu.memory_space<vmem>>, vector<144x128xbf16>
    %c8_99 = arith.constant 8 : index
    %c0_100 = arith.constant 0 : index
    %c0_101 = arith.constant 0 : index
    %111 = vector.load %arg3[%c8_99, %c0_100, %c0_101] : memref<9x128x128xbf16, #tpu.memory_space<vmem>>, vector<1x128x128xbf16>
    %112 = vector.shape_cast %111 : vector<1x128x128xbf16> to vector<128x128xbf16>
    %cst_102 = arith.constant dense<0.000000e+00> : vector<144x128xf32>
    %113 = tpu.matmul %110, %112, %cst_102 {dimension_numbers = #tpu.dot_dimension_numbers<[1], [0], [0], [1], [0, 0, 1, 1], [], []>} : vector<144x128xbf16>, vector<128x128xbf16>, vector<144x128xf32> -> vector<144x128xf32>
    %114 = arith.addf %109, %113 : vector<144x128xf32>
    %c0_103 = arith.constant 0 : index
    %c0_104 = arith.constant 0 : index
    %115 = vector.load %arg4[%c0_103, %c0_104] : memref<1x128xf32, #tpu.memory_space<vmem>>, vector<1x128xf32>
    %116 = vector.broadcast %115 : vector<1x128xf32> to vector<144x128xf32>
    %117 = arith.addf %114, %116 : vector<144x128xf32>
    %cst_105 = arith.constant 0.000000e+00 : f32
    %118 = vector.broadcast %cst_105 : f32 to vector<144x128xf32>
    %119 = arith.maximumf %117, %118 : vector<144x128xf32>
    %c144 = arith.constant 144 : index
    %c0_106 = arith.constant 0 : index
    %120 = vector.load %arg7[%c144, %c0_106] : memref<288x128xf32, #tpu.memory_space<vmem>>, vector<144x128xf32>
    %121 = arith.mulf %119, %120 : vector<144x128xf32>
    %cst_107 = arith.constant dense<0.000000e+00> : vector<128xf32>
    %122 = vector.multi_reduction <add>, %121, %cst_107 [0] : vector<144x128xf32> to vector<128xf32>
    %123 = vector.shape_cast %122 : vector<128xf32> to vector<1x128xf32>
    %124 = arith.addf %68, %123 : vector<1x128xf32>
    %125 = vector.shape_cast %124 : vector<1x128xf32> to vector<1x128xf32>
    %126 = vector.broadcast %125 : vector<1x128xf32> to vector<8x128xf32>
    %127 = arith.truncf %126 : vector<8x128xf32> to vector<8x128xbf16>
    %c0_108 = arith.constant 0 : index
    %c0_109 = arith.constant 0 : index
    %128 = vector.load %arg5[%c0_108, %c0_109] : memref<128x128xbf16, #tpu.memory_space<vmem>>, vector<128x128xbf16>
    %cst_110 = arith.constant dense<0.000000e+00> : vector<8x128xf32>
    %129 = tpu.matmul %127, %128, %cst_110 {dimension_numbers = #tpu.dot_dimension_numbers<[1], [0], [0], [1], [0, 0, 1, 1], [], []>} : vector<8x128xbf16>, vector<128x128xbf16>, vector<8x128xf32> -> vector<8x128xf32>
    %c0_111 = arith.constant 0 : index
    %c0_112 = arith.constant 0 : index
    %130 = vector.load %arg6[%c0_111, %c0_112] : memref<1x128xf32, #tpu.memory_space<vmem>>, vector<1x128xf32>
    %131 = vector.broadcast %130 : vector<1x128xf32> to vector<8x128xf32>
    %132 = arith.addf %129, %131 : vector<8x128xf32>
    %133 = vector.shape_cast %132 : vector<8x128xf32> to vector<1x8x128xf32>
    %c0_113 = arith.constant 0 : index
    %c0_114 = arith.constant 0 : index
    %c0_115 = arith.constant 0 : index
    %134 = vector.load %arg8[%c0_113, %c0_114, %c0_115] : memref<1x8x128xf32, #tpu.memory_space<vmem>>, vector<1x8x128xf32>
    tpu.vector_store %arg8[%c0_113, %c0_114, %c0_115], %133 {strides = array<i32>} : memref<1x8x128xf32, #tpu.memory_space<vmem>>, vector<1x8x128xf32>,
    return
  }
  func.func @transform_0(%arg0: i32) -> (i32, i32, i32) {
    %c0_i32 = arith.constant 0 : i32
    %c0_i32_0 = arith.constant 0 : i32
    %c0_i32_1 = arith.constant 0 : i32
    return %arg0, %c0_i32, %c0_i32_0 : i32, i32, i32
  }
  func.func @transform_1(%arg0: i32) -> (i32, i32) {
    %c0_i32 = arith.constant 0 : i32
    %c0_i32_0 = arith.constant 0 : i32
    %c0_i32_1 = arith.constant 0 : i32
    return %c0_i32, %c0_i32_0 : i32, i32
  }
  func.func @transform_2(%arg0: i32) -> (i32, i32, i32) {
    %c0_i32 = arith.constant 0 : i32
    %c0_i32_0 = arith.constant 0 : i32
    %c0_i32_1 = arith.constant 0 : i32
    %c0_i32_2 = arith.constant 0 : i32
    return %c0_i32, %c0_i32_0, %c0_i32_1 : i32, i32, i32
  }
  func.func @transform_3(%arg0: i32) -> (i32, i32) {
    %c0_i32 = arith.constant 0 : i32
    %c0_i32_0 = arith.constant 0 : i32
    %c0_i32_1 = arith.constant 0 : i32
    return %c0_i32, %c0_i32_0 : i32, i32
  }
  func.func @transform_4(%arg0: i32) -> (i32, i32) {
    %c0_i32 = arith.constant 0 : i32
    %c0_i32_0 = arith.constant 0 : i32
    %c0_i32_1 = arith.constant 0 : i32
    return %c0_i32, %c0_i32_0 : i32, i32
  }
  func.func @transform_5(%arg0: i32) -> (i32, i32) {
    %c0_i32 = arith.constant 0 : i32
    %c0_i32_0 = arith.constant 0 : i32
    %c0_i32_1 = arith.constant 0 : i32
    return %c0_i32, %c0_i32_0 : i32, i32
  }
  func.func @transform_6(%arg0: i32) -> (i32, i32) {
    %c0_i32 = arith.constant 0 : i32
    %c0_i32_0 = arith.constant 0 : i32
    %c0_i32_1 = arith.constant 0 : i32
    return %c0_i32, %c0_i32_0 : i32, i32
  }
  func.func @transform_7(%arg0: i32) -> (i32, i32, i32) {
    %c0_i32 = arith.constant 0 : i32
    %c0_i32_0 = arith.constant 0 : i32
    %c0_i32_1 = arith.constant 0 : i32
    return %arg0, %c0_i32, %c0_i32_0 : i32, i32, i32
  }
}

</mosaic_0001>

<bundles_post_ra>
// kernel: baseline_forward.1
= control target key start
LH: loop header
LB: loop body
LE: loop exit
PB: predicated region body
PF: predicated region fallthrough
CT: control target
= control target key end

     0   :  { %s5573_s24 = smov 0   ;;  %s7056_s0 = inlined_call_operand.vmem [shape: bf16[2,288,128], index: 0, kind: input, shape index: {}]   ;;  %s7057_s1 = inlined_call_operand.vmem [shape: bf16[128,128], index: 1, kind: input, shape index: {}]   ;;  %s7058_s2 = inlined_call_operand.vmem [shape: bf16[9,128,128], index: 2, kind: input, shape index: {}]   ;;  %s7059_s3 = inlined_call_operand.vmem [shape: f32[1,128], index: 3, kind: input, shape index: {}]   ;;  %s7060_s4 = inlined_call_operand.vmem [shape: bf16[128,128], index: 4, kind: input, shape index: {}]   ;;  %s7061_s5 = inlined_call_operand.vmem [shape: f32[1,128], index: 5, kind: input, shape index: {}]   ;;  %s7062_s6 = inlined_call_operand.vmem [shape: f32[288,128], index: 6, kind: input, shape index: {}]   ;;  %s7063_s7 = inlined_call_operand.vmem [shape: f32[2,8,128], index: 7, kind: output, shape index: {}]  }
   0x1 LB: > { %s4247_s25 = sadd.s32 4294967295, %s5530_s24   ;;  %p4251_p0 = scmp.ge.s32.totalorder %s5530_s24, 1  ;;  %s5530_s24 = sphi %s5573_s24, %s17_s24  }
   0x2   : > { %p237_p1 = scmp.lt.s32.totalorder %s5530_s24, 3 }
   0x4   : > { %p238_p2 = pnand %p4251_p0, %p237_p1 }
   0x6   : > { %241 = sbr.rel (%p238_p2) target bundleno = 1202 (0x4b2), region = 48 }
   0xb   : > { %v5033_v0 = vld [vmem:[%s7057_s1 + $0x38] sm:$0xff]  ;;  %v5032_v1 = vld [vmem:[%s7057_s1 + $0x30] sm:$0xff]  ;;  %v5031_v2 = vld [vmem:[%s7057_s1 + $0x28] sm:$0xff]  ;;  %p268_p3 = scmp.lt.s32.totalorder %s4247_s25, 1  ;;  %v5532_v24 = vmov 0   ;;  %vm1006_vm0 = vcmask 1044480  }
   0xc   : > { %486 = vmatpush.bf16.msra.mxu0 %v5033_v0  ;;  %v5030_v3 = vld [vmem:[%s7057_s1 + $0x20] sm:$0xff]  ;;  %v5029_v4 = vld [vmem:[%s7057_s1 + $0x18] sm:$0xff]  ;;  %v5028_v5 = vld [vmem:[%s7057_s1 + $0x10] sm:$0xff]  ;;  %623 = vst [vmem:[#allocation2 + $0x8] sm:$0xf] %v5532_v24  ;;  %vm2454_vm2 = vcmask 1045504  }
   0xd   : > { %s7107_s25 = smov (!%p268_p3, %s4247_s25), 1  ;;  %v5027_v6 = vld [vmem:[%s7057_s1 + $0x8] sm:$0xff]  ;;  %v5026_v7 = vld [vmem:[%s7057_s1] sm:$0xff]  ;;  %v5057_v12 = vld [vmem:[%s7058_s2 + $0xb8] sm:$0xff]  ;;  %624 = vst [vmem:[#allocation2 + $0xc] sm:$0xf] %v5532_v24 }
   0xe   : > { %s5488_s17 = smul.u32 144, %s7107_s25  ;;  %1220 = vmatpush.bf16.msra.mxu3 %v5057_v12  ;;  %v5056_v14 = vld [vmem:[%s7058_s2 + $0xb0] sm:$0xff]  ;;  %v5055_v15 = vld [vmem:[%s7058_s2 + $0xa8] sm:$0xff]  ;;  %v5054_v16 = vld [vmem:[%s7058_s2 + $0xa0] sm:$0xff]  ;;  %622 = vst [vmem:[#allocation2 + $0x4] sm:$0xf] %v5532_v24 }
   0xf   : > { %v5053_v17 = vld [vmem:[%s7058_s2 + $0x98] sm:$0xff]  ;;  %v5052_v19 = vld [vmem:[%s7058_s2 + $0x90] sm:$0xff]  ;;  %v5051_v21 = vld [vmem:[%s7058_s2 + $0x88] sm:$0xff]  ;;  %625 = vst [vmem:[#allocation2 + $0xa0] sm:$0xf] %v5532_v24  ;;  %vm1812_vm4 = vcmask 1046528  }
  0x10   : > { %487 = vmatpush.bf16.msra.mxu0 %v5032_v1  ;;  %s5611_s22 = scalar_lea.vmem %s7056_s0, %s5488_s17  ;;  %v5640_v20 = vld [vmem:[%s7058_s2 + $0x38] sm:$0xff]  ;;  %v5655_v23 = vld [vmem:[%s7058_s2 + $0x30] sm:$0xff]  ;;  %v5050_v25 = vld [vmem:[%s7058_s2 + $0x80] sm:$0xff]  ;;  %626 = vst [vmem:[#allocation2 + $0xa4] sm:$0xf] %v5532_v24  ;;  %s4253_s14 = sshll.u32 %s7107_s25, 3 }
  0x11   : > { %v5008_v8 = vld [vmem:[%s5611_s22] sm:$0xff]  ;;  %v5009_v9 = vld [vmem:[%s5611_s22 + $0x8] sm:$0xff]  ;;  %v5010_v10 = vld [vmem:[%s5611_s22 + $0x10] sm:$0xff]  ;;  %1083 = vmatpush.bf16.msra.mxu2 %v5640_v20  ;;  %627 = vst [vmem:[#allocation2 + $0xa8] sm:$0xf] %v5532_v24  ;;  %s276_s18 = scalar_lea.vmem %s7063_s7, %s4253_s14 }
  0x12   : > { %v5011_v11 = vld [vmem:[%s5611_s22 + $0x18] sm:$0xff]  ;;  %v5012_v13 = vld [vmem:[%s5611_s22 + $0x20] sm:$0xff]  ;;  %1221 = vmatpush.bf16.msra.mxu3 %v5056_v14  ;;  %v5013_v18 = vld [vmem:[%s5611_s22 + $0x28] sm:$0xff]  ;;  %vm802_vm1 = vsmask.f32 4352 }
  0x13   : > { %v5648_v22 = vld [vmem:[%s7058_s2 + $0x78] sm:$0xff]  ;;  %v5014_v27 = vld [vmem:[%s5611_s22 + $0x30] sm:$0xff]  ;;  %v5670_v29 = vld [vmem:[%s7058_s2 + $0x28] sm:$0xff]  ;;  %vm2214_vm3 = vsmask.f32 6400 }
  0x14   : > { %488 = vmatpush.bf16.msra.mxu0 %v5031_v2  ;;  %949 = vmatpush.bf16.msra.mxu1 %v5648_v22  ;;  %v5348_v26 = vld [vmem:[#allocation2 + $0x8] sm:$0xff]   ;;  %v5665_v28 = vld [vmem:[%s7058_s2 + $0x70] sm:$0xff]  ;;  %v5682_v31 = vld [vmem:[%s7058_s2 + $0x20] sm:$0xff]  ;;  %vm1585_vm5 = vsmask.f32 7424 }
  0x15   : > { %1084 = vmatpush.bf16.msra.mxu2 %v5655_v23  ;;  %v5677_v30 = vld [vmem:[%s7058_s2 + $0x68] sm:$0xff]  ;;  %v5689_v32 = vld [vmem:[%s7058_s2 + $0x60] sm:$0xff]  ;;  %v5694_v33 = vld [vmem:[%s7058_s2 + $0x18] sm:$0xff] }
  0x16   : > { %1222 = vmatpush.bf16.msra.mxu3 %v5055_v15  ;;  %v5701_v34 = vld [vmem:[%s7058_s2 + $0x58] sm:$0xff]  ;;  %v5706_v35 = vld [vmem:[%s7058_s2 + $0x10] sm:$0xff]  ;;  %v5719_v38 = vld [vmem:[%s7058_s2 + $0x8] sm:$0xff] }
  0x17   : > { %v5015_v36 = vld [vmem:[%s5611_s22 + $0x38] sm:$0xff]  ;;  %v5714_v37 = vld [vmem:[%s7058_s2 + $0x50] sm:$0xff]  ;;  %v5726_v39 = vld [vmem:[%s7058_s2 + $0x48] sm:$0xff] }
  0x18   : > { %489 = vmatpush.bf16.msra.mxu0 %v5030_v3  ;;  %950 = vmatpush.bf16.msra.mxu1 %v5665_v28  ;;  %v5731_v40 = vld [vmem:[%s7058_s2] sm:$0xff]  ;;  %v5744_v42 = vld [vmem:[%s7058_s2 + $0x138] sm:$0xff]  ;;  %v5457_v52 = vld [vmem:[#allocation2 + $0x4] sm:$0xf0]  }
  0x19   : > { %1085 = vmatpush.bf16.msra.mxu2 %v5670_v29  ;;  %v5738_v41 = vld [vmem:[%s7058_s2 + $0x40] sm:$0xff]  ;;  %v5749_v43 = vld [vmem:[%s7058_s2 + $0x178] sm:$0xff]  ;;  %v5767_v55 = vld [vmem:[%s7058_s2 + $0x130] sm:$0xff] }
  0x1a   : > { %1223 = vmatpush.bf16.msra.mxu3 %v5054_v16  ;;  %v5114_v44 = vld [vmem:[%s7058_s2 + $0x1b8] sm:$0xff]  ;;  %v5016_v45 = vld [vmem:[%s5611_s22 + $0x40] sm:$0xff]  ;;  %v5017_v56 = vld [vmem:[%s5611_s22 + $0x48] sm:$0xff] }
  0x1b   : > { %v5074_v47 = vld [vmem:[%s7058_s2 + $0xf8] sm:$0xff]  ;;  %v5375_v51 = vld [vmem:[#allocation2 + $0x4] sm:$0x8]  ;;  %v5774_v60 = vld [vmem:[%s7058_s2 + $0x170] sm:$0xff] }
  0x1c   : > { %490 = vmatpush.bf16.msra.mxu0 %v5029_v4  ;;  %951 = vmatpush.bf16.msra.mxu1 %v5677_v30  ;;  %v5376_v54 = vor.u32 %v5457_v52, %v5375_v51  ;;  %v5073_v61 = vld [vmem:[%s7058_s2 + $0xf0] sm:$0xff] }
  0x1d   : > { %1086 = vmatpush.bf16.msra.mxu2 %v5682_v31  ;;  %v5018_v15 = vld [vmem:[%s5611_s22 + $0x50] sm:$0xff] }
  0x1e   : > { %1224 = vmatpush.bf16.msra.mxu3 %v5053_v17  ;;  %v804_v58 = vshrl.u32 %v5376_v54, 16  ;;  %v807_v59 = vshll.u32 %v5376_v54, 16  ;;  %v1007_v63 = vrot.slane %v5376_v54, 3  ;;  %v5786_v17 = vld [vmem:[%s7058_s2 + $0x128] sm:$0xff] }
  0x20   : > { %491 = vmatpush.bf16.msra.mxu0 %v5028_v5  ;;  %952 = vmatpush.bf16.msra.mxu1 %v5689_v32  ;;  %v806_v0 = vrot.slane %v804_v58, 3  ;;  %v809_v1 = vrot.slane %v807_v59, 4  ;;  %v5019_v59 = vld [vmem:[%s5611_s22 + $0x58] sm:$0xff] }
  0x21   : > { %1087 = vmatpush.bf16.msra.mxu2 %v5694_v33 }
  0x22   : > { %1225 = vmatpush.bf16.msra.mxu3 %v5052_v19  ;;  %v5113_v19 = vld [vmem:[%s7058_s2 + $0x1b0] sm:$0xff] }
  0x24   : > { %492 = vmatpush.bf16.msra.mxu0 %v5027_v6  ;;  %953 = vmatpush.bf16.msra.mxu1 %v5701_v34 }
  0x25   : > { %1088 = vmatpush.bf16.msra.mxu2 %v5706_v35 }
  0x26   : > { %1226 = vmatpush.bf16.msra.mxu3 %v5051_v21  ;;  %v5072_v21 = vld [vmem:[%s7058_s2 + $0xe8] sm:$0xff] }
  0x28   : > { %493 = vmatpush.bf16.msra.mxu0 %v5026_v7  ;;  %954 = vmatpush.bf16.msra.mxu1 %v5714_v37  ;;  %v810_v7 = vor.u32 %v809_v1, %v806_v0  ;;  %v5815_v1 = vld [vmem:[%s7058_s2 + $0x160] sm:$0xff] }
  0x29   : > { %1089 = vmatpush.bf16.msra.mxu2 %v5719_v38 }
  0x2a   : > { %1227 = vmatpush.bf16.msra.mxu3 %v5050_v25 }
  0x2b   : > { %494 = vmatmul.bf16.vlgmr.msra.gmra.mxu0 %v5008_v8 }
  0x2c   : > { %955 = vmatpush.bf16.msra.mxu1 %v5726_v39  ;;  %2121 = vmatpush.bf16.msrb.mxu0 %v5114_v44 }
  0x2d   : > { %1228 = vmatmul.bf16.vlgmr.msra.gmra.mxu3 %v5348_v26  ;;  %1090 = vmatpush.bf16.msra.mxu2 %v5731_v40 }
  0x2e   : > { %1889 = vmatpush.bf16.msrb.mxu3 %v5749_v43 }
  0x30   : > { %956 = vmatpush.bf16.msra.mxu1 %v5738_v41  ;;  %2122 = vmatpush.bf16.msrb.mxu0 %v5113_v19 }
  0x31   : > { %1719 = vmatpush.bf16.msrb.mxu2 %v5744_v42 }
  0x32   : > { %1890 = vmatpush.bf16.msrb.mxu3 %v5774_v60 }
  0x34   : > { %1429 = vmatpush.bf16.msrb.mxu1 %v5074_v47 }
  0x35   : > { %1720 = vmatpush.bf16.msrb.mxu2 %v5767_v55 }
  0x38   : > { %1430 = vmatpush.bf16.msrb.mxu1 %v5073_v61 }
  0x39   : > { %1721 = vmatpush.bf16.msrb.mxu2 %v5786_v17 }
  0x3b   : > { %499 = vmatmul.bf16.gmra.mxu0 %v5009_v9 }
  0x3c   : > { %1431 = vmatpush.bf16.msrb.mxu1 %v5072_v21 }
  0x4b   : > { %504 = vmatmul.bf16.gmra.mxu0 %v5010_v10 }
  0x5b   : > { %509 = vmatmul.bf16.gmra.mxu0 %v5011_v11 }
  0x6b   : > { %514 = vmatmul.bf16.gmra.mxu0 %v5012_v13 }
  0x7b   : > { %519 = vmatmul.bf16.gmra.mxu0 %v5013_v18  ;;  %v5791_v18 = vld [vmem:[%s7058_s2 + $0x168] sm:$0xff] }
  0x7c   : > { %1891 = vmatpush.bf16.msrb.mxu3 %v5791_v18 }
  0x80   : > { %1892 = vmatpush.bf16.msrb.mxu3 %v5815_v1 }
  0x8b   : > { %524 = vmatmul.bf16.gmra.mxu0 %v5014_v27 }
  0x9b   : > { %529 = vmatmul.bf16.gmra.mxu0 %v5015_v36 }
  0xa8   : > { %v495_v46 = vpop.f32.mrf.mxu0 }
  0xa9   : > { %v585_v49 = vmax.f32 %v495_v46, 0.0 }
  0xab   : > { %534 = vmatmul.bf16.gmra.mxu0 %v5016_v45 }
  0xb0   : > { %v497_v48 = vpop.f32.mrf.mxu0 }
  0xb1   : > { %v586_v50 = vmax.f32 %v497_v48, 0.0 }
  0xb3   : > { %v5760_v53 = vpack.c.bf16 %v586_v50, %v585_v49 }
  0xb5   : > { %5330 = vst [vmem:[#allocation2 + $0x10] sm:$0xff] %v5760_v53   ;;  %1233 = vmatmul.bf16.gmra.mxu3 %v5760_v53 }
  0xb8   : > { %v500_v57 = vpop.f32.mrf.mxu0 }
  0xb9   : > { %v587_v10 = vmax.f32 %v500_v57, 0.0 }
  0xbb   : > { %539 = vmatmul.bf16.gmra.mxu0 %v5017_v56 }
  0xbc   : > { %v5459_v62 = vld [vmem:[#allocation2 + $0xc] sm:$0xff]  }
  0xbd   : > { %v1008_v2 = vrot.slane %v5459_v62, 3  ;;  %v812_v3 = vshrl.u32 %v5459_v62, 16  ;;  %v815_v4 = vshll.u32 %v5459_v62, 16 }
  0xbf   : > { %v1009_v6 = vsel %vm1006_vm0, %v1007_v63, %v1008_v2  ;;  %v814_v8 = vrot.slane %v812_v3, 3  ;;  %v817_v9 = vrot.slane %v815_v4, 4  ;;  %v5807_v63 = vld [vmem:[%s7058_s2 + $0x120] sm:$0xff] }
  0xc0   : > { %v502_v5 = vpop.f32.mrf.mxu0  ;;  %1091 = vmatmul.bf16.vlgmr.msra.gmra.mxu2 %v1009_v6 }
  0xc1   : > { %v588_v11 = vmax.f32 %v502_v5, 0.0  ;;  %v818_v12 = vor.u32 %v817_v9, %v814_v8  ;;  %1722 = vmatpush.bf16.msrb.mxu2 %v5807_v63 }
  0xc3   : > { %v5172_v13 = vpack.c.bf16 %v588_v11, %v587_v10  ;;  %v819_v14 = vsel %vm802_vm1, %v810_v7, %v818_v12 }
  0xc4   : > { %957 = vmatmul.bf16.vlgmr.msra.gmra.mxu1 %v819_v14 }
  0xc5   : > { %5331 = vst [vmem:[#allocation2 + $0x18] sm:$0xff] %v5172_v13   ;;  %1238 = vmatmul.bf16.gmra.mxu3 %v5172_v13 }
  0xc8   : > { %v505_v16 = vpop.f32.mrf.mxu0 }
  0xc9   : > { %v589_v47 = vmax.f32 %v505_v16, 0.0 }
  0xcb   : > { %544 = vmatmul.bf16.gmra.mxu0 %v5018_v15 }
  0xcc   : > { %v5461_v24 = vld [vmem:[#allocation2 + $0x14] sm:$0xff]   ;;  %v1962_v51 = vld [vmem:[#allocation2 + $0x1c] sm:$0xf] }
  0xcd   : > { %v1010_v25 = vrot.slane %v5461_v24, 3  ;;  %v821_v26 = vshrl.u32 %v5461_v24, 16  ;;  %v824_v27 = vshll.u32 %v5461_v24, 16  ;;  %v1961_v50 = vld [vmem:[#allocation2 + $0x18] sm:$0xe]  ;;  %v2017_v58 = vunpack.c.l.b16 %v1962_v51 }
  0xce   : > { %v2433_v56 = vld [vmem:[#allocation2 + $0x18] sm:$0xc]  ;;  %v2016_v57 = vunpack.c.l.b16 %v1961_v50 }
  0xcf   : > { %v1011_v44 = vsel %vm1006_vm0, %v1008_v2, %v1010_v25  ;;  %v823_v45 = vrot.slane %v821_v26, 3  ;;  %v826_v46 = vrot.slane %v824_v27, 4  ;;  %v2452_v61 = vunpack.c.l.b16 %v2433_v56  ;;  %v5071_v2 = vld [vmem:[%s7058_s2 + $0xe0] sm:$0xff] }
  0xd0   : > { %v507_v36 = vpop.f32.mrf.mxu0  ;;  %1096 = vmatmul.bf16.gmra.mxu2 %v1011_v44  ;;  %v5809_v0 = vpack.c.b16 %v2017_v58, %v2016_v57  ;;  %1432 = vmatpush.bf16.msrb.mxu1 %v5071_v2  ;;  %v5840_v57 = vld [vmem:[%s7058_s2 + $0x118] sm:$0xff] }
  0xd1   : > { %v590_v48 = vmax.f32 %v507_v36, 0.0  ;;  %v827_v49 = vor.u32 %v826_v46, %v823_v45  ;;  %v2453_v3 = vpack.c.b16 %v2017_v58, %v2452_v61  ;;  %v5112_v58 = vld [vmem:[%s7058_s2 + $0x1a8] sm:$0xff]  ;;  %1723 = vmatpush.bf16.msrb.mxu2 %v5840_v57 }
  0xd2   : > { %v2216_v6 = vshrl.u32 %v5809_v0, 16  ;;  %v2219_v10 = vshll.u32 %v5809_v0, 16  ;;  %2123 = vmatpush.bf16.msrb.mxu0 %v5112_v58 }
  0xd3   : > { %v5177_v52 = vpack.c.bf16 %v590_v48, %v589_v47  ;;  %v828_v54 = vsel %vm802_vm1, %v818_v12, %v827_v49  ;;  %v2455_v11 = vrot.slane %v2453_v3, 2 }
  0xd4   : > { %962 = vmatmul.bf16.gmra.mxu1 %v828_v54  ;;  %v2218_v26 = vrot.slane %v2216_v6, 1  ;;  %v2221_v36 = vrot.slane %v2219_v10, 2 }
  0xd5   : > { %5332 = vst [vmem:[#allocation2 + $0x20] sm:$0xff] %v5177_v52   ;;  %1243 = vmatmul.bf16.gmra.mxu3 %v5177_v52  ;;  %v5020_v52 = vld [vmem:[%s5611_s22 + $0x60] sm:$0xff] }
  0xd6   : > { %v2222_v50 = vor.u32 %v2221_v36, %v2218_v26 }
  0xd8   : > { %v510_v62 = vpop.f32.mrf.mxu0 }
  0xd9   : > { %v591_v19 = vmax.f32 %v510_v62, 0.0 }
  0xdb   : > { %549 = vmatmul.bf16.gmra.mxu0 %v5019_v59 }
  0xdc   : > { %v5463_v4 = vld [vmem:[#allocation2 + $0x1c] sm:$0xff]  }
  0xdd   : > { %v5820_v5 = vld [vmem:[#allocation2 + $0x20] sm:$0xff]  ;;  %v1012_v7 = vrot.slane %v5463_v4, 3  ;;  %v830_v8 = vshrl.u32 %v5463_v4, 16  ;;  %v833_v9 = vshll.u32 %v5463_v4, 16 }
  0xde   : > { %v2456_v12 = vrot.slane %v5820_v5, 2  ;;  %v2224_v44 = vshrl.u32 %v5820_v5, 16  ;;  %v2227_v45 = vshll.u32 %v5820_v5, 16 }
  0xdf   : > { %v1013_v14 = vsel %vm1006_vm0, %v1010_v25, %v1012_v7  ;;  %v832_v15 = vrot.slane %v830_v8, 3  ;;  %v835_v16 = vrot.slane %v833_v9, 4 }
  0xe0   : > { %v512_v13 = vpop.f32.mrf.mxu0  ;;  %1101 = vmatmul.bf16.gmra.mxu2 %v1013_v14  ;;  %v5828_v24 = vsel %vm2454_vm2, %v2455_v11, %v2456_v12  ;;  %v2226_v25 = vrot.slane %v2224_v44, 1  ;;  %v2229_v48 = vrot.slane %v2227_v45, 2 }
  0xe1   : > { %v592_v21 = vmax.f32 %v512_v13, 0.0  ;;  %v836_v27 = vor.u32 %v835_v16, %v832_v15 }
  0xe2   : > { %v2230_v51 = vor.u32 %v2229_v48, %v2226_v25 }
  0xe3   : > { %v5182_v46 = vpack.c.bf16 %v592_v21, %v591_v19  ;;  %v837_v47 = vsel %vm802_vm1, %v827_v49, %v836_v27  ;;  %v5845_v49 = vld [vmem:[%s7058_s2 + $0x158] sm:$0xff] }
  0xe4   : > { %967 = vmatmul.bf16.gmra.mxu1 %v837_v47  ;;  %v5835_v56 = vsel %vm2214_vm3, %v2222_v50, %v2230_v51  ;;  %1893 = vmatpush.bf16.msrb.mxu3 %v5845_v49 }
  0xe5   : > { %5333 = vst [vmem:[#allocation2 + $0x28] sm:$0xff] %v5182_v46   ;;  %1248 = vmatmul.bf16.gmra.mxu3 %v5182_v46 }
  0xe8   : > { %v515_v54 = vpop.f32.mrf.mxu0 }
  0xe9   : > { %v593_v11 = vmax.f32 %v515_v54, 0.0 }
  0xeb   : > { %554 = vmatmul.bf16.gmra.mxu0 %v5020_v52 }
  0xec   : > { %v5465_v59 = vld [vmem:[#allocation2 + $0x24] sm:$0xff]  }
  0xed   : > { %v5850_v61 = vld [vmem:[#allocation2 + $0x28] sm:$0xff]  ;;  %v1014_v62 = vrot.slane %v5465_v59, 3  ;;  %v839_v2 = vshrl.u32 %v5465_v59, 16  ;;  %v842_v3 = vshll.u32 %v5465_v59, 16 }
  0xee   : > { %v2458_v4 = vrot.slane %v5850_v61, 2  ;;  %v2233_v16 = vshrl.u32 %v5850_v61, 16  ;;  %v2236_v19 = vshll.u32 %v5850_v61, 16 }
  0xef   : > { %v1015_v8 = vsel %vm1006_vm0, %v1012_v7, %v1014_v62  ;;  %v841_v9 = vrot.slane %v839_v2, 3  ;;  %v844_v10 = vrot.slane %v842_v3, 4  ;;  %v5070_v7 = vld [vmem:[%s7058_s2 + $0xd8] sm:$0xff] }
  0xf0   : > { %v517_v6 = vpop.f32.mrf.mxu0  ;;  %1106 = vmatmul.bf16.gmra.mxu2 %v1015_v8  ;;  %v5857_v14 = vsel %vm2454_vm2, %v2456_v12, %v2458_v4  ;;  %v2235_v36 = vrot.slane %v2233_v16, 1  ;;  %v2238_v44 = vrot.slane %v2236_v19, 2  ;;  %v5021_v12 = vld [vmem:[%s5611_s22 + $0x68] sm:$0xff]  ;;  %1433 = vmatpush.bf16.msrb.mxu1 %v5070_v7 }
  0xf1   : > { %v594_v13 = vmax.f32 %v517_v6, 0.0  ;;  %v845_v15 = vor.u32 %v844_v10, %v841_v9 }
  0xf2   : > { %v2239_v45 = vor.u32 %v2238_v44, %v2235_v36  ;;  %v5022_v44 = vld [vmem:[%s5611_s22 + $0x70] sm:$0xff] }
  0xf3   : > { %v5187_v21 = vpack.c.bf16 %v594_v13, %v593_v11  ;;  %v846_v26 = vsel %vm802_vm1, %v836_v27, %v845_v15  ;;  %v5872_v27 = vld [vmem:[%s7058_s2 + $0x110] sm:$0xff] }
  0xf4   : > { %972 = vmatmul.bf16.gmra.mxu1 %v846_v26  ;;  %v5867_v47 = vsel %vm2214_vm3, %v2230_v51, %v2239_v45  ;;  %1724 = vmatpush.bf16.msrb.mxu2 %v5872_v27 }
  0xf5   : > { %5334 = vst [vmem:[#allocation2 + $0x30] sm:$0xff] %v5187_v21   ;;  %1253 = vmatmul.bf16.gmra.mxu3 %v5187_v21 }
  0xf8   : > { %v520_v46 = vpop.f32.mrf.mxu0 }
  0xf9   : > { %v595_v6 = vmax.f32 %v520_v46, 0.0 }
  0xfb   : > { %559 = vmatmul.bf16.gmra.mxu0 %v5021_v12 }
  0xfc   : > { %v5467_v25 = vld [vmem:[#allocation2 + $0x2c] sm:$0xff]  }
  0xfd   : > { %v5874_v48 = vld [vmem:[#allocation2 + $0x30] sm:$0xff]  ;;  %v1016_v50 = vrot.slane %v5467_v25, 3  ;;  %v848_v52 = vshrl.u32 %v5467_v25, 16  ;;  %v851_v54 = vshll.u32 %v5467_v25, 16 }
  0xfe   : > { %v2460_v58 = vrot.slane %v5874_v48, 2  ;;  %v2242_v11 = vshrl.u32 %v5874_v48, 16  ;;  %v2245_v13 = vshll.u32 %v5874_v48, 16 }
  0xff   : > { %v1017_v51 = vsel %vm1006_vm0, %v1014_v62, %v1016_v50  ;;  %v850_v2 = vrot.slane %v848_v52, 3  ;;  %v853_v3 = vrot.slane %v851_v54, 4  ;;  %v5888_v62 = vld [vmem:[%s7058_s2 + $0x150] sm:$0xff] }
 0x100   : > { %v522_v59 = vpop.f32.mrf.mxu0  ;;  %1111 = vmatmul.bf16.gmra.mxu2 %v1017_v51  ;;  %v5880_v9 = vsel %vm2454_vm2, %v2458_v4, %v2460_v58  ;;  %v2244_v21 = vrot.slane %v2242_v11, 1  ;;  %v2247_v26 = vrot.slane %v2245_v13, 2  ;;  %v5069_v4 = vld [vmem:[%s7058_s2 + $0xd0] sm:$0xff]  ;;  %1894 = vmatpush.bf16.msrb.mxu3 %v5888_v62 }
 0x101   : > { %v596_v8 = vmax.f32 %v522_v59, 0.0  ;;  %v854_v10 = vor.u32 %v853_v3, %v850_v2  ;;  %1434 = vmatpush.bf16.msrb.mxu1 %v5069_v4 }
 0x102   : > { %v2248_v36 = vor.u32 %v2247_v26, %v2244_v21 }
 0x103   : > { %v5192_v16 = vpack.c.bf16 %v596_v8, %v595_v6  ;;  %v855_v19 = vsel %vm802_vm1, %v845_v15, %v854_v10 }
 0x104   : > { %977 = vmatmul.bf16.gmra.mxu1 %v855_v19  ;;  %v5896_v7 = vsel %vm2214_vm3, %v2239_v45, %v2248_v36 }
 0x105   : > { %5335 = vst [vmem:[#allocation2 + $0x38] sm:$0xff] %v5192_v16   ;;  %1258 = vmatmul.bf16.gmra.mxu3 %v5192_v16 }
 0x106   : > { %7071 = vst [vmem:[#allocation3_spill] sm:$0xff] %v5896_v7 }
 0x108   : > { %v525_v15 = vpop.f32.mrf.mxu0 }
 0x109   : > { %v597_v8 = vmax.f32 %v525_v15, 0.0  ;;  %v5928_v15 = vld [vmem:[%s7058_s2 + $0xc8] sm:$0xff] }
 0x10a   : > { %1435 = vmatpush.bf16.msrb.mxu1 %v5928_v15 }
 0x10b   : > { %564 = vmatmul.bf16.gmra.mxu0 %v5022_v44  ;;  %v5920_v44 = vld [vmem:[%s7058_s2 + $0x148] sm:$0xff] }
 0x10c   : > { %v5469_v12 = vld [vmem:[#allocation2 + $0x34] sm:$0xff]   ;;  %1895 = vmatpush.bf16.msrb.mxu3 %v5920_v44 }
 0x10d   : > { %v5898_v46 = vld [vmem:[#allocation2 + $0x38] sm:$0xff]  ;;  %v1018_v25 = vrot.slane %v5469_v12, 3  ;;  %v857_v52 = vshrl.u32 %v5469_v12, 16  ;;  %v860_v54 = vshll.u32 %v5469_v12, 16 }
 0x10e   : > { %v2462_v59 = vrot.slane %v5898_v46, 2  ;;  %v2251_v16 = vshrl.u32 %v5898_v46, 16  ;;  %v2254_v19 = vshll.u32 %v5898_v46, 16 }
 0x10f   : > { %v1019_v2 = vsel %vm1006_vm0, %v1016_v50, %v1018_v25  ;;  %v859_v3 = vrot.slane %v857_v52, 3  ;;  %v862_v6 = vrot.slane %v860_v54, 4  ;;  %v5023_v52 = vld [vmem:[%s5611_s22 + $0x78] sm:$0xff] }
 0x110   : > { %v527_v51 = vpop.f32.mrf.mxu0  ;;  %1116 = vmatmul.bf16.gmra.mxu2 %v1019_v2  ;;  %v5903_v45 = vsel %vm2454_vm2, %v2460_v58, %v2462_v59  ;;  %v2253_v4 = vrot.slane %v2251_v16, 1  ;;  %v2256_v50 = vrot.slane %v2254_v19, 2  ;;  %v5915_v58 = vld [vmem:[%s7058_s2 + $0x108] sm:$0xff]  ;;  %v5110_v2 = vld [vmem:[%s7058_s2 + $0x198] sm:$0xff]  ;;  %v5109_v19 = vld [vmem:[%s7058_s2 + $0x190] sm:$0xff] }
 0x111   : > { %v598_v11 = vmax.f32 %v527_v51, 0.0  ;;  %7072 = vst [vmem:[#allocation4_spill] sm:$0xff] %v5903_v45  ;;  %v863_v13 = vor.u32 %v862_v6, %v859_v3  ;;  %1725 = vmatpush.bf16.msrb.mxu2 %v5915_v58  ;;  %v5943_v3 = vld [vmem:[%s7058_s2 + $0x140] sm:$0xff] }
 0x112   : > { %v2257_v12 = vor.u32 %v2256_v50, %v2253_v4  ;;  %1896 = vmatpush.bf16.msrb.mxu3 %v5943_v3 }
 0x113   : > { %v5907_v21 = vpack.c.bf16 %v598_v11, %v597_v8  ;;  %v864_v26 = vsel %vm802_vm1, %v854_v10, %v863_v13  ;;  %v5111_v10 = vld [vmem:[%s7058_s2 + $0x1a0] sm:$0xff] }
 0x114   : > { %982 = vmatmul.bf16.gmra.mxu1 %v864_v26  ;;  %2124 = vmatpush.bf16.msrb.mxu0 %v5111_v10  ;;  %v5935_v51 = vsel %vm2214_vm3, %v2248_v36, %v2257_v12 }
 0x115   : > { %5336 = vst [vmem:[#allocation2 + $0x40] sm:$0xff] %v5907_v21   ;;  %1263 = vmatmul.bf16.gmra.mxu3 %v5907_v21 }
 0x116   : > { %7073 = vst [vmem:[#allocation5_spill] sm:$0xff] %v5935_v51  ;;  %2869 = vmatpush.bf16.msra.mxu3 %v5648_v22 }
 0x118   : > { %v530_v54 = vpop.f32.mrf.mxu0  ;;  %2125 = vmatpush.bf16.msrb.mxu0 %v5110_v2 }
 0x119   : > { %v599_v2 = vmax.f32 %v530_v54, 0.0  ;;  %v5108_v54 = vld [vmem:[%s7058_s2 + $0x188] sm:$0xff] }
 0x11a   : > { %2870 = vmatpush.bf16.msra.mxu3 %v5665_v28  ;;  %v5981_v28 = vld [vmem:[%s7058_s2 + $0x100] sm:$0xff] }
 0x11b   : > { %569 = vmatmul.bf16.gmra.mxu0 %v5023_v52  ;;  %1726 = vmatpush.bf16.msrb.mxu2 %v5981_v28 }
 0x11c   : > { %v5945_v6 = vld [vmem:[#allocation2 + $0x3c] sm:$0xff]   ;;  %2126 = vmatpush.bf16.msrb.mxu0 %v5109_v19  ;;  %v5976_v19 = vpop.f32.mrf.mxu3 }
 0x11d   : > { %v5947_v8 = vld [vmem:[#allocation2 + $0x40] sm:$0xff]  ;;  %v1020_v36 = vrot.slane %v5945_v6, 3  ;;  %v866_v11 = vshrl.u32 %v5945_v6, 16  ;;  %v869_v16 = vshll.u32 %v5945_v6, 16 }
 0x11e   : > { %v7064_v26 = vrot.slane %v5947_v8, 2  ;;  %v2260_v22 = vshrl.u32 %v5947_v8, 16  ;;  %2871 = vmatpush.bf16.msra.mxu3 %v5677_v30 }
 0x11f   : > { %v1021_v50 = vsel %vm1006_vm0, %v1018_v25, %v1020_v36  ;;  %v868_v10 = vrot.slane %v866_v11, 3  ;;  %v871_v52 = vrot.slane %v869_v16, 4  ;;  %v2263_v25 = vshll.u32 %v5947_v8, 16 }
 0x120   : > { %v532_v4 = vpop.f32.mrf.mxu0  ;;  %1121 = vmatmul.bf16.gmra.mxu2 %v1021_v50  ;;  %v5964_v45 = vsel %vm2454_vm2, %v2462_v59, %v7064_v26  ;;  %v2262_v59 = vrot.slane %v2260_v22, 1  ;;  %2127 = vmatpush.bf16.msrb.mxu0 %v5108_v54  ;;  %v5024_v50 = vld [vmem:[%s5611_s22 + $0x80] sm:$0xff] }
 0x121   : > { %v600_v51 = vmax.f32 %v532_v4, 0.0  ;;  %v5966_v7 = vor.u32 %v871_v52, %v868_v10  ;;  %v2265_v4 = vrot.slane %v2263_v25, 2  ;;  %v5107_v10 = vld [vmem:[%s7058_s2 + $0x180] sm:$0xff]  ;;  %v5285_v25 = vunpack.c.h.b16 %v5907_v21 }
 0x122   : > { %2872 = vmatpush.bf16.msra.mxu3 %v5689_v32 }
 0x123   : > { %v5202_v11 = vpack.c.bf16 %v600_v51, %v599_v2  ;;  %v873_v16 = vsel %vm802_vm1, %v863_v13, %v5966_v7  ;;  %v5986_v51 = vld [vmem:[%s7058_s2 + $0xc0] sm:$0xff]  ;;  %v2266_v13 = vor.u32 %v2265_v4, %v2262_v59 }
 0x124   : > { %987 = vmatmul.bf16.gmra.mxu1 %v873_v16  ;;  %2128 = vmatpush.bf16.msrb.mxu0 %v5107_v10  ;;  %v6003_v16 = vpop.f32.mrf.mxu3 }
 0x125   : > { %5337 = vst [vmem:[#allocation2 + $0x48] sm:$0xff] %v5202_v11   ;;  %1436 = vmatpush.bf16.msrb.mxu1 %v5986_v51  ;;  %v5996_v2 = vsel %vm2214_vm3, %v2257_v12, %v2266_v13 }
 0x126   : > { %7074 = vst [vmem:[#allocation6_spill] sm:$0xff] %v5996_v2  ;;  %2873 = vmatpush.bf16.msra.mxu3 %v5701_v34 }
 0x128   : > { %v535_v52 = vpop.f32.mrf.mxu0  ;;  %2954 = vmatpush.bf16.msra.mxu0 %v5640_v20 }
 0x129   : > { %v601_v12 = vmax.f32 %v535_v52, 0.0 }
 0x12a   : > { %2874 = vmatpush.bf16.msra.mxu3 %v5714_v37  ;;  %v6027_v37 = vld [vmem:[%s7058_s2 + $0x238] sm:$0xff] }
 0x12b   : > { %574 = vmatmul.bf16.gmra.mxu0 %v5024_v50  ;;  %2531 = vmatpush.bf16.msra.mxu2 %v6027_v37 }
 0x12c   : > { %v718_v30 = vld [vmem:[#allocation2 + $0x48] sm:$0xff]   ;;  %2955 = vmatpush.bf16.msra.mxu0 %v5655_v23 }
 0x12d   : > { %v6000_v22 = vld [vmem:[#allocation2 + $0x48] sm:$0xff]  ;;  %v790_v11 = vunpack.c.l.b16 %v718_v30  ;;  %v791_v54 = vunpack.c.h.b16 %v718_v30  ;;  %1268 = vmatmul.bf16.gmra.mxu3 %v718_v30 }
 0x12e   : > { %v2466_v20 = vrot.slane %v6000_v22, 2  ;;  %v2269_v4 = vshrl.u32 %v6000_v22, 16  ;;  %v2272_v50 = vshll.u32 %v6000_v22, 16  ;;  %2875 = vmatpush.bf16.msra.mxu3 %v5726_v39 }
 0x12f   : > { %v6007_v59 = vpack.c.b16 %v790_v11, %v5285_v25  ;;  %v719_v11 = vld [vmem:[#allocation2 + $0x4c] sm:$0x7] }
 0x130   : > { %v537_v32 = vpop.f32.mrf.mxu0  ;;  %2956 = vmatpush.bf16.msra.mxu0 %v5670_v29  ;;  %v7075_v29 = vrot.slane %v5947_v8, 2  ;;  %v2271_v6 = vrot.slane %v2269_v4, 1 }
 0x131   : > { %v602_v10 = vmax.f32 %v537_v32, 0.0  ;;  %v7065_v21 = vrot.slane %v6007_v59, 3  ;;  %v875_v26 = vshrl.u32 %v6007_v59, 16  ;;  %v878_v34 = vshll.u32 %v6007_v59, 16 }
 0x132   : > { %2876 = vmatpush.bf16.msra.mxu3 %v5738_v41 }
 0x133   : > { %v5207_v23 = vpack.c.bf16 %v602_v10, %v601_v12  ;;  %v1023_v52 = vsel %vm1006_vm0, %v1020_v36, %v7065_v21  ;;  %v877_v25 = vrot.slane %v875_v26, 3  ;;  %v880_v30 = vrot.slane %v878_v34, 4 }
 0x134   : > { %1126 = vmatmul.bf16.gmra.mxu2 %v1023_v52  ;;  %v6032_v12 = vsel %vm2454_vm2, %v7075_v29, %v2466_v20  ;;  %v2274_v36 = vrot.slane %v2272_v50, 2  ;;  %v1004_v10 = vunpack.c.l.b16 %v719_v11  ;;  %2957 = vmatpush.bf16.msra.mxu0 %v5682_v31  ;;  %v801_v26 = vpack.c.b16 %v791_v54, %v791_v54  ;;  %v5357_v52 = vld [vmem:[#allocation2 + $0x10] sm:$0xf0]  ;;  %v6043_v50 = vld [vmem:[#allocation2 + $0x18] sm:$0xff] }
 0x135   : > { %5338 = vst [vmem:[#allocation2 + $0x50] sm:$0xff] %v5207_v23   ;;  %v6022_v32 = vor.u32 %v880_v30, %v877_v25  ;;  %v5025_v23 = vld [vmem:[%s5611_s22 + $0x88] sm:$0xff]  ;;  %v5358_v25 = vld [vmem:[#allocation2 + $0x10] sm:$0xe]  ;;  %v6048_v31 = vld [vmem:[%s7058_s2 + $0x1f8] sm:$0xff] }
 0x136   : > { %7076 = vst [vmem:[#allocation7_spill] sm:$0xff] %v6032_v12  ;;  %v2275_v30 = vor.u32 %v2274_v36, %v2271_v6  ;;  %v1005_v54 = vpack.c.b16 %v1004_v10, %v1004_v10  ;;  %v884_v11 = vshrl.u32 %v801_v26, 16  ;;  %v887_v6 = vshll.u32 %v801_v26, 16  ;;  %2361 = vmatpush.bf16.msra.mxu1 %v6048_v31 }
 0x137   : > { %v882_v34 = vsel %vm802_vm1, %v5966_v7, %v6022_v32  ;;  %v5359_v7 = vor.u32 %v5358_v25, %v5357_v52  ;;  %v7066_v36 = vrot.slane %v6043_v50, 1 }
 0x138   : > { %v540_v29 = vpop.f32.mrf.mxu0  ;;  %992 = vmatmul.bf16.gmra.mxu1 %v882_v34  ;;  %v6041_v4 = vpop.f32.mrf.mxu3  ;;  %v6051_v39 = vsel %vm2214_vm3, %v2266_v13, %v2275_v30  ;;  %2958 = vmatpush.bf16.msra.mxu0 %v5694_v33  ;;  %v1024_v12 = vrot.slane %v1005_v54, 3  ;;  %v886_v33 = vrot.slane %v884_v11, 3  ;;  %v889_v52 = vrot.slane %v887_v6, 4 }
 0x139   : > { %7077 = vst [vmem:[#allocation8_spill] sm:$0xff] %v6051_v39  ;;  %v1813_v21 = vrot.slane %v5359_v7, 1  ;;  %v603_v10 = vmax.f32 %v540_v29, 0.0 }
 0x13a   : > { %v890_v39 = vor.u32 %v889_v52, %v886_v33 }
 0x13b   : > { %579 = vmatmul.bf16.gmra.mxu0 %v5025_v23  ;;  %v1815_v26 = vsel %vm1812_vm4, %v1813_v21, %v7066_v36  ;;  %v7079_v21 = vrot.slane %v6007_v59, 3 }
 0x13c   : > { %v6057_v34 = vld [vmem:[#allocation2 + $0x50] sm:$0xff]  ;;  %2959 = vmatpush.bf16.msra.mxu0 %v5706_v35 }
 0x13d   : > { %v2468_v13 = vrot.slane %v6057_v34, 2  ;;  %v2278_v41 = vshrl.u32 %v6057_v34, 16  ;;  %1897 = vmatmul.bf16.vlgmr.msrb.gmra.mxu3 %v1815_v26  ;;  %v2281_v11 = vshll.u32 %v6057_v34, 16  ;;  %v1025_v36 = vsel %vm1006_vm0, %v7079_v21, %v1024_v12 }
 0x13e   : > { %3394 = vmatpush.bf16.msrb.mxu3 %v5744_v42  ;;  %v2046_v42 = vrot.slane %v5820_v5, 1  ;;  %v891_v12 = vsel %vm802_vm1, %v6022_v32, %v890_v39  ;;  %v6097_v5 = vld [vmem:[#allocation2 + $0x20] sm:$0xff]  ;;  %v6107_v32 = vld [vmem:[%s7058_s2 + $0x1f0] sm:$0xff] }
 0x13f   : > { %v6070_v7 = vsel %vm2454_vm2, %v2466_v20, %v2468_v13  ;;  %v2280_v29 = vrot.slane %v2278_v41, 1  ;;  %v2283_v20 = vrot.slane %v2281_v11, 2  ;;  %2362 = vmatpush.bf16.msra.mxu1 %v6107_v32 }
 0x140   : > { %v542_v23 = vpop.f32.mrf.mxu0  ;;  %v6065_v25 = vpop.f32.mrf.mxu3  ;;  %7078 = vst [vmem:[#allocation9_spill] sm:$0xff] %v6070_v7  ;;  %2960 = vmatpush.bf16.msra.mxu0 %v5719_v38  ;;  %v6081_v38 = vld [vmem:[%s7058_s2 + $0x230] sm:$0xff] }
 0x141   : > { %v604_v35 = vmax.f32 %v542_v23, 0.0  ;;  %v958_v54 = vpop.f32.mrf.mxu1  ;;  %v6086_v59 = vor.u32 %v2283_v20, %v2280_v29  ;;  %2532 = vmatpush.bf16.msra.mxu2 %v6081_v38 }
 0x142   : > { %3395 = vmatpush.bf16.msrb.mxu3 %v5767_v55  ;;  %v1589_v55 = vshll.u32 %v5760_v53, 16 }
 0x143   : > { %v5212_v6 = vpack.c.bf16 %v604_v35, %v603_v10  ;;  %v1092_v2 = vpop.f32.mrf.mxu2  ;;  %v2045_v10 = vrot.slane %v5809_v0, 1  ;;  %v1594_v0 = vshll.u32 %v6043_v50, 16 }
 0x144   : > { %1131 = vmatmul.bf16.gmra.mxu2 %v1025_v36  ;;  %v1093_v23 = vadd.f32 %v1092_v2, %v958_v54  ;;  %2961 = vmatpush.bf16.msra.mxu0 %v5731_v40  ;;  %v6101_v40 = vsel %vm2214_vm3, %v2275_v30, %v6086_v59  ;;  %v1816_v30 = vrot.slane %v6097_v5, 1  ;;  %v1591_v26 = vrot.slane %v1589_v55, 1 }
 0x145   : > { %5339 = vst [vmem:[#allocation2 + $0x58] sm:$0xff] %v5212_v6   ;;  %v2047_v39 = vsel %vm1812_vm4, %v2045_v10, %v2046_v42  ;;  %v1587_v54 = vshrl.u32 %v5760_v53, 16  ;;  %v1596_v29 = vrot.slane %v1594_v0, 1  ;;  %v7081_v6 = vrot.slane %v6043_v50, 1  ;;  %v5058_v10 = vld [vmem:[#allocation2 + $0x10] sm:$0xff] }
 0x146   : > { %v6092_v2 = vadd.f32 %v5976_v19, %v1093_v23  ;;  %7080 = vst [vmem:[#allocation10_spill] sm:$0xff] %v6101_v40  ;;  %3396 = vmatpush.bf16.msrb.mxu3 %v5786_v17  ;;  %v2048_v55 = vrot.slane %v5850_v61, 1 }
 0x147   : > { %v1817_v21 = vsel %vm1812_vm4, %v7081_v6, %v1816_v30 }
 0x148   : > { %v545_v36 = vpop.f32.mrf.mxu0  ;;  %997 = vmatmul.bf16.gmra.mxu1 %v891_v12  ;;  %v6095_v33 = vpop.f32.mrf.mxu3  ;;  %v2049_v61 = vsel %vm1812_vm4, %v2046_v42, %v2048_v55  ;;  %v1598_v42 = vshrl.u32 %v6043_v50, 16 }
 0x149   : > { %v960_v19 = vpop.f32.mrf.mxu1  ;;  %v605_v35 = vmax.f32 %v545_v36, 0.0 }
 0x14a   : > { %3397 = vmatpush.bf16.msrb.mxu3 %v5807_v63  ;;  %v1592_v63 = vor.u32 %v1591_v26, %v1587_v54 }
 0x14b   : > { %2129 = vmatmul.bf16.vlgmr.msrb.gmra.mxu0 %v2047_v39  ;;  %v1094_v52 = vpop.f32.mrf.mxu2  ;;  %v6136_v39 = vld [vmem:[#allocation2 + $0x28] sm:$0xff] }
 0x14c   : > { %3498 = vmatpush.bf16.msrb.mxu0 %v5749_v43  ;;  %v1095_v41 = vadd.f32 %v1094_v52, %v960_v19  ;;  %v1818_v52 = vrot.slane %v6136_v39, 1 }
 0x14d   : > { %1902 = vmatmul.bf16.gmra.mxu3 %v1817_v21  ;;  %v1600_v21 = vor.u32 %v1598_v42, %v1596_v29 }
 0x14e   : > { %v6118_v17 = vadd.f32 %v6003_v16, %v1095_v41  ;;  %3398 = vmatpush.bf16.msrb.mxu3 %v5840_v57  ;;  %v1597_v16 = vsel %vm1585_vm5, %v1592_v63, %v1596_v29  ;;  %v6173_v29 = vld [vmem:[#allocation2 + $0x30] sm:$0xff] }
 0x150   : > { %v547_v11 = vpop.f32.mrf.mxu0  ;;  %v6123_v20 = vpop.f32.mrf.mxu3  ;;  %3499 = vmatpush.bf16.msrb.mxu0 %v5774_v60 }
 0x151   : > { %v606_v43 = vmax.f32 %v547_v11, 0.0  ;;  %v963_v23 = vpop.f32.mrf.mxu1  ;;  %v1819_v11 = vsel %vm1812_vm4, %v1816_v30, %v1818_v52  ;;  %v2050_v30 = vrot.slane %v5874_v48, 1  ;;  %v1610_v48 = vshll.u32 %v6136_v39, 16 }
 0x152   : > { %3399 = vmatpush.bf16.msrb.mxu3 %v5872_v27  ;;  %v1602_v27 = vshll.u32 %v6097_v5, 16 }
 0x153   : > { %v5217_v53 = vpack.c.bf16 %v606_v43, %v605_v35  ;;  %v1097_v12 = vpop.f32.mrf.mxu2 }
 0x154   : > { %1727 = vmatmul.bf16.vlgmr.msrb.gmra.mxu2 %v1597_v16  ;;  %3500 = vmatpush.bf16.msrb.mxu0 %v5791_v18  ;;  %v1098_v36 = vadd.f32 %v1097_v12, %v963_v23  ;;  %v6142_v18 = vld [vmem:[%s7058_s2 + $0x228] sm:$0xff]  ;;  %v1604_v26 = vrot.slane %v1602_v27, 1  ;;  %v5059_v23 = vld [vmem:[#allocation2 + $0x18] sm:$0xff]  ;;  %v1612_v27 = vrot.slane %v1610_v48, 1 }
 0x155   : > { %5340 = vst [vmem:[#allocation2 + $0x60] sm:$0xff] %v5217_v53   ;;  %2533 = vmatpush.bf16.msra.mxu2 %v6142_v18 }
 0x156   : > { %v6132_v60 = vadd.f32 %v6041_v4, %v1098_v36  ;;  %3400 = vmatpush.bf16.msrb.mxu3 %v5915_v58  ;;  %v6151_v4 = vld [vmem:[%s7058_s2 + $0x1e8] sm:$0xff]  ;;  %v2051_v36 = vsel %vm1812_vm4, %v2048_v55, %v2050_v30 }
 0x157   : > { %2363 = vmatpush.bf16.msra.mxu1 %v6151_v4 }
 0x158   : > { %v550_v19 = vpop.f32.mrf.mxu0  ;;  %1437 = vmatmul.bf16.vlgmr.msrb.gmra.mxu1 %v5058_v10  ;;  %v6134_v57 = vpop.f32.mrf.mxu3  ;;  %3501 = vmatpush.bf16.msrb.mxu0 %v5815_v1  ;;  %v1820_v10 = vrot.slane %v6173_v29, 1 }
 0x159   : > { %v965_v0 = vpop.f32.mrf.mxu1  ;;  %v607_v58 = vmax.f32 %v550_v19, 0.0 }
 0x15a   : > { %3401 = vmatpush.bf16.msrb.mxu3 %v5981_v28  ;;  %v1605_v28 = vsel %vm1585_vm5, %v1600_v21, %v1604_v26 }
 0x15b   : > { %2134 = vmatmul.bf16.gmra.mxu0 %v2049_v61  ;;  %v1099_v1 = vpop.f32.mrf.mxu2  ;;  %v1606_v61 = vshrl.u32 %v6097_v5, 16 }
 0x15c   : > { %3502 = vmatpush.bf16.msrb.mxu0 %v5845_v49  ;;  %v1100_v41 = vadd.f32 %v1099_v1, %v965_v0 }
 0x15d   : > { %1907 = vmatmul.bf16.gmra.mxu3 %v1819_v11 }
 0x15e   : > { %v6159_v35 = vadd.f32 %v6065_v25, %v1100_v41  ;;  %v1821_v41 = vsel %vm1812_vm4, %v1818_v52, %v1820_v10 }
 0x160   : > { %v552_v54 = vpop.f32.mrf.mxu0  ;;  %v6162_v6 = vpop.f32.mrf.mxu3  ;;  %3503 = vmatpush.bf16.msrb.mxu0 %v5888_v62 }
 0x161   : > { %v608_v49 = vmax.f32 %v552_v54, 0.0  ;;  %v968_v43 = vpop.f32.mrf.mxu1  ;;  %v1608_v54 = vor.u32 %v1606_v61, %v1604_v26 }
 0x163   : > { %v5222_v63 = vpack.c.bf16 %v608_v49, %v607_v58  ;;  %v1102_v50 = vpop.f32.mrf.mxu2  ;;  %v1613_v21 = vsel %vm1585_vm5, %v1608_v54, %v1612_v27 }
 0x164   : > { %1732 = vmatmul.bf16.gmra.mxu2 %v1605_v28  ;;  %3504 = vmatpush.bf16.msrb.mxu0 %v5920_v44  ;;  %v1103_v25 = vadd.f32 %v1102_v50, %v968_v43  ;;  %v6179_v44 = vld [vmem:[%s7058_s2 + $0x220] sm:$0xff]  ;;  %v6203_v50 = vld [vmem:[#allocation2 + $0x38] sm:$0xff] }
 0x165   : > { %5341 = vst [vmem:[#allocation2 + $0x68] sm:$0xff] %v5222_v63   ;;  %2534 = vmatpush.bf16.msra.mxu2 %v6179_v44  ;;  %v5060_v63 = vld [vmem:[#allocation2 + $0x20] sm:$0xff] }
 0x166   : > { %v6169_v53 = vadd.f32 %v6095_v33, %v1103_v25 }
 0x168   : > { %v555_v62 = vpop.f32.mrf.mxu0  ;;  %1442 = vmatmul.bf16.gmra.mxu1 %v5059_v23  ;;  %v6171_v16 = vpop.f32.mrf.mxu3  ;;  %3505 = vmatpush.bf16.msrb.mxu0 %v5943_v3  ;;  %v6188_v3 = vld [vmem:[%s7058_s2 + $0x1e0] sm:$0xff] }
 0x169   : > { %v970_v12 = vpop.f32.mrf.mxu1  ;;  %v609_v0 = vmax.f32 %v555_v62, 0.0  ;;  %2364 = vmatpush.bf16.msra.mxu1 %v6188_v3  ;;  %v1618_v62 = vshll.u32 %v6173_v29, 16 }
 0x16b   : > { %2139 = vmatmul.bf16.gmra.mxu0 %v2051_v36  ;;  %v1104_v33 = vpop.f32.mrf.mxu2 }
 0x16c   : > { %v1105_v19 = vadd.f32 %v1104_v33, %v970_v12  ;;  %v6212_v12 = vld [vmem:[%s7058_s2 + $0x218] sm:$0xff]  ;;  %v1614_v33 = vshrl.u32 %v6136_v39, 16 }
 0x16d   : > { %1912 = vmatmul.bf16.gmra.mxu3 %v1821_v41  ;;  %2535 = vmatpush.bf16.msra.mxu2 %v6212_v12 }
 0x16e   : > { %v6193_v55 = vadd.f32 %v6123_v20, %v1105_v19  ;;  %v2052_v20 = vrot.slane %v5898_v46, 1  ;;  %v1620_v19 = vrot.slane %v1618_v62, 1  ;;  %v1616_v41 = vor.u32 %v1614_v33, %v1612_v27 }
 0x16f   : > { %v1622_v33 = vshrl.u32 %v6173_v29, 16 }
 0x170   : > { %v557_v1 = vpop.f32.mrf.mxu0  ;;  %v6196_v58 = vpop.f32.mrf.mxu3  ;;  %v2053_v23 = vsel %vm1812_vm4, %v2050_v30, %v2052_v20 }
 0x171   : > { %v610_v42 = vmax.f32 %v557_v1, 0.0  ;;  %v973_v11 = vpop.f32.mrf.mxu1 }
 0x173   : > { %v5227_v49 = vpack.c.bf16 %v610_v42, %v609_v0  ;;  %v1107_v5 = vpop.f32.mrf.mxu2 }
 0x174   : > { %1737 = vmatmul.bf16.gmra.mxu2 %v1613_v21  ;;  %v1108_v43 = vadd.f32 %v1107_v5, %v973_v11  ;;  %v1621_v11 = vsel %vm1585_vm5, %v1616_v41, %v1620_v19  ;;  %v5061_v5 = vld [vmem:[#allocation2 + $0x28] sm:$0xff] }
 0x175   : > { %5342 = vst [vmem:[#allocation2 + $0x70] sm:$0xff] %v5227_v49  }
 0x176   : > { %v6201_v28 = vadd.f32 %v6134_v57, %v1108_v43  ;;  %v1822_v57 = vrot.slane %v6203_v50, 1 }
 0x178   : > { %v560_v52 = vpop.f32.mrf.mxu0  ;;  %1447 = vmatmul.bf16.gmra.mxu1 %v5060_v63  ;;  %v6205_v25 = vpop.f32.mrf.mxu3  ;;  %v1823_v61 = vsel %vm1812_vm4, %v1820_v10, %v1822_v57  ;;  %v2054_v10 = vrot.slane %v5947_v8, 1  ;;  %v6234_v63 = vld [vmem:[#allocation2 + $0x40] sm:$0xff] }
 0x179   : > { %v975_v26 = vpop.f32.mrf.mxu1  ;;  %v611_v48 = vmax.f32 %v560_v52, 0.0 }
 0x17b   : > { %2144 = vmatmul.bf16.gmra.mxu0 %v2053_v23  ;;  %v1109_v46 = vpop.f32.mrf.mxu2  ;;  %v1626_v23 = vshll.u32 %v6203_v50, 16 }
 0x17c   : > { %v1110_v36 = vadd.f32 %v1109_v46, %v975_v26  ;;  %v2055_v26 = vsel %vm1812_vm4, %v2052_v20, %v2054_v10  ;;  %v1824_v46 = vrot.slane %v6234_v63, 1 }
 0x17d   : > { %1917 = vmatmul.bf16.gmra.mxu3 %v1823_v61 }
 0x17e   : > { %v6218_v30 = vadd.f32 %v6162_v6, %v1110_v36  ;;  %v6227_v6 = vld [vmem:[%s7058_s2 + $0x1d8] sm:$0xff] }
 0x17f   : > { %2365 = vmatpush.bf16.msra.mxu1 %v6227_v6 }
 0x180   : > { %v562_v0 = vpop.f32.mrf.mxu0  ;;  %v6222_v49 = vpop.f32.mrf.mxu3 }
 0x181   : > { %v612_v1 = vmax.f32 %v562_v0, 0.0  ;;  %v978_v42 = vpop.f32.mrf.mxu1  ;;  %v1628_v0 = vrot.slane %v1626_v23, 1  ;;  %v6265_v23 = vld [vmem:[#allocation2 + $0x48] sm:$0xff] }
 0x183   : > { %v5232_v54 = vpack.c.bf16 %v612_v1, %v611_v48  ;;  %v1112_v21 = vpop.f32.mrf.mxu2  ;;  %v1825_v1 = vsel %vm1812_vm4, %v1822_v57, %v1824_v46 }
 0x184   : > { %1742 = vmatmul.bf16.gmra.mxu2 %v1621_v11  ;;  %v1113_v39 = vadd.f32 %v1112_v21, %v978_v42  ;;  %v1624_v42 = vor.u32 %v1622_v33, %v1620_v19  ;;  %v6260_v19 = vld [vmem:[#allocation2 + $0x58] sm:$0xff] }
 0x185   : > { %5343 = vst [vmem:[#allocation2 + $0x78] sm:$0xff] %v5232_v54  }
 0x186   : > { %v6232_v27 = vadd.f32 %v6171_v16, %v1113_v39  ;;  %v6244_v16 = vld [vmem:[%s7058_s2 + $0x210] sm:$0xff]  ;;  %v1629_v21 = vsel %vm1585_vm5, %v1624_v42, %v1628_v0 }
 0x187   : > { %2536 = vmatpush.bf16.msra.mxu2 %v6244_v16 }
 0x188   : > { %v565_v43 = vpop.f32.mrf.mxu0  ;;  %1452 = vmatmul.bf16.gmra.mxu1 %v5061_v5  ;;  %v6239_v8 = vpop.f32.mrf.mxu3  ;;  %v6256_v5 = vld [vmem:[%s7058_s2 + $0x1d0] sm:$0xff] }
 0x189   : > { %v980_v52 = vpop.f32.mrf.mxu1  ;;  %v613_v48 = vmax.f32 %v565_v43, 0.0  ;;  %v2056_v43 = vrot.slane %v6000_v22, 1  ;;  %2366 = vmatpush.bf16.msra.mxu1 %v6256_v5  ;;  %v7067_v22 = vrot.slane %v6260_v19, 2 }
 0x18b   : > { %2149 = vmatmul.bf16.gmra.mxu0 %v2055_v26  ;;  %v1114_v62 = vpop.f32.mrf.mxu2  ;;  %v6278_v42 = vsel %vm2454_vm2, %v2468_v13, %v7067_v22 }
 0x18c   : > { %v1115_v36 = vadd.f32 %v1114_v62, %v980_v52  ;;  %7082 = vst [vmem:[#allocation11_spill] sm:$0xff] %v6278_v42 }
 0x18d   : > { %1922 = vmatmul.bf16.gmra.mxu3 %v1825_v1  ;;  %v2287_v1 = vshrl.u32 %v6260_v19, 16 }
 0x18e   : > { %v6249_v20 = vadd.f32 %v6196_v58, %v1115_v36  ;;  %v5062_v58 = vld [vmem:[#allocation2 + $0x30] sm:$0xff]  ;;  %v2057_v36 = vsel %vm1812_vm4, %v2054_v10, %v2056_v43 }
 0x18f   : > { %v2289_v10 = vrot.slane %v2287_v1, 1  ;;  %v6298_v1 = vld [vmem:[%s7058_s2 + $0x208] sm:$0xff] }
 0x190   : > { %v567_v61 = vpop.f32.mrf.mxu0  ;;  %v1261_v57 = vpop.f32.mrf.mxu3  ;;  %2537 = vmatpush.bf16.msra.mxu2 %v6298_v1 }
 0x191   : > { %v614_v41 = vmax.f32 %v567_v61, 0.0  ;;  %v983_v54 = vpop.f32.mrf.mxu1  ;;  %v1826_v61 = vrot.slane %v6265_v23, 1 }
 0x193   : > { %v5237_v11 = vpack.c.bf16 %v614_v41, %v613_v48  ;;  %v1117_v39 = vpop.f32.mrf.mxu2  ;;  %v1634_v48 = vshll.u32 %v6234_v63, 16 }
 0x194   : > { %1747 = vmatmul.bf16.gmra.mxu2 %v1629_v21  ;;  %v1118_v29 = vadd.f32 %v1117_v39, %v983_v54  ;;  %v1630_v21 = vshrl.u32 %v6203_v50, 16 }
 0x195   : > { %5344 = vst [vmem:[#allocation2 + $0x80] sm:$0xff] %v5237_v11   ;;  %v1636_v39 = vrot.slane %v1634_v48, 1 }
 0x196   : > { %v6263_v52 = vadd.f32 %v6205_v25, %v1118_v29  ;;  %v2290_v25 = vshll.u32 %v6260_v19, 16  ;;  %v1632_v13 = vor.u32 %v1630_v21, %v1628_v0  ;;  %v6303_v0 = vld [vmem:[%s7058_s2 + $0x1c8] sm:$0xff]  ;;  %v1642_v21 = vshll.u32 %v6265_v23, 16 }
 0x197   : > { %2367 = vmatpush.bf16.msra.mxu1 %v6303_v0 }
 0x198   : > { %v570_v26 = vpop.f32.mrf.mxu0  ;;  %1457 = vmatmul.bf16.gmra.mxu1 %v5062_v58  ;;  %v2292_v54 = vrot.slane %v2290_v25, 2  ;;  %v6287_v40 = vpop.f32.mrf.mxu3  ;;  %v5063_v25 = vld [vmem:[#allocation2 + $0x38] sm:$0xff] }
 0x199   : > { %v985_v62 = vpop.f32.mrf.mxu1  ;;  %v615_v11 = vmax.f32 %v570_v26, 0.0 }
 0x19b   : > { %2154 = vmatmul.bf16.gmra.mxu0 %v2057_v36  ;;  %v1119_v33 = vpop.f32.mrf.mxu2  ;;  %v1827_v36 = vsel %vm1812_vm4, %v1824_v46, %v1826_v61 }
 0x19c   : > { %v1120_v41 = vadd.f32 %v1119_v33, %v985_v62  ;;  %v6285_v62 = vor.u32 %v2292_v54, %v2289_v10  ;;  %v6311_v10 = vld [vmem:[#allocation2 + $0x50] sm:$0xff] }
 0x19d   : > { %1927 = vmatmul.bf16.gmra.mxu3 %v1827_v36  ;;  %v1828_v36 = vrot.slane %v6311_v10, 1 }
 0x19e   : > { %v6282_v29 = vadd.f32 %v6222_v49, %v1120_v41  ;;  %7083 = vst [vmem:[#allocation12_spill] sm:$0xff] %v6285_v62  ;;  %v6292_v26 = vsel %vm2214_vm3, %v6086_v59, %v6285_v62  ;;  %v1637_v49 = vsel %vm1585_vm5, %v1632_v13, %v1636_v39  ;;  %v2058_v59 = vrot.slane %v6057_v34, 1  ;;  %v6325_v62 = vld [vmem:[%s7058_s2 + $0x200] sm:$0xff] }
 0x19f   : > { %7084 = vst [vmem:[#allocation13_spill] sm:$0xff] %v6292_v26  ;;  %2538 = vmatpush.bf16.msra.mxu2 %v6325_v62 }
 0x1a0   : > { %v572_v58 = vpop.f32.mrf.mxu0  ;;  %v2059_v54 = vsel %vm1812_vm4, %v2056_v43, %v2058_v59 }
 0x1a1   : > { %v616_v33 = vmax.f32 %v572_v58, 0.0  ;;  %v988_v22 = vpop.f32.mrf.mxu1 }
 0x1a3   : > { %v5242_v50 = vpack.c.bf16 %v616_v33, %v615_v11  ;;  %v1122_v48 = vpop.f32.mrf.mxu2  ;;  %v6314_v11 = vpop.f32.mrf.mxu3 }
 0x1a4   : > { %1752 = vmatmul.bf16.gmra.mxu2 %v1637_v49  ;;  %v1123_v46 = vadd.f32 %v1122_v48, %v988_v22 }
 0x1a5   : > { %5345 = vst [vmem:[#allocation2 + $0x88] sm:$0xff] %v5242_v50   ;;  %v1644_v50 = vrot.slane %v1642_v21, 1  ;;  %v5064_v21 = vld [vmem:[#allocation2 + $0x40] sm:$0xff] }
 0x1a6   : > { %v6309_v41 = vadd.f32 %v6239_v8, %v1123_v46  ;;  %v1638_v8 = vshrl.u32 %v6234_v63, 16  ;;  %v1829_v46 = vsel %vm1812_vm4, %v1826_v61, %v1828_v36 }
 0x1a8   : > { %7085 = vst [vmem:[#allocation14_spill] sm:$0xff] %v6309_v41  ;;  %v575_v22 = vpop.f32.mrf.mxu0  ;;  %1462 = vmatmul.bf16.gmra.mxu1 %v5063_v25  ;;  %v1640_v25 = vor.u32 %v1638_v8, %v1636_v39  ;;  %v5500_v39 = vld [vmem:[%s7058_s2 + $0xf8] sm:$0xff] }
 0x1a9   : > { %v990_v58 = vpop.f32.mrf.mxu1  ;;  %v617_v13 = vmax.f32 %v575_v22, 0.0  ;;  %3170 = vmatpush.bf16.msrb.mxu2 %v5500_v39 }
 0x1aa   : > { %v1645_v22 = vsel %vm1585_vm5, %v1640_v25, %v1644_v50  ;;  %v5502_v25 = vld [vmem:[%s7058_s2 + $0xb8] sm:$0xff] }
 0x1ab   : > { %2159 = vmatmul.bf16.gmra.mxu0 %v2059_v54  ;;  %v1124_v34 = vpop.f32.mrf.mxu2  ;;  %v1519_v54 = vld [vmem:[#allocation2 + $0x58] sm:$0x1] }
 0x1ac   : > { %v1125_v33 = vadd.f32 %v1124_v34, %v990_v58  ;;  %v7069_v58 = vrot.slane %v6260_v19, 1  ;;  %v6341_v34 = vld [vmem:[%s7058_s2 + $0x1c0] sm:$0xff] }
 0x1ad   : > { %1932 = vmatmul.bf16.gmra.mxu3 %v1829_v46  ;;  %2368 = vmatpush.bf16.msra.mxu1 %v6341_v34  ;;  %v5501_v46 = vld [vmem:[%s7058_s2 + $0xf0] sm:$0xff] }
 0x1ae   : > { %v6319_v49 = vadd.f32 %v1261_v57, %v1125_v33  ;;  %v1574_v57 = vunpack.c.l.b16 %v1519_v54  ;;  %3171 = vmatpush.bf16.msrb.mxu2 %v5501_v46 }
 0x1b0   : > { %7086 = vst [vmem:[#allocation15_spill] sm:$0xff] %v6319_v49  ;;  %v577_v48 = vpop.f32.mrf.mxu0  ;;  %v6331_v63 = vpop.f32.mrf.mxu3  ;;  %v6370_v49 = vld [vmem:[#allocation2 + $0x54] sm:$0xff]  }
 0x1b1   : > { %v618_v43 = vmax.f32 %v577_v48, 0.0  ;;  %v6343_v48 = vpack.c.b16 %v1574_v57, %v1574_v57  ;;  %3026 = vmatpush.bf16.msrb.mxu1 %v5502_v25  ;;  %v1979_v57 = vld [vmem:[#allocation2 + $0x60] sm:$0x1] }
 0x1b3   : > { %v6327_v26 = vpack.c.bf16 %v618_v43, %v617_v13  ;;  %v2061_v43 = vsel %vm1812_vm4, %v2058_v59, %v7069_v58  ;;  %v1830_v39 = vrot.slane %v6343_v48, 1  ;;  %v5503_v59 = vld [vmem:[%s7058_s2 + $0xe8] sm:$0xff]  ;;  %v5472_v58 = vld [vmem:[#allocation2 + $0x4c] sm:$0xf0]  }
 0x1b4   : > { %1757 = vmatmul.bf16.gmra.mxu2 %v1645_v22  ;;  %v1650_v22 = vshll.u32 %v6311_v10, 16 }
 0x1b5   : > { %7087 = vst [vmem:[#allocation16_spill] sm:$0xff] %v6327_v26  ;;  %v993_v61 = vpop.f32.mrf.mxu1  ;;  %3172 = vmatpush.bf16.msrb.mxu2 %v5503_v59  ;;  %v1831_v7 = vsel %vm1812_vm4, %v1828_v36, %v1830_v39  ;;  %v5414_v59 = vld [vmem:[#allocation2 + $0x4c] sm:$0x8]  ;;  %v2783_v39 = vshll.u32 %v6370_v49, 16 }
 0x1b6   : > { %5346 = vst [vmem:[#allocation2 + $0x90] sm:$0xff] %v6327_v26   ;;  %v1652_v25 = vrot.slane %v1650_v22, 1  ;;  %v6375_v41 = vor.u32 %v5472_v58, %v5414_v59  ;;  %v2780_v22 = vshrl.u32 %v6370_v49, 16 }
 0x1b7   : > { %v1127_v33 = vpop.f32.mrf.mxu2 }
 0x1b8   : > { %v1128_v13 = vadd.f32 %v1127_v33, %v993_v61  ;;  %v580_v8 = vpop.f32.mrf.mxu0  ;;  %1467 = vmatmul.bf16.gmra.mxu1 %v5064_v21  ;;  %v6359_v61 = vpop.f32.mrf.mxu3  ;;  %v2034_v33 = vunpack.c.l.b16 %v1979_v57  ;;  %v2782_v59 = vrot.slane %v2780_v22, 3  ;;  %v1654_v22 = vshrl.u32 %v6311_v10, 16 }
 0x1ba   : > { %v6356_v54 = vadd.f32 %v6287_v40, %v1128_v13  ;;  %v5504_v40 = vld [vmem:[%s7058_s2 + $0xb0] sm:$0xff]  ;;  %v619_v13 = vmax.f32 %v580_v8, 0.0  ;;  %v2044_v8 = vpack.c.b16 %v2034_v33, %v2034_v33  ;;  %v5065_v33 = vld [vmem:[#allocation2 + $0x48] sm:$0xff] }
 0x1bb   : > { %2164 = vmatmul.bf16.gmra.mxu0 %v2061_v43  ;;  %3027 = vmatpush.bf16.msrb.mxu1 %v5504_v40  ;;  %v1646_v43 = vshrl.u32 %v6265_v23, 16  ;;  %v5505_v40 = vld [vmem:[%s7058_s2 + $0xe0] sm:$0xff]  ;;  %v5506_v23 = vld [vmem:[%s7058_s2 + $0xa8] sm:$0xff] }
 0x1bc   : > { %7088 = vst [vmem:[#allocation17_spill] sm:$0xff] %v6356_v54  ;;  %3173 = vmatpush.bf16.msrb.mxu2 %v5505_v40  ;;  %v2785_v40 = vrot.slane %v2783_v39, 4  ;;  %v1658_v39 = vshll.u32 %v6343_v48, 16 }
 0x1bd   : > { %v995_v21 = vpop.f32.mrf.mxu1  ;;  %1937 = vmatmul.bf16.gmra.mxu3 %v1831_v7  ;;  %v1648_v57 = vor.u32 %v1646_v43, %v1644_v50 }
 0x1bf   : > { %v1129_v46 = vpop.f32.mrf.mxu2  ;;  %3028 = vmatpush.bf16.msrb.mxu1 %v5506_v23  ;;  %v1653_v7 = vsel %vm1585_vm5, %v1648_v57, %v1652_v25  ;;  %v5509_v23 = vld [vmem:[%s7058_s2 + $0xd0] sm:$0xff] }
 0x1c0   : > { %v1130_v42 = vadd.f32 %v1129_v46, %v995_v21  ;;  %v582_v54 = vpop.f32.mrf.mxu0  ;;  %v6384_v50 = vpop.f32.mrf.mxu3  ;;  %v5507_v21 = vld [vmem:[%s7058_s2 + $0xd8] sm:$0xff] }
 0x1c1   : > { %v620_v26 = vmax.f32 %v582_v54, 0.0  ;;  %3174 = vmatpush.bf16.msrb.mxu2 %v5507_v21 }
 0x1c2   : > { %v6381_v36 = vadd.f32 %v6314_v11, %v1130_v42  ;;  %v2062_v42 = vrot.slane %v2044_v8, 1  ;;  %v2775_v11 = vshll.u32 %v6375_v41, 16  ;;  %v7089_v8 = vrot.slane %v6260_v19, 1 }
 0x1c3   : > { %v5252_v54 = vpack.c.bf16 %v620_v26, %v619_v13  ;;  %v2772_v26 = vshrl.u32 %v6375_v41, 16  ;;  %v5508_v13 = vld [vmem:[%s7058_s2 + $0xa0] sm:$0xff] }
 0x1c4   : > { %1762 = vmatmul.bf16.gmra.mxu2 %v1653_v7  ;;  %3029 = vmatpush.bf16.msrb.mxu1 %v5508_v13  ;;  %v2777_v21 = vrot.slane %v2775_v11, 4  ;;  %v5510_v13 = vld [vmem:[%s7058_s2 + $0x98] sm:$0xff] }
 0x1c5   : > { %5347 = vst [vmem:[#allocation2 + $0x98] sm:$0xff] %v5252_v54   ;;  %v998_v58 = vpop.f32.mrf.mxu1  ;;  %3175 = vmatpush.bf16.msrb.mxu2 %v5509_v23  ;;  %v2063_v54 = vsel %vm1812_vm4, %v7089_v8, %v2062_v42  ;;  %v2774_v7 = vrot.slane %v2772_v26, 3  ;;  %v5511_v26 = vld [vmem:[%s7058_s2 + $0x90] sm:$0xff]  ;;  %v1656_v8 = vor.u32 %v1654_v22, %v1652_v25 }
 0x1c6   : > { %v5066_v22 = vld [vmem:[#allocation2 + $0x50] sm:$0xff] }
 0x1c7   : > { %v1132_v46 = vpop.f32.mrf.mxu2  ;;  %v2778_v42 = vor.u32 %v2777_v21, %v2774_v7 }
 0x1c8   : > { %v1133_v43 = vadd.f32 %v1132_v46, %v998_v58  ;;  %1472 = vmatmul.bf16.gmra.mxu1 %v5065_v33  ;;  %v2130_v57 = vpop.f32.mrf.mxu0  ;;  %v1900_v33 = vpop.f32.mrf.mxu3  ;;  %v2786_v46 = vor.u32 %v2785_v40, %v2782_v59 }
 0x1c9   : > { %3030 = vmatpush.bf16.msrb.mxu1 %v5510_v13  ;;  %3176 = vmatpush.bf16.msrb.mxu2 %v5928_v15  ;;  %v6415_v13 = vld [vmem:[#allocation2 + $0x5c] sm:$0xff]   ;;  %v5512_v15 = vld [vmem:[%s7058_s2 + $0x88] sm:$0xff] }
 0x1ca   : > { %v6406_v58 = vadd.f32 %v6331_v63, %v1133_v43  ;;  %v1660_v63 = vrot.slane %v1658_v39, 1  ;;  %v2787_v10 = vsel %vm802_vm1, %v2778_v42, %v2786_v46  ;;  %v2789_v40 = vshrl.u32 %v6415_v13, 16 }
 0x1cb   : > { %2169 = vmatmul.bf16.gmra.mxu0 %v2063_v54  ;;  %v2792_v7 = vshll.u32 %v6415_v13, 16  ;;  %v2927_v39 = vrot.slane %v6370_v49, 3 }
 0x1cc   : > { %v1661_v25 = vsel %vm1585_vm5, %v1656_v8, %v1660_v63 }
 0x1cd   : > { %v1000_v23 = vpop.f32.mrf.mxu1  ;;  %3031 = vmatpush.bf16.msrb.mxu1 %v5511_v26  ;;  %2877 = vmatmul.bf16.vlgmr.msra.gmra.mxu3 %v2787_v10  ;;  %v2926_v26 = vrot.slane %v6375_v41, 3  ;;  %v2794_v8 = vrot.slane %v2792_v7, 4 }
 0x1ce   : > { %3177 = vmatpush.bf16.msrb.mxu2 %v5986_v51  ;;  %3943 = vmatpush.bf16.msra.mxu3 %v6027_v37 }
 0x1cf   : > { %v1134_v11 = vpop.f32.mrf.mxu2  ;;  %v2928_v63 = vsel %vm1006_vm0, %v2926_v26, %v2927_v39  ;;  %v5515_v26 = vld [vmem:[%s7058_s2 + $0x1b0] sm:$0xff] }
 0x1d0   : > { %v1135_v43 = vadd.f32 %v1134_v11, %v1000_v23  ;;  %v2132_v54 = vpop.f32.mrf.mxu0  ;;  %v1903_v59 = vpop.f32.mrf.mxu3  ;;  %v2791_v11 = vrot.slane %v2789_v40, 3 }
 0x1d1   : > { %3032 = vmatpush.bf16.msrb.mxu1 %v5512_v15 }
 0x1d2   : > { %v6422_v48 = vadd.f32 %v6359_v61, %v1135_v43  ;;  %v5513_v61 = vld [vmem:[%s7058_s2 + $0x80] sm:$0xff]  ;;  %3944 = vmatpush.bf16.msra.mxu3 %v6081_v38  ;;  %v2795_v43 = vor.u32 %v2794_v8, %v2791_v11  ;;  %v6471_v8 = vld [vmem:[#allocation2 + $0x6c] sm:$0xff]  }
 0x1d4   : > { %1767 = vmatmul.bf16.gmra.mxu2 %v1661_v25  ;;  %v2796_v7 = vsel %vm802_vm1, %v2786_v46, %v2795_v43 }
 0x1d5   : > { %v1438_v21 = vpop.f32.mrf.mxu1  ;;  %3033 = vmatpush.bf16.msrb.mxu1 %v5513_v61 }
 0x1d6   : > { %v1483_v51 = vadd.f32 %v1438_v21, %v6092_v2  ;;  %3945 = vmatpush.bf16.msra.mxu3 %v6142_v18 }
 0x1d7   : > { %v1728_v37 = vpop.f32.mrf.mxu2 }
 0x1d8   : > { %v1773_v23 = vadd.f32 %v1728_v37, %v1483_v51  ;;  %1477 = vmatmul.bf16.gmra.mxu1 %v5066_v22  ;;  %v2135_v42 = vpop.f32.mrf.mxu0  ;;  %v1905_v49 = vpop.f32.mrf.mxu3  ;;  %v2929_v22 = vrot.slane %v6415_v13, 3 }
 0x1da   : > { %v1943_v2 = vadd.f32 %v6384_v50, %v1773_v23  ;;  %3946 = vmatpush.bf16.msra.mxu3 %v6179_v44  ;;  %v6443_v50 = vld [vmem:[#allocation2 + $0x64] sm:$0xff]  }
 0x1db   : > { %2962 = vmatmul.bf16.vlgmr.msra.gmra.mxu0 %v2928_v63 }
 0x1dc   : > { %v6438_v10 = vadd.f32 %v2130_v57, %v1943_v2  ;;  %v2798_v57 = vshrl.u32 %v6443_v50, 16 }
 0x1dd   : > { %v1440_v38 = vpop.f32.mrf.mxu1  ;;  %2882 = vmatmul.bf16.gmra.mxu3 %v2796_v7  ;;  %v5518_v7 = vld [vmem:[%s7058_s2 + $0x198] sm:$0xff] }
 0x1de   : > { %v1484_v15 = vadd.f32 %v1440_v38, %v6118_v17  ;;  %3947 = vmatpush.bf16.msra.mxu3 %v6212_v12  ;;  %v2801_v17 = vshll.u32 %v6443_v50, 16  ;;  %v5517_v38 = vld [vmem:[%s7058_s2 + $0x1a0] sm:$0xff] }
 0x1df   : > { %v1730_v25 = vpop.f32.mrf.mxu2 }
 0x1e0   : > { %v1774_v41 = vadd.f32 %v1730_v25, %v1484_v15  ;;  %v2137_v40 = vpop.f32.mrf.mxu0  ;;  %v1908_v18 = vpop.f32.mrf.mxu3  ;;  %v2803_v37 = vrot.slane %v2801_v17, 4 }
 0x1e2   : > { %v1944_v21 = vadd.f32 %v1900_v33, %v1774_v41  ;;  %3948 = vmatpush.bf16.msra.mxu3 %v6244_v16 }
 0x1e4   : > { %2539 = vmatmul.bf16.vlgmr.msra.gmra.mxu2 %v5828_v24  ;;  %v6449_v51 = vadd.f32 %v2132_v54, %v1944_v21  ;;  %v2800_v24 = vrot.slane %v2798_v57, 3  ;;  %v5514_v54 = vld [vmem:[%s7058_s2 + $0x1b8] sm:$0xff] }
 0x1e5   : > { %v1443_v44 = vpop.f32.mrf.mxu1  ;;  %3839 = vmatpush.bf16.msra.mxu2 %v6048_v31 }
 0x1e6   : > { %v1485_v46 = vadd.f32 %v1443_v44, %v6132_v60  ;;  %v2930_v60 = vsel %vm1006_vm0, %v2927_v39, %v2929_v22  ;;  %3949 = vmatpush.bf16.msra.mxu3 %v6298_v1  ;;  %v2804_v13 = vor.u32 %v2803_v37, %v2800_v24 }
 0x1e7   : > { %v1733_v33 = vpop.f32.mrf.mxu2 }
 0x1e8   : > { %v1775_v12 = vadd.f32 %v1733_v33, %v1485_v46  ;;  %v2140_v61 = vpop.f32.mrf.mxu0  ;;  %2369 = vmatmul.bf16.vlgmr.msra.gmra.mxu1 %v5835_v56  ;;  %v1910_v16 = vpop.f32.mrf.mxu3  ;;  %v2805_v11 = vsel %vm802_vm1, %v2795_v43, %v2804_v13  ;;  %v6502_v33 = vld [vmem:[#allocation2 + $0x74] sm:$0xff]  }
 0x1e9   : > { %3665 = vmatpush.bf16.msra.mxu1 %v5514_v54  ;;  %3840 = vmatpush.bf16.msra.mxu2 %v6107_v32 }
 0x1ea   : > { %v1945_v31 = vadd.f32 %v1903_v59, %v1775_v12  ;;  %3950 = vmatpush.bf16.msra.mxu3 %v6325_v62  ;;  %v2810_v62 = vshll.u32 %v6471_v8, 16  ;;  %v5520_v12 = vld [vmem:[%s7058_s2 + $0x188] sm:$0xff] }
 0x1eb   : > { %2967 = vmatmul.bf16.gmra.mxu0 %v2930_v60 }
 0x1ec   : > { %v6462_v23 = vadd.f32 %v2135_v42, %v1945_v31  ;;  %v5516_v42 = vld [vmem:[%s7058_s2 + $0x1a8] sm:$0xff]  ;;  %v5521_v31 = vld [vmem:[%s7058_s2 + $0x180] sm:$0xff] }
 0x1ed   : > { %v1445_v56 = vpop.f32.mrf.mxu1  ;;  %3666 = vmatpush.bf16.msra.mxu1 %v5515_v26  ;;  %3841 = vmatpush.bf16.msra.mxu2 %v6151_v4 }
 0x1ee   : > { %v1486_v32 = vadd.f32 %v1445_v56, %v6159_v35  ;;  %2887 = vmatmul.bf16.gmra.mxu3 %v2805_v11  ;;  %v2807_v35 = vshrl.u32 %v6471_v8, 16 }
 0x1ef   : > { %v1735_v59 = vpop.f32.mrf.mxu2 }
 0x1f0   : > { %v1776_v39 = vadd.f32 %v1735_v59, %v1486_v32  ;;  %v2142_v1 = vpop.f32.mrf.mxu0  ;;  %v1913_v4 = vpop.f32.mrf.mxu3  ;;  %v2809_v41 = vrot.slane %v2807_v35, 3 }
 0x1f1   : > { %3667 = vmatpush.bf16.msra.mxu1 %v5516_v42  ;;  %3842 = vmatpush.bf16.msra.mxu2 %v6188_v3 }
 0x1f2   : > { %v1946_v2 = vadd.f32 %v1905_v49, %v1776_v39  ;;  %v2931_v49 = vrot.slane %v6443_v50, 3 }
 0x1f4   : > { %2544 = vmatmul.bf16.gmra.mxu2 %v5857_v14  ;;  %v6480_v63 = vadd.f32 %v2137_v40, %v1946_v2  ;;  %v2812_v40 = vrot.slane %v2810_v62, 4  ;;  %v2932_v57 = vsel %vm1006_vm0, %v2929_v22, %v2931_v49 }
 0x1f5   : > { %v1448_v43 = vpop.f32.mrf.mxu1  ;;  %3668 = vmatpush.bf16.msra.mxu1 %v5517_v38  ;;  %3843 = vmatpush.bf16.msra.mxu2 %v6227_v6  ;;  %v6524_v38 = vld [vmem:[#allocation2 + $0x7c] sm:$0xff]  }
 0x1f6   : > { %v1487_v15 = vadd.f32 %v1448_v43, %v6169_v53  ;;  %v2813_v6 = vor.u32 %v2812_v40, %v2809_v41  ;;  %v2935_v40 = vrot.slane %v6502_v33, 3 }
 0x1f7   : > { %v1738_v3 = vpop.f32.mrf.mxu2 }
 0x1f8   : > { %v1777_v14 = vadd.f32 %v1738_v3, %v1487_v15  ;;  %v2145_v25 = vpop.f32.mrf.mxu0  ;;  %2374 = vmatmul.bf16.gmra.mxu1 %v5867_v47  ;;  %v1915_v53 = vpop.f32.mrf.mxu3  ;;  %v5519_v47 = vld [vmem:[%s7058_s2 + $0x190] sm:$0xff]  ;;  %v7091_v3 = vld [vmem:[#allocation4_spill] sm:$0xff] }
 0x1f9   : > { %3669 = vmatpush.bf16.msra.mxu1 %v5518_v7  ;;  %3844 = vmatpush.bf16.msra.mxu2 %v6256_v5  ;;  %v2814_v5 = vsel %vm802_vm1, %v2804_v13, %v2813_v6 }
 0x1fa   : > { %v1947_v21 = vadd.f32 %v1908_v18, %v1777_v14  ;;  %v2828_v14 = vshll.u32 %v6524_v38, 16 }
 0x1fb   : > { %2972 = vmatmul.bf16.gmra.mxu0 %v2932_v57 }
 0x1fc   : > { %v6494_v50 = vadd.f32 %v2140_v61, %v1947_v21 }
 0x1fd   : > { %v1450_v17 = vpop.f32.mrf.mxu1  ;;  %3670 = vmatpush.bf16.msra.mxu1 %v5519_v47  ;;  %3845 = vmatpush.bf16.msra.mxu2 %v6303_v0  ;;  %v2819_v0 = vshll.u32 %v6502_v33, 16 }
 0x1fe   : > { %v1488_v44 = vadd.f32 %v1450_v17, %v6193_v55  ;;  %2892 = vmatmul.bf16.gmra.mxu3 %v2814_v5  ;;  %v2816_v55 = vshrl.u32 %v6502_v33, 16  ;;  %v2830_v17 = vrot.slane %v2828_v14, 4 }
 0x1ff   : > { %v1740_v18 = vpop.f32.mrf.mxu2  ;;  %v2821_v32 = vrot.slane %v2819_v0, 4  ;;  %v6539_v0 = vld [vmem:[#allocation2 + $0x84] sm:$0xff]  }
 0x200   : > { %v1778_v46 = vadd.f32 %v1740_v18, %v1488_v44  ;;  %v2147_v22 = vpop.f32.mrf.mxu0  ;;  %v1918_v24 = vpop.f32.mrf.mxu3  ;;  %v2818_v26 = vrot.slane %v2816_v55, 3 }
 0x201   : > { %3671 = vmatpush.bf16.msra.mxu1 %v5520_v12  ;;  %3846 = vmatpush.bf16.msra.mxu2 %v6341_v34 }
 0x202   : > { %v1948_v61 = vadd.f32 %v1910_v16, %v1778_v46  ;;  %v2933_v16 = vrot.slane %v6471_v8, 3  ;;  %v2822_v11 = vor.u32 %v2821_v32, %v2818_v26  ;;  %v7093_v32 = vld [vmem:[#allocation6_spill] sm:$0xff] }
 0x204   : > { %2549 = vmatmul.bf16.gmra.mxu2 %v5880_v9  ;;  %v6511_v37 = vadd.f32 %v2142_v1, %v1948_v61  ;;  %v7090_v9 = vld [vmem:[#allocation3_spill] sm:$0xff]  ;;  %v2934_v39 = vsel %vm1006_vm0, %v2931_v49, %v2933_v16  ;;  %v2823_v43 = vsel %vm802_vm1, %v2813_v6, %v2822_v11  ;;  %v2825_v49 = vshrl.u32 %v6524_v38, 16  ;;  %v7092_v6 = vld [vmem:[#allocation5_spill] sm:$0xff] }
 0x205   : > { %v1453_v54 = vpop.f32.mrf.mxu1  ;;  %3672 = vmatpush.bf16.msra.mxu1 %v5521_v31  ;;  %v2936_v44 = vsel %vm1006_vm0, %v2933_v16, %v2935_v40  ;;  %v2834_v31 = vshrl.u32 %v6539_v0, 16 }
 0x206   : > { %v1489_v60 = vadd.f32 %v1453_v54, %v6201_v28 }
 0x207   : > { %v1743_v34 = vpop.f32.mrf.mxu2 }
 0x208   : > { %v1779_v13 = vadd.f32 %v1743_v34, %v1489_v60  ;;  %v2150_v56 = vpop.f32.mrf.mxu0  ;;  %2379 = vmatmul.bf16.gmra.mxu1 %v7090_v9  ;;  %v1920_v1 = vpop.f32.mrf.mxu3  ;;  %v2837_v60 = vshll.u32 %v6539_v0, 16 }
 0x20a   : > { %v1949_v59 = vadd.f32 %v1913_v4, %v1779_v13  ;;  %v2937_v13 = vrot.slane %v6524_v38, 3 }
 0x20b   : > { %2977 = vmatmul.bf16.gmra.mxu0 %v2934_v39  ;;  %v2839_v39 = vrot.slane %v2837_v60, 4 }
 0x20c   : > { %v6520_v42 = vadd.f32 %v2145_v25, %v1949_v59  ;;  %v2836_v59 = vrot.slane %v2834_v31, 3 }
 0x20d   : > { %v1455_v2 = vpop.f32.mrf.mxu1 }
 0x20e   : > { %v1490_v28 = vadd.f32 %v1455_v2, %v6218_v30  ;;  %2897 = vmatmul.bf16.gmra.mxu3 %v2823_v43  ;;  %v2840_v2 = vor.u32 %v2839_v39, %v2836_v59 }
 0x20f   : > { %v1745_v35 = vpop.f32.mrf.mxu2 }
 0x210   : > { %v1780_v8 = vadd.f32 %v1745_v35, %v1490_v28  ;;  %v2152_v62 = vpop.f32.mrf.mxu0  ;;  %v1923_v4 = vpop.f32.mrf.mxu3 }
 0x212   : > { %v1950_v15 = vadd.f32 %v1915_v53, %v1780_v8  ;;  %v2827_v53 = vrot.slane %v2825_v49, 3  ;;  %v7094_v49 = vld [vmem:[#allocation7_spill] sm:$0xff] }
 0x214   : > { %2554 = vmatmul.bf16.gmra.mxu2 %v7091_v3  ;;  %v6529_v25 = vadd.f32 %v2147_v22, %v1950_v15  ;;  %v2831_v46 = vor.u32 %v2830_v17, %v2827_v53  ;;  %v6554_v15 = vld [vmem:[#allocation2 + $0x8c] sm:$0xff]   ;;  %v7096_v17 = vld [vmem:[#allocation8_spill] sm:$0xff] }
 0x215   : > { %v1458_v41 = vpop.f32.mrf.mxu1  ;;  %v2843_v14 = vshrl.u32 %v6554_v15, 16 }
 0x216   : > { %v1491_v30 = vadd.f32 %v1458_v41, %v6232_v27  ;;  %v2832_v55 = vsel %vm802_vm1, %v2822_v11, %v2831_v46  ;;  %v2841_v38 = vsel %vm802_vm1, %v2831_v46, %v2840_v2  ;;  %v2846_v41 = vshll.u32 %v6554_v15, 16 }
 0x217   : > { %v1748_v7 = vpop.f32.mrf.mxu2 }
 0x218   : > { %v1781_v21 = vadd.f32 %v1748_v7, %v1491_v30  ;;  %v2155_v57 = vpop.f32.mrf.mxu0  ;;  %2384 = vmatmul.bf16.gmra.mxu1 %v7092_v6  ;;  %v1925_v18 = vpop.f32.mrf.mxu3 }
 0x21a   : > { %v1951_v47 = vadd.f32 %v1918_v24, %v1781_v21  ;;  %v2939_v21 = vrot.slane %v6539_v0, 3 }
 0x21b   : > { %2982 = vmatmul.bf16.gmra.mxu0 %v2936_v44  ;;  %v2848_v44 = vrot.slane %v2846_v41, 4 }
 0x21c   : > { %v6535_v22 = vadd.f32 %v2150_v56, %v1951_v47  ;;  %v2845_v47 = vrot.slane %v2843_v14, 3  ;;  %v2940_v46 = vsel %vm1006_vm0, %v2937_v13, %v2939_v21  ;;  %v2721_v14 = vld [vmem:[#allocation2 + $0x94] sm:$0x7] }
 0x21d   : > { %v1460_v5 = vpop.f32.mrf.mxu1 }
 0x21e   : > { %v1492_v27 = vadd.f32 %v1460_v5, %v6249_v20  ;;  %2902 = vmatmul.bf16.gmra.mxu3 %v2832_v55 }
 0x21f   : > { %v1750_v12 = vpop.f32.mrf.mxu2 }
 0x220   : > { %v1782_v33 = vadd.f32 %v1750_v12, %v1492_v27  ;;  %v2157_v61 = vpop.f32.mrf.mxu0  ;;  %v1928_v24 = vpop.f32.mrf.mxu3  ;;  %v2849_v27 = vor.u32 %v2848_v44, %v2845_v47  ;;  %v7097_v12 = vld [vmem:[#allocation16_spill] sm:$0xff]  ;;  %v2193_v44 = vld [vmem:[#allocation2 + $0x60] sm:$0x3] }
 0x222   : > { %v1952_v54 = vadd.f32 %v1920_v1, %v1782_v33  ;;  %v5325_v33 = vunpack.c.h.b16 %v7097_v12  ;;  %v7102_v12 = vld [vmem:[#allocation11_spill] sm:$0xff] }
 0x224   : > { %2559 = vmatmul.bf16.gmra.mxu2 %v5964_v45  ;;  %v6544_v16 = vadd.f32 %v2152_v62, %v1952_v54  ;;  %v2938_v45 = vsel %vm1006_vm0, %v2935_v40, %v2937_v13  ;;  %v7098_v54 = vld [vmem:[#allocation15_spill] sm:$0xff]  ;;  %v7099_v13 = vld [vmem:[#allocation9_spill] sm:$0xff] }
 0x225   : > { %v1463_v34 = vpop.f32.mrf.mxu1 }
 0x226   : > { %v1493_v20 = vadd.f32 %v1463_v34, %v6263_v52 }
 0x227   : > { %v1753_v56 = vpop.f32.mrf.mxu2 }
 0x228   : > { %v1783_v9 = vadd.f32 %v1753_v56, %v1493_v20  ;;  %v2160_v26 = vpop.f32.mrf.mxu0  ;;  %2389 = vmatmul.bf16.gmra.mxu1 %v7093_v32  ;;  %v1930_v11 = vpop.f32.mrf.mxu3  ;;  %v2850_v20 = vsel %vm802_vm1, %v2840_v2, %v2849_v27  ;;  %v2770_v56 = vpack.c.b16 %v5325_v33, %v5325_v33  ;;  %v6584_v33 = vld [vmem:[#allocation2 + $0x60] sm:$0xff] }
 0x22a   : > { %v1953_v1 = vadd.f32 %v1923_v4, %v1783_v9  ;;  %v2852_v32 = vshrl.u32 %v2770_v56, 16  ;;  %v2855_v59 = vshll.u32 %v2770_v56, 16  ;;  %v7103_v56 = vld [vmem:[#allocation13_spill] sm:$0xff] }
 0x22b   : > { %2987 = vmatmul.bf16.gmra.mxu0 %v2938_v45 }
 0x22c   : > { %v6550_v28 = vadd.f32 %v2155_v57, %v1953_v1  ;;  %v7100_v1 = vld [vmem:[#allocation17_spill] sm:$0xff]  ;;  %v2854_v2 = vrot.slane %v2852_v32, 3  ;;  %v3317_v32 = vshll.u32 %v6584_v33, 16 }
 0x22d   : > { %v1465_v35 = vpop.f32.mrf.mxu1 }
 0x22e   : > { %v1494_v52 = vadd.f32 %v1465_v35, %v6282_v29  ;;  %2907 = vmatmul.bf16.gmra.mxu3 %v2841_v38  ;;  %v7095_v29 = vld [vmem:[#allocation14_spill] sm:$0xff]  ;;  %v2941_v35 = vrot.slane %v6554_v15, 3  ;;  %v2924_v15 = vunpack.c.l.b16 %v2721_v14 }
 0x22f   : > { %v1755_v8 = vpop.f32.mrf.mxu2  ;;  %v7101_v38 = vld [vmem:[#allocation10_spill] sm:$0xff] }
 0x230   : > { %v1784_v62 = vadd.f32 %v1755_v8, %v1494_v52  ;;  %v2162_v43 = vpop.f32.mrf.mxu0  ;;  %v1933_v4 = vpop.f32.mrf.mxu3 }
 0x232   : > { %v1954_v3 = vadd.f32 %v1925_v18, %v1784_v62 }
 0x234   : > { %2564 = vmatmul.bf16.gmra.mxu2 %v7094_v49  ;;  %v6559_v30 = vadd.f32 %v2157_v61, %v1954_v3  ;;  %v2857_v3 = vrot.slane %v2855_v59, 4  ;;  %v2942_v49 = vsel %vm1006_vm0, %v2939_v21, %v2941_v35 }
 0x235   : > { %v1468_v40 = vpop.f32.mrf.mxu1 }
 0x236   : > { %v1495_v7 = vadd.f32 %v1468_v40, %v7095_v29 }
 0x237   : > { %v1758_v57 = vpop.f32.mrf.mxu2 }
 0x238   : > { %v1785_v6 = vadd.f32 %v1758_v57, %v1495_v7  ;;  %v2165_v53 = vpop.f32.mrf.mxu0  ;;  %2394 = vmatmul.bf16.gmra.mxu1 %v7096_v17  ;;  %v1935_v5 = vpop.f32.mrf.mxu3 }
 0x23a   : > { %v1955_v18 = vadd.f32 %v1928_v24, %v1785_v6 }
 0x23b   : > { %2992 = vmatmul.bf16.gmra.mxu0 %v2940_v46  ;;  %v2212_v46 = vunpack.c.l.b16 %v2193_v44 }
 0x23c   : > { %v6566_v61 = vadd.f32 %v2160_v26, %v1955_v18  ;;  %v2925_v18 = vpack.c.b16 %v2924_v15, %v2924_v15 }
 0x23d   : > { %v1470_v55 = vpop.f32.mrf.mxu1 }
 0x23e   : > { %v1496_v0 = vadd.f32 %v1470_v55, %v7098_v54  ;;  %2912 = vmatmul.bf16.gmra.mxu3 %v2850_v20 }
 0x23f   : > { %v1760_v31 = vpop.f32.mrf.mxu2 }
 0x240   : > { %v1786_v60 = vadd.f32 %v1760_v31, %v1496_v0  ;;  %v2167_v34 = vpop.f32.mrf.mxu0  ;;  %v1938_v9 = vpop.f32.mrf.mxu3 }
 0x242   : > { %v1956_v24 = vadd.f32 %v1930_v11, %v1786_v60  ;;  %v2213_v60 = vpack.c.b16 %v2212_v46, %v2212_v46 }
 0x244   : > { %2569 = vmatmul.bf16.gmra.mxu2 %v7099_v13  ;;  %v6571_v39 = vadd.f32 %v2162_v43, %v1956_v24  ;;  %v2858_v43 = vor.u32 %v2857_v3, %v2854_v2  ;;  %v2472_v14 = vrot.slane %v2213_v60, 2 }
 0x245   : > { %v1473_v26 = vpop.f32.mrf.mxu1 }
 0x246   : > { %v1497_v45 = vadd.f32 %v1473_v26, %v7100_v1  ;;  %v2859_v47 = vsel %vm802_vm1, %v2849_v27, %v2858_v43  ;;  %v2943_v27 = vrot.slane %v2925_v18, 3  ;;  %v2296_v1 = vshrl.u32 %v2213_v60, 16  ;;  %v6605_v18 = vld [vmem:[#allocation2 + $0x68] sm:$0xff] }
 0x247   : > { %v1763_v52 = vpop.f32.mrf.mxu2 }
 0x248   : > { %v1787_v8 = vadd.f32 %v1763_v52, %v1497_v45  ;;  %v2170_v62 = vpop.f32.mrf.mxu0  ;;  %2399 = vmatmul.bf16.gmra.mxu1 %v7101_v38  ;;  %v1940_v41 = vpop.f32.mrf.mxu3  ;;  %v2298_v43 = vrot.slane %v2296_v1, 1 }
 0x24a   : > { %v1957_v11 = vadd.f32 %v1933_v4, %v1787_v8  ;;  %v6581_v4 = vld [vmem:[#allocation2 + $0x58] sm:$0xff]   ;;  %v3319_v8 = vrot.slane %v3317_v32, 1 }
 0x24b   : > { %2997 = vmatmul.bf16.gmra.mxu0 %v2942_v49  ;;  %v3310_v24 = vshrl.u32 %v6581_v4, 16 }
 0x24c   : > { %v6577_v40 = vadd.f32 %v2165_v53, %v1957_v11  ;;  %v5370_v11 = vld [vmem:[#allocation2 + $0x58] sm:$0xf0] }
 0x24d   : > { %v1475_v29 = vpop.f32.mrf.mxu1 }
 0x24e   : > { %v1498_v7 = vadd.f32 %v1475_v29, %v6381_v36  ;;  %2917 = vmatmul.bf16.gmra.mxu3 %v2859_v47  ;;  %v3312_v36 = vshll.u32 %v6581_v4, 16 }
 0x24f   : > { %v1765_v57 = vpop.f32.mrf.mxu2 }
 0x250   : > { %v1788_v6 = vadd.f32 %v1765_v57, %v1498_v7  ;;  %v2172_v17 = vpop.f32.mrf.mxu0  ;;  %v2878_v53 = vpop.f32.mrf.mxu3  ;;  %v3314_v13 = vrot.slane %v3312_v36, 1  ;;  %v5371_v7 = vld [vmem:[#allocation2 + $0x58] sm:$0xe] }
 0x251   : > { %v5372_v47 = vor.u32 %v5371_v7, %v5370_v11  ;;  %v5131_v11 = vld [vmem:[#allocation2 + $0x58] sm:$0xff] }
 0x252   : > { %v1958_v21 = vadd.f32 %v1935_v5, %v1788_v6  ;;  %v3315_v52 = vor.u32 %v3314_v13, %v3310_v24 }
 0x253   : > { %v3470_v36 = vrot.slane %v5372_v47, 1  ;;  %v5360_v47 = vld [vmem:[#allocation2 + $0x50] sm:$0xff]  }
 0x254   : > { %2574 = vmatmul.bf16.gmra.mxu2 %v7102_v12  ;;  %v6587_v55 = vadd.f32 %v2167_v34, %v1958_v21  ;;  %v2944_v34 = vsel %vm1006_vm0, %v2941_v35, %v2943_v27  ;;  %v3320_v35 = vsel %vm1585_vm5, %v3315_v52, %v3319_v8 }
 0x255   : > { %v1478_v54 = vpop.f32.mrf.mxu1 }
 0x256   : > { %v1499_v0 = vadd.f32 %v1478_v54, %v6406_v58  ;;  %v2299_v58 = vshll.u32 %v2213_v60, 16  ;;  %v3471_v54 = vrot.slane %v6584_v33, 1  ;;  %v3321_v60 = vshrl.u32 %v6584_v33, 16 }
 0x257   : > { %v1768_v31 = vpop.f32.mrf.mxu2 }
 0x258   : > { %v1789_v20 = vadd.f32 %v1768_v31, %v1499_v0  ;;  %2404 = vmatmul.bf16.gmra.mxu1 %v7103_v56  ;;  %v2963_v5 = vpop.f32.mrf.mxu0  ;;  %v2880_v45 = vpop.f32.mrf.mxu3  ;;  %v2301_v29 = vrot.slane %v2299_v58, 2  ;;  %v3323_v24 = vor.u32 %v3321_v60, %v3319_v8  ;;  %v2643_v8 = vld [vmem:[%s7062_s6] sm:$0xff] }
 0x259   : > { %v6593_v59 = vadd.f32 %v2963_v5, %v2878_v53 }
 0x25a   : > { %v1959_v26 = vadd.f32 %v1938_v9, %v1789_v20  ;;  %v3325_v20 = vshll.u32 %v6605_v18, 16 }
 0x25b   : > { %3002 = vmatmul.bf16.gmra.mxu0 %v2944_v34 }
 0x25c   : > { %v6596_v38 = vadd.f32 %v2170_v62, %v1959_v26  ;;  %v7104_v62 = vrot.slane %v6260_v19, 2  ;;  %v3327_v13 = vrot.slane %v3325_v20, 1 }
 0x25d   : > { %v1480_v2 = vpop.f32.mrf.mxu1 }
 0x25e   : > { %v1500_v3 = vadd.f32 %v1480_v2, %v6422_v48  ;;  %3402 = vmatmul.bf16.vlgmr.msrb.gmra.mxu3 %v3320_v35  ;;  %v2473_v44 = vsel %vm2454_vm2, %v7104_v62, %v2472_v14  ;;  %v2302_v48 = vor.u32 %v2301_v29, %v2298_v43  ;;  %v6635_v43 = vld [vmem:[#allocation2 + $0x70] sm:$0xff]  ;;  %v3473_v35 = vrot.slane %v6605_v18, 1 }
 0x25f   : > { %v1770_v49 = vpop.f32.mrf.mxu2 }
 0x260   : > { %v1790_v9 = vadd.f32 %v1770_v49, %v1500_v3  ;;  %v2965_v15 = vpop.f32.mrf.mxu0  ;;  %v2883_v21 = vpop.f32.mrf.mxu3 }
 0x261   : > { %v6600_v57 = vadd.f32 %v2965_v15, %v2880_v45  ;;  %v3328_v45 = vsel %vm1585_vm5, %v3323_v24, %v3327_v13 }
 0x262   : > { %v1960_v6 = vadd.f32 %v1940_v41, %v1790_v9  ;;  %v7105_v41 = vld [vmem:[#allocation12_spill] sm:$0xff] }
 0x263   : > { %v2303_v27 = vsel %vm2214_vm3, %v7105_v41, %v2302_v48 }
 0x264   : > { %2579 = vmatmul.bf16.gmra.mxu2 %v2473_v44  ;;  %v6607_v46 = vadd.f32 %v2172_v17, %v1960_v6  ;;  %v3472_v17 = vsel %vm1812_vm4, %v3470_v36, %v3471_v54 }
 0x265   : > { %v2370_v12 = vpop.f32.mrf.mxu1 }
 0x266   : > { %v2415_v53 = vadd.f32 %v2370_v12, %v6438_v10  ;;  %v6620_v10 = vld [vmem:[%s7059_s3] ss:$0 sm:$0xff]  ;;  %v3333_v12 = vshll.u32 %v6635_v43, 16 }
 0x267   : > { %v2540_v0 = vpop.f32.mrf.mxu2 }
 0x268   : > { %v2585_v19 = vadd.f32 %v2540_v0, %v2415_v53  ;;  %2409 = vmatmul.bf16.gmra.mxu1 %v2303_v27  ;;  %v2968_v31 = vpop.f32.mrf.mxu0  ;;  %v2885_v5 = vpop.f32.mrf.mxu3  ;;  %v3474_v0 = vsel %vm1812_vm4, %v3471_v54, %v3473_v35 }
 0x269   : > { %v6615_v56 = vadd.f32 %v2968_v31, %v2883_v21  ;;  %v3329_v21 = vshrl.u32 %v6605_v18, 16  ;;  %v3335_v31 = vrot.slane %v3333_v12, 1 }
 0x26a   : > { %v2607_v26 = vadd.f32 %v6620_v10, %v2585_v19 }
 0x26b   : > { %3506 = vmatmul.bf16.vlgmr.msrb.gmra.mxu0 %v3472_v17  ;;  %v3331_v19 = vor.u32 %v3329_v21, %v3327_v13  ;;  %v2646_v13 = vld [vmem:[%s7062_s6 + $0x18] sm:$0xff] }
 0x26c   : > { %v2625_v2 = vmax.f32 %v2607_v26, 0.0 }
 0x26d   : > { %v2372_v32 = vpop.f32.mrf.mxu1  ;;  %v3336_v26 = vsel %vm1585_vm5, %v3331_v19, %v3335_v31  ;;  %v5133_v19 = vld [vmem:[#allocation2 + $0x68] sm:$0xff] }
 0x26e   : > { %v2416_v33 = vadd.f32 %v2372_v32, %v6449_v51  ;;  %3407 = vmatmul.bf16.gmra.mxu3 %v3328_v45  ;;  %v2644_v51 = vld [vmem:[%s7062_s6 + $0x8] sm:$0xff]  ;;  %v2661_v7 = vmul.f32 %v2643_v8, %v2625_v2 }
 0x26f   : > { %v2542_v34 = vpop.f32.mrf.mxu2 }
 0x270   : > { %v2586_v1 = vadd.f32 %v2542_v34, %v2416_v33  ;;  %v2970_v58 = vpop.f32.mrf.mxu0  ;;  %v5132_v34 = vld [vmem:[#allocation2 + $0x60] sm:$0xff] }
 0x271   : > { %v6626_v52 = vadd.f32 %v2970_v58, %v2885_v5  ;;  %v2888_v14 = vpop.f32.mrf.mxu3 }
 0x272   : > { %v2608_v3 = vadd.f32 %v6620_v10, %v2586_v1 }
 0x274   : > { %v2626_v49 = vmax.f32 %v2608_v3, 0.0  ;;  %3178 = vmatmul.bf16.vlgmr.msrb.gmra.mxu2 %v5131_v11  ;;  %v3475_v11 = vrot.slane %v6635_v43, 1 }
 0x275   : > { %v2375_v29 = vpop.f32.mrf.mxu1 }
 0x276   : > { %v2662_v9 = vmul.f32 %v2644_v51, %v2626_v49  ;;  %v2417_v15 = vadd.f32 %v2375_v29, %v6462_v23  ;;  %v2645_v23 = vld [vmem:[%s7062_s6 + $0x10] sm:$0xff]  ;;  %v3337_v29 = vshrl.u32 %v6635_v43, 16 }
 0x277   : > { %v2545_v6 = vpop.f32.mrf.mxu2 }
 0x278   : > { %v2679_v62 = vadd.f32 %v2662_v9, %v2661_v7  ;;  %v2587_v44 = vadd.f32 %v2545_v6, %v2417_v15  ;;  %v2973_v48 = vpop.f32.mrf.mxu0  ;;  %3034 = vmatmul.bf16.vlgmr.msrb.gmra.mxu1 %v5360_v47  ;;  %v3476_v6 = vsel %vm1812_vm4, %v3473_v35, %v3475_v11 }
 0x279   : > { %v6641_v53 = vadd.f32 %v2973_v48, %v2888_v14  ;;  %v2890_v27 = vpop.f32.mrf.mxu3 }
 0x27a   : > { %v2609_v36 = vadd.f32 %v6620_v10, %v2587_v44  ;;  %v3339_v44 = vor.u32 %v3337_v29, %v3335_v31  ;;  %v2648_v31 = vld [vmem:[%s7062_s6 + $0x28] sm:$0xff] }
 0x27b   : > { %3511 = vmatmul.bf16.gmra.mxu0 %v3474_v0 }
 0x27c   : > { %v2627_v41 = vmax.f32 %v2609_v36, 0.0 }
 0x27d   : > { %v2377_v60 = vpop.f32.mrf.mxu1 }
 0x27e   : > { %v2663_v20 = vmul.f32 %v2645_v23, %v2627_v41  ;;  %v2418_v18 = vadd.f32 %v2377_v60, %v6480_v63  ;;  %3412 = vmatmul.bf16.gmra.mxu3 %v3336_v26  ;;  %v6656_v63 = vld [vmem:[#allocation2 + $0x78] sm:$0xff]  ;;  %v5362_v26 = vld [vmem:[#allocation2 + $0x60] sm:$0xff]  }
 0x27f   : > { %v2547_v17 = vpop.f32.mrf.mxu2  ;;  %v3341_v7 = vshll.u32 %v6656_v63, 16 }
 0x280   : > { %v2680_v5 = vadd.f32 %v2679_v62, %v2663_v20  ;;  %v2588_v24 = vadd.f32 %v2547_v17, %v2418_v18  ;;  %v2975_v32 = vpop.f32.mrf.mxu0 }
 0x281   : > { %v6650_v54 = vadd.f32 %v2975_v32, %v2890_v27  ;;  %v2893_v58 = vpop.f32.mrf.mxu3  ;;  %v3343_v48 = vrot.slane %v3341_v7, 1 }
 0x282   : > { %v2610_v33 = vadd.f32 %v6620_v10, %v2588_v24  ;;  %v3477_v24 = vrot.slane %v6656_v63, 1 }
 0x283   : > { %v3344_v41 = vsel %vm1585_vm5, %v3339_v44, %v3343_v48 }
 0x284   : > { %v2628_v1 = vmax.f32 %v2610_v33, 0.0  ;;  %3183 = vmatmul.bf16.gmra.mxu2 %v5132_v34 }
 0x285   : > { %v2380_v45 = vpop.f32.mrf.mxu1 }
 0x286   : > { %v2664_v2 = vmul.f32 %v2646_v13, %v2628_v1  ;;  %v2419_v3 = vadd.f32 %v2380_v45, %v6494_v50  ;;  %v2647_v50 = vld [vmem:[%s7062_s6 + $0x20] sm:$0xff]  ;;  %v3345_v1 = vshrl.u32 %v6656_v63, 16 }
 0x287   : > { %v2550_v8 = vpop.f32.mrf.mxu2 }
 0x288   : > { %v2681_v51 = vadd.f32 %v2680_v5, %v2664_v2  ;;  %v2589_v49 = vadd.f32 %v2550_v8, %v2419_v3  ;;  %v2978_v14 = vpop.f32.mrf.mxu0  ;;  %3039 = vmatmul.bf16.gmra.mxu1 %v6581_v4  ;;  %v3478_v3 = vsel %vm1812_vm4, %v3475_v11, %v3477_v24 }
 0x289   : > { %v6663_v9 = vadd.f32 %v2978_v14, %v2893_v58  ;;  %v2895_v62 = vpop.f32.mrf.mxu3 }
 0x28a   : > { %v2611_v15 = vadd.f32 %v6620_v10, %v2589_v49  ;;  %v3347_v49 = vor.u32 %v3345_v1, %v3343_v48  ;;  %v2650_v48 = vld [vmem:[%s7062_s6 + $0x38] sm:$0xff] }
 0x28b   : > { %3516 = vmatmul.bf16.gmra.mxu0 %v3476_v6 }
 0x28c   : > { %v2629_v47 = vmax.f32 %v2611_v15, 0.0 }
 0x28d   : > { %v2382_v4 = vpop.f32.mrf.mxu1 }
 0x28e   : > { %v2665_v21 = vmul.f32 %v2647_v50, %v2629_v47  ;;  %v2420_v43 = vadd.f32 %v2382_v4, %v6511_v37  ;;  %3417 = vmatmul.bf16.gmra.mxu3 %v3344_v41  ;;  %v6678_v37 = vld [vmem:[#allocation2 + $0x80] sm:$0xff]  ;;  %v5134_v4 = vld [vmem:[#allocation2 + $0x70] sm:$0xff] }
 0x28f   : > { %v2552_v12 = vpop.f32.mrf.mxu2  ;;  %v3349_v58 = vshll.u32 %v6678_v37, 16 }
 0x290   : > { %v2682_v36 = vadd.f32 %v2681_v51, %v2665_v21  ;;  %v2590_v0 = vadd.f32 %v2552_v12, %v2420_v43  ;;  %v2980_v23 = vpop.f32.mrf.mxu0 }
 0x291   : > { %v6672_v35 = vadd.f32 %v2980_v23, %v2895_v62  ;;  %v2898_v20 = vpop.f32.mrf.mxu3  ;;  %v3351_v14 = vrot.slane %v3349_v58, 1  ;;  %v3479_v23 = vrot.slane %v6678_v37, 1 }
 0x292   : > { %v2612_v27 = vadd.f32 %v6620_v10, %v2590_v0 }
 0x293   : > { %v3352_v62 = vsel %vm1585_vm5, %v3347_v49, %v3351_v14 }
 0x294   : > { %v2630_v60 = vmax.f32 %v2612_v27, 0.0  ;;  %3188 = vmatmul.bf16.gmra.mxu2 %v5133_v19  ;;  %v5363_v27 = vld [vmem:[#allocation2 + $0x68] sm:$0xff]  }
 0x295   : > { %v2385_v18 = vpop.f32.mrf.mxu1 }
 0x296   : > { %v2666_v17 = vmul.f32 %v2648_v31, %v2630_v60  ;;  %v2421_v5 = vadd.f32 %v2385_v18, %v6520_v42  ;;  %v2649_v42 = vld [vmem:[%s7062_s6 + $0x30] sm:$0xff] }
 0x297   : > { %v2555_v32 = vpop.f32.mrf.mxu2 }
 0x298   : > { %v2683_v33 = vadd.f32 %v2682_v36, %v2666_v17  ;;  %v2591_v34 = vadd.f32 %v2555_v32, %v2421_v5  ;;  %v2983_v13 = vpop.f32.mrf.mxu0  ;;  %3044 = vmatmul.bf16.gmra.mxu1 %v5362_v26  ;;  %v3480_v32 = vsel %vm1812_vm4, %v3477_v24, %v3479_v23 }
 0x299   : > { %v6684_v45 = vadd.f32 %v2983_v13, %v2898_v20  ;;  %v2900_v51 = vpop.f32.mrf.mxu3  ;;  %v3353_v20 = vshrl.u32 %v6678_v37, 16 }
 0x29a   : > { %v2613_v2 = vadd.f32 %v6620_v10, %v2591_v34 }
 0x29b   : > { %3521 = vmatmul.bf16.gmra.mxu0 %v3478_v3  ;;  %v3355_v34 = vor.u32 %v3353_v20, %v3351_v14  ;;  %v2652_v14 = vld [vmem:[%s7062_s6 + $0x48] sm:$0xff] }
 0x29c   : > { %v2631_v8 = vmax.f32 %v2613_v2, 0.0 }
 0x29d   : > { %v2387_v29 = vpop.f32.mrf.mxu1 }
 0x29e   : > { %v2667_v7 = vmul.f32 %v2649_v42, %v2631_v8  ;;  %v2422_v63 = vadd.f32 %v2387_v29, %v6529_v25  ;;  %3422 = vmatmul.bf16.gmra.mxu3 %v3352_v62  ;;  %v6699_v25 = vld [vmem:[#allocation2 + $0x88] sm:$0xff]  ;;  %v5135_v29 = vld [vmem:[#allocation2 + $0x78] sm:$0xff] }
 0x29f   : > { %v2557_v15 = vpop.f32.mrf.mxu2  ;;  %v3357_v18 = vshll.u32 %v6699_v25, 16 }
 0x2a0   : > { %v2684_v6 = vadd.f32 %v2683_v33, %v2667_v7  ;;  %v2592_v50 = vadd.f32 %v2557_v15, %v2422_v63  ;;  %v2985_v47 = vpop.f32.mrf.mxu0 }
 0x2a1   : > { %v6693_v11 = vadd.f32 %v2985_v47, %v2900_v51  ;;  %v2903_v43 = vpop.f32.mrf.mxu3  ;;  %v3359_v13 = vrot.slane %v3357_v18, 1  ;;  %v3481_v47 = vrot.slane %v6699_v25, 1 }
 0x2a2   : > { %v2614_v44 = vadd.f32 %v6620_v10, %v2592_v50 }
 0x2a3   : > { %v3360_v51 = vsel %vm1585_vm5, %v3355_v34, %v3359_v13  ;;  %v5136_v34 = vld [vmem:[#allocation2 + $0x80] sm:$0xff] }
 0x2a4   : > { %v2632_v21 = vmax.f32 %v2614_v44, 0.0  ;;  %3193 = vmatmul.bf16.gmra.mxu2 %v5134_v4  ;;  %v5364_v44 = vld [vmem:[#allocation2 + $0x70] sm:$0xff]  }
 0x2a5   : > { %v2390_v12 = vpop.f32.mrf.mxu1 }
 0x2a6   : > { %v2668_v36 = vmul.f32 %v2650_v48, %v2632_v21  ;;  %v2423_v0 = vadd.f32 %v2390_v12, %v6535_v22  ;;  %v2651_v22 = vld [vmem:[%s7062_s6 + $0x40] sm:$0xff] }
 0x2a7   : > { %v2560_v41 = vpop.f32.mrf.mxu2 }
 0x2a8   : > { %v2685_v19 = vadd.f32 %v2684_v6, %v2668_v36  ;;  %v2593_v31 = vadd.f32 %v2560_v41, %v2423_v0  ;;  %v2988_v60 = vpop.f32.mrf.mxu0  ;;  %3049 = vmatmul.bf16.gmra.mxu1 %v5363_v27  ;;  %v3482_v41 = vsel %vm1812_vm4, %v3479_v23, %v3481_v47 }
 0x2a9   : > { %v6705_v17 = vadd.f32 %v2988_v60, %v2903_v43  ;;  %v2905_v33 = vpop.f32.mrf.mxu3  ;;  %v3361_v43 = vshrl.u32 %v6699_v25, 16 }
 0x2aa   : > { %v2615_v5 = vadd.f32 %v6620_v10, %v2593_v31 }
 0x2ab   : > { %3526 = vmatmul.bf16.gmra.mxu0 %v3480_v32  ;;  %v3363_v31 = vor.u32 %v3361_v43, %v3359_v13  ;;  %v2654_v13 = vld [vmem:[%s7062_s6 + $0x58] sm:$0xff]  ;;  %v3260_v43 = vld [vmem:[#allocation2 + $0xa0] sm:$0x1] }
 0x2ac   : > { %v2633_v26 = vmax.f32 %v2615_v5, 0.0 }
 0x2ad   : > { %v2392_v1 = vpop.f32.mrf.mxu1 }
 0x2ae   : > { %v2669_v58 = vmul.f32 %v2651_v22, %v2633_v26  ;;  %v2424_v37 = vadd.f32 %v2392_v1, %v6544_v16  ;;  %3427 = vmatmul.bf16.gmra.mxu3 %v3360_v51  ;;  %v6720_v16 = vld [vmem:[#allocation2 + $0x90] sm:$0xff]  ;;  %v5365_v51 = vld [vmem:[#allocation2 + $0x78] sm:$0xff]  }
 0x2af   : > { %v2562_v2 = vpop.f32.mrf.mxu2  ;;  %v3365_v12 = vshll.u32 %v6720_v16, 16 }
 0x2b0   : > { %v2686_v3 = vadd.f32 %v2685_v19, %v2669_v58  ;;  %v2594_v42 = vadd.f32 %v2562_v2, %v2424_v37  ;;  %v2990_v8 = vpop.f32.mrf.mxu0  ;;  %v6743_v37 = vld [vmem:[#allocation2 + $0x98] sm:$0xff] }
 0x2b1   : > { %v6714_v24 = vadd.f32 %v2990_v8, %v2905_v33  ;;  %v2908_v63 = vpop.f32.mrf.mxu3  ;;  %v3367_v60 = vrot.slane %v3365_v12, 1 }
 0x2b2   : > { %v2616_v49 = vadd.f32 %v6620_v10, %v2594_v42  ;;  %v3483_v42 = vrot.slane %v6720_v16, 1 }
 0x2b3   : > { %v3368_v23 = vsel %vm1585_vm5, %v3363_v31, %v3367_v60  ;;  %v3298_v31 = vunpack.c.l.b16 %v3260_v43 }
 0x2b4   : > { %v2634_v7 = vmax.f32 %v2616_v49, 0.0  ;;  %3198 = vmatmul.bf16.gmra.mxu2 %v5135_v29 }
 0x2b5   : > { %v2395_v15 = vpop.f32.mrf.mxu1 }
 0x2b6   : > { %v2670_v6 = vmul.f32 %v2652_v14, %v2634_v7  ;;  %v2425_v50 = vadd.f32 %v2395_v15, %v6550_v28  ;;  %v2653_v28 = vld [vmem:[%s7062_s6 + $0x50] sm:$0xff]  ;;  %v3369_v7 = vshrl.u32 %v6720_v16, 16 }
 0x2b7   : > { %v2565_v62 = vpop.f32.mrf.mxu2 }
 0x2b8   : > { %v2687_v4 = vadd.f32 %v2686_v3, %v2670_v6  ;;  %v2595_v48 = vadd.f32 %v2565_v62, %v2425_v50  ;;  %v2993_v21 = vpop.f32.mrf.mxu0  ;;  %3054 = vmatmul.bf16.gmra.mxu1 %v5364_v44  ;;  %v3484_v50 = vsel %vm1812_vm4, %v3481_v47, %v3483_v42 }
 0x2b9   : > { %v6726_v36 = vadd.f32 %v2993_v21, %v2908_v63  ;;  %v6733_v19 = vpop.f32.mrf.mxu3  ;;  %v3373_v63 = vshll.u32 %v6743_v37, 16 }
 0x2ba   : > { %v2617_v0 = vadd.f32 %v6620_v10, %v2595_v48 }
 0x2bb   : > { %3531 = vmatmul.bf16.gmra.mxu0 %v3482_v41  ;;  %v3375_v48 = vrot.slane %v3373_v63, 1 }
 0x2bc   : > { %v2635_v27 = vmax.f32 %v2617_v0, 0.0 }
 0x2bd   : > { %v2397_v20 = vpop.f32.mrf.mxu1 }
 0x2be   : > { %v2671_v25 = vmul.f32 %v2653_v28, %v2635_v27  ;;  %v2426_v18 = vadd.f32 %v2397_v20, %v6559_v30  ;;  %3432 = vmatmul.bf16.gmra.mxu3 %v3368_v23 }
 0x2bf   : > { %v2567_v5 = vpop.f32.mrf.mxu2 }
 0x2c0   : > { %v2688_v32 = vadd.f32 %v2687_v4, %v2671_v25  ;;  %v2596_v22 = vadd.f32 %v2567_v5, %v2426_v18  ;;  %v6736_v26 = vpop.f32.mrf.mxu0  ;;  %v3371_v4 = vor.u32 %v3369_v7, %v3367_v60  ;;  %v5137_v18 = vld [vmem:[#allocation2 + $0x88] sm:$0xff] }
 0x2c1   : > { %v2913_v58 = vpop.f32.mrf.mxu3  ;;  %v2656_v60 = vld [vmem:[%s7062_s6 + $0x68] sm:$0xff] }
 0x2c2   : > { %v2618_v33 = vadd.f32 %v6620_v10, %v2596_v22  ;;  %v3376_v47 = vsel %vm1585_vm5, %v3371_v4, %v3375_v48 }
 0x2c4   : > { %v2636_v1 = vmax.f32 %v2618_v33, 0.0  ;;  %3203 = vmatmul.bf16.gmra.mxu2 %v5136_v34  ;;  %v3485_v34 = vrot.slane %v6743_v37, 1 }
 0x2c5   : > { %v2400_v30 = vpop.f32.mrf.mxu1 }
 0x2c6   : > { %v2672_v2 = vmul.f32 %v2654_v13, %v2636_v1  ;;  %v2427_v3 = vadd.f32 %v2400_v30, %v6566_v61  ;;  %v2655_v61 = vld [vmem:[%s7062_s6 + $0x60] sm:$0xff] }
 0x2c7   : > { %v2570_v8 = vpop.f32.mrf.mxu2  ;;  %v5366_v1 = vld [vmem:[#allocation2 + $0x80] sm:$0xff]  }
 0x2c8   : > { %v2689_v49 = vadd.f32 %v2688_v32, %v2672_v2  ;;  %v2597_v29 = vadd.f32 %v2570_v8, %v2427_v3  ;;  %v2998_v14 = vpop.f32.mrf.mxu0  ;;  %3059 = vmatmul.bf16.gmra.mxu1 %v5365_v51  ;;  %v3377_v3 = vshrl.u32 %v6743_v37, 16 }
 0x2c9   : > { %v6749_v15 = vadd.f32 %v2998_v14, %v2913_v58  ;;  %v2915_v44 = vpop.f32.mrf.mxu3 }
 0x2ca   : > { %v2619_v6 = vadd.f32 %v6620_v10, %v2597_v29  ;;  %v3486_v29 = vsel %vm1812_vm4, %v3483_v42, %v3485_v34  ;;  %v3379_v63 = vor.u32 %v3377_v3, %v3375_v48  ;;  %v2658_v48 = vld [vmem:[%s7062_s6 + $0x78] sm:$0xff] }
 0x2cb   : > { %3536 = vmatmul.bf16.gmra.mxu0 %v3484_v50 }
 0x2cc   : > { %v2637_v62 = vmax.f32 %v2619_v6, 0.0 }
 0x2cd   : > { %v2402_v21 = vpop.f32.mrf.mxu1 }
 0x2ce   : > { %v2673_v16 = vmul.f32 %v2655_v61, %v2637_v62  ;;  %v2428_v12 = vadd.f32 %v2402_v21, %v6571_v39  ;;  %3437 = vmatmul.bf16.gmra.mxu3 %v3376_v47  ;;  %v3308_v39 = vpack.c.b16 %v3298_v31, %v3298_v31 }
 0x2cf   : > { %v2572_v0 = vpop.f32.mrf.mxu2 }
 0x2d0   : > { %v2690_v41 = vadd.f32 %v2689_v49, %v2673_v16  ;;  %v2598_v28 = vadd.f32 %v2572_v0, %v2428_v12  ;;  %v3000_v27 = vpop.f32.mrf.mxu0  ;;  %v3381_v8 = vshll.u32 %v3308_v39, 16  ;;  %v3571_v16 = vld [vmem:[#allocation2 + $0x64] sm:$0xf]  ;;  %v3911_v12 = vld [vmem:[#allocation2 + $0x60] sm:$0xc] }
 0x2d1   : > { %v6758_v20 = vadd.f32 %v3000_v27, %v2915_v44  ;;  %v2918_v32 = vpop.f32.mrf.mxu3  ;;  %v3609_v27 = vunpack.c.l.b16 %v3571_v16  ;;  %v3913_v47 = vunpack.c.l.b16 %v3911_v12 }
 0x2d2   : > { %v2620_v25 = vadd.f32 %v6620_v10, %v2598_v28  ;;  %v3383_v6 = vrot.slane %v3381_v8, 1 }
 0x2d4   : > { %v2638_v5 = vmax.f32 %v2620_v25, 0.0  ;;  %3208 = vmatmul.bf16.gmra.mxu2 %v5137_v18  ;;  %v3384_v43 = vsel %vm1585_vm5, %v3379_v63, %v3383_v6 }
 0x2d5   : > { %v2405_v22 = vpop.f32.mrf.mxu1 }
 0x2d6   : > { %v2674_v23 = vmul.f32 %v2656_v60, %v2638_v5  ;;  %v2429_v33 = vadd.f32 %v2405_v22, %v6577_v40  ;;  %v2657_v40 = vld [vmem:[%s7062_s6 + $0x70] sm:$0xff]  ;;  %v3487_v60 = vrot.slane %v3308_v39, 1  ;;  %v3570_v39 = vld [vmem:[#allocation2 + $0x60] sm:$0xe] }
 0x2d7   : > { %v2575_v13 = vpop.f32.mrf.mxu2  ;;  %v3608_v63 = vunpack.c.l.b16 %v3570_v39 }
 0x2d8   : > { %v2691_v58 = vadd.f32 %v2690_v41, %v2674_v23  ;;  %v2599_v30 = vadd.f32 %v2575_v13, %v2429_v33  ;;  %v3003_v2 = vpop.f32.mrf.mxu0  ;;  %3064 = vmatmul.bf16.gmra.mxu1 %v5366_v1  ;;  %v5138_v41 = vld [vmem:[#allocation2 + $0x90] sm:$0xff]  ;;  %v6783_v33 = vld [vmem:[#allocation2 + $0x68] sm:$0xff]  ;;  %v3914_v13 = vpack.c.b16 %v3609_v27, %v3913_v47 }
 0x2d9   : > { %v6767_v51 = vadd.f32 %v3003_v2, %v2918_v32  ;;  %v2920_v7 = vpop.f32.mrf.mxu3  ;;  %v5367_v32 = vld [vmem:[#allocation2 + $0x88] sm:$0xff]   ;;  %v3916_v8 = vrot.slane %v6783_v33, 2 }
 0x2da   : > { %v2621_v49 = vadd.f32 %v6620_v10, %v2599_v30  ;;  %v2659_v30 = vld [vmem:[%s7062_s6 + $0x80] sm:$0xff]  ;;  %v3915_v3 = vrot.slane %v3914_v13, 2 }
 0x2db   : > { %3541 = vmatmul.bf16.gmra.mxu0 %v3486_v29 }
 0x2dc   : > { %v2639_v14 = vmax.f32 %v2621_v49, 0.0 }
 0x2dd   : > { %v2407_v50 = vpop.f32.mrf.mxu1 }
 0x2de   : > { %v2675_v61 = vmul.f32 %v2657_v40, %v2639_v14  ;;  %v2430_v37 = vadd.f32 %v2407_v50, %v6587_v55  ;;  %3442 = vmatmul.bf16.gmra.mxu3 %v3384_v43  ;;  %v3917_v50 = vsel %vm2454_vm2, %v3915_v3, %v3916_v8 }
 0x2df   : > { %v2577_v62 = vpop.f32.mrf.mxu2 }
 0x2e0   : > { %v2692_v44 = vadd.f32 %v2691_v58, %v2675_v61  ;;  %v2600_v4 = vadd.f32 %v2577_v62, %v2430_v37  ;;  %v3005_v21 = vpop.f32.mrf.mxu0  ;;  %v3488_v58 = vsel %vm1812_vm4, %v3485_v34, %v3487_v60  ;;  %v5139_v37 = vld [vmem:[#allocation2 + $0x98] sm:$0xff]  ;;  %v2660_v62 = vld [vmem:[%s7062_s6 + $0x88] sm:$0xff] }
 0x2e1   : > { %v6776_v42 = vadd.f32 %v3005_v21, %v2920_v7  ;;  %v3403_v55 = vpop.f32.mrf.mxu3 }
 0x2e2   : > { %v2622_v0 = vadd.f32 %v6620_v10, %v2600_v4 }
 0x2e4   : > { %v2640_v28 = vmax.f32 %v2622_v0, 0.0  ;;  %3213 = vmatmul.bf16.gmra.mxu2 %v5138_v41 }
 0x2e5   : > { %v2410_v31 = vpop.f32.mrf.mxu1 }
 0x2e6   : > { %v2676_v25 = vmul.f32 %v2658_v48, %v2640_v28  ;;  %v2431_v18 = vadd.f32 %v2410_v31, %v6596_v38  ;;  %v3750_v48 = vshrl.u32 %v6783_v33, 16  ;;  %v5522_v31 = vld [vmem:[#allocation2 + $0x90] sm:$0xff] }
 0x2e7   : > { %v2580_v5 = vpop.f32.mrf.mxu2 }
 0x2e8   : > { %v2693_v22 = vadd.f32 %v2692_v44, %v2676_v25  ;;  %v2601_v23 = vadd.f32 %v2580_v5, %v2431_v18  ;;  %3069 = vmatmul.bf16.gmra.mxu1 %v5367_v32  ;;  %v3507_v14 = vpop.f32.mrf.mxu0  ;;  %v3627_v44 = vpack.c.b16 %v3609_v27, %v3608_v63  ;;  %v6802_v27 = vld [vmem:[#allocation2 + $0x70] sm:$0xff]  ;;  %v3752_v32 = vrot.slane %v3750_v48, 1 }
 0x2e9   : > { %v3405_v38 = vpop.f32.mrf.mxu3  ;;  %v3638_v63 = vrot.slane %v6783_v33, 1 }
 0x2ea   : > { %v2623_v1 = vadd.f32 %v6620_v10, %v2601_v23  ;;  %v3742_v0 = vshrl.u32 %v3627_v44, 16  ;;  %v3745_v41 = vshll.u32 %v3627_v44, 16  ;;  %v3918_v23 = vrot.slane %v6802_v27, 2 }
 0x2eb   : > { %3546 = vmatmul.bf16.gmra.mxu0 %v3488_v58 }
 0x2ec   : > { %v2641_v2 = vmax.f32 %v2623_v1, 0.0  ;;  %v3744_v60 = vrot.slane %v3742_v0, 1  ;;  %v3747_v5 = vrot.slane %v3745_v41, 2 }
 0x2ed   : > { %v2412_v49 = vpop.f32.mrf.mxu1 }
 0x2ee   : > { %v2677_v29 = vmul.f32 %v2659_v30, %v2641_v2  ;;  %v2432_v40 = vadd.f32 %v2412_v49, %v6607_v46  ;;  %3951 = vmatmul.bf16.vlgmr.msra.gmra.mxu3 %v3917_v50  ;;  %v3748_v2 = vor.u32 %v3747_v5, %v3744_v60  ;;  %v3919_v49 = vsel %vm2454_vm2, %v3916_v8, %v3918_v23 }
 0x2ef   : > { %v2582_v7 = vpop.f32.mrf.mxu2  ;;  %v3759_v8 = vshrl.u32 %v6802_v27, 16 }
 0x2f0   : > { %v2694_v6 = vadd.f32 %v2693_v22, %v2677_v29  ;;  %v2602_v34 = vadd.f32 %v2582_v7, %v2432_v40  ;;  %v3509_v25 = vpop.f32.mrf.mxu0  ;;  %v3637_v7 = vrot.slane %v3627_v44, 1 }
 0x2f1   : > { %v3408_v21 = vpop.f32.mrf.mxu3 }
 0x2f2   : > { %v2624_v61 = vadd.f32 %v6620_v10, %v2602_v34  ;;  %v3753_v10 = vshll.u32 %v6783_v33, 16  ;;  %v3761_v33 = vrot.slane %v3759_v8, 1 }
 0x2f4   : > { %v2642_v4 = vmax.f32 %v2624_v61, 0.0  ;;  %3218 = vmatmul.bf16.gmra.mxu2 %v5139_v37  ;;  %v3639_v61 = vsel %vm1812_vm4, %v3637_v7, %v3638_v63 }
 0x2f5   : > { %v3035_v46 = vpop.f32.mrf.mxu1 }
 0x2f6   : > { %v2678_v43 = vmul.f32 %v2660_v62, %v2642_v4  ;;  %v3080_v16 = vadd.f32 %v3035_v46, %v6593_v59  ;;  %v3755_v59 = vrot.slane %v3753_v10, 2  ;;  %v6817_v62 = vld [vmem:[#allocation2 + $0x78] sm:$0xff] }
 0x2f7   : > { %v3179_v12 = vpop.f32.mrf.mxu2 }
 0x2f8   : > { %v6800_v28 = vadd.f32 %v2694_v6, %v2678_v43  ;;  %v3224_v47 = vadd.f32 %v3179_v12, %v3080_v16  ;;  %3074 = vmatmul.bf16.gmra.mxu1 %v5522_v31  ;;  %v3756_v39 = vor.u32 %v3755_v59, %v3752_v32  ;;  %v3512_v29 = vpop.f32.mrf.mxu0  ;;  %v3920_v43 = vrot.slane %v6817_v62, 2 }
 0x2f9   : > { %v3410_v22 = vpop.f32.mrf.mxu3 }
 0x2fa   : > { %v3448_v18 = vadd.f32 %v3403_v55, %v3224_v47  ;;  %v3757_v40 = vsel %vm2214_vm3, %v3748_v2, %v3756_v39  ;;  %v3921_v47 = vsel %vm2454_vm2, %v3918_v23, %v3920_v43  ;;  %v3771_v23 = vshll.u32 %v6817_v62, 16 }
 0x2fc   : > { %v6805_v13 = vadd.f32 %v3507_v14, %v3448_v18 }
 0x2fd   : > { %v3037_v1 = vpop.f32.mrf.mxu1 }
 0x2fe   : > { %v3081_v58 = vadd.f32 %v3037_v1, %v6600_v57  ;;  %3956 = vmatmul.bf16.gmra.mxu3 %v3919_v49 }
 0x2ff   : > { %v3181_v30 = vpop.f32.mrf.mxu2 }
 0x300   : > { %v3225_v3 = vadd.f32 %v3181_v30, %v3081_v58  ;;  %v3768_v58 = vshrl.u32 %v6817_v62, 16  ;;  %v6832_v30 = vld [vmem:[#allocation2 + $0x80] sm:$0xff] }
 0x301   : > { %v3413_v6 = vpop.f32.mrf.mxu3  ;;  %v3922_v49 = vrot.slane %v6832_v30, 2 }
 0x302   : > { %v3449_v55 = vadd.f32 %v3405_v38, %v3225_v3  ;;  %v3762_v38 = vshll.u32 %v6802_v27, 16  ;;  %v3770_v2 = vrot.slane %v3768_v58, 1 }
 0x304   : > { %3847 = vmatmul.bf16.vlgmr.msra.gmra.mxu2 %v3757_v40  ;;  %v6811_v14 = vadd.f32 %v3509_v25, %v3449_v55  ;;  %v3764_v4 = vrot.slane %v3762_v38, 2  ;;  %v3640_v25 = vrot.slane %v6802_v27, 1 }
 0x305   : > { %v3040_v34 = vpop.f32.mrf.mxu1 }
 0x306   : > { %v3082_v57 = vadd.f32 %v3040_v34, %v6615_v56  ;;  %v3514_v56 = vpop.f32.mrf.mxu0  ;;  %v3765_v48 = vor.u32 %v3764_v4, %v3761_v33  ;;  %v3641_v1 = vsel %vm1812_vm4, %v3638_v63, %v3640_v25  ;;  %v3923_v34 = vsel %vm2454_vm2, %v3920_v43, %v3922_v49 }
 0x307   : > { %v3184_v50 = vpop.f32.mrf.mxu2  ;;  %v3777_v4 = vshrl.u32 %v6832_v30, 16  ;;  %v3780_v43 = vshll.u32 %v6832_v30, 16 }
 0x308   : > { %v3226_v37 = vadd.f32 %v3184_v50, %v3082_v57  ;;  %3673 = vmatmul.bf16.vlgmr.msra.gmra.mxu1 %v3639_v61  ;;  %v3642_v61 = vrot.slane %v6817_v62, 1 }
 0x309   : > { %v3415_v46 = vpop.f32.mrf.mxu3 }
 0x30a   : > { %v3450_v44 = vadd.f32 %v3408_v21, %v3226_v37  ;;  %v3766_v21 = vsel %vm2214_vm3, %v3756_v39, %v3765_v48  ;;  %v3773_v39 = vrot.slane %v3771_v23, 2  ;;  %v3643_v33 = vsel %vm1812_vm4, %v3640_v25, %v3642_v61 }
 0x30c   : > { %v6820_v16 = vadd.f32 %v3512_v29, %v3450_v44  ;;  %v3774_v7 = vor.u32 %v3773_v39, %v3770_v2 }
 0x30d   : > { %v3042_v12 = vpop.f32.mrf.mxu1 }
 0x30e   : > { %v3083_v0 = vadd.f32 %v3042_v12, %v6626_v52  ;;  %3961 = vmatmul.bf16.gmra.mxu3 %v3921_v47  ;;  %v3517_v59 = vpop.f32.mrf.mxu0 }
 0x30f   : > { %v3186_v41 = vpop.f32.mrf.mxu2 }
 0x310   : > { %v3227_v10 = vadd.f32 %v3186_v41, %v3083_v0  ;;  %v3779_v0 = vrot.slane %v3777_v4, 1  ;;  %v3782_v41 = vrot.slane %v3780_v43, 2 }
 0x311   : > { %v3418_v18 = vpop.f32.mrf.mxu3 }
 0x312   : > { %v3451_v31 = vadd.f32 %v3410_v22, %v3227_v10  ;;  %v3783_v25 = vor.u32 %v3782_v41, %v3779_v0 }
 0x314   : > { %3852 = vmatmul.bf16.gmra.mxu2 %v3766_v21  ;;  %v6826_v60 = vadd.f32 %v3514_v56, %v3451_v31 }
 0x315   : > { %v3045_v5 = vpop.f32.mrf.mxu1 }
 0x316   : > { %v3084_v32 = vadd.f32 %v3045_v5, %v6641_v53  ;;  %v3519_v57 = vpop.f32.mrf.mxu0 }
 0x317   : > { %v3189_v52 = vpop.f32.mrf.mxu2 }
 0x318   : > { %v3228_v22 = vadd.f32 %v3189_v52, %v3084_v32  ;;  %3678 = vmatmul.bf16.gmra.mxu1 %v3641_v1  ;;  %v3644_v52 = vrot.slane %v6832_v30, 1 }
 0x319   : > { %v3420_v3 = vpop.f32.mrf.mxu3 }
 0x31a   : > { %v3452_v27 = vadd.f32 %v3413_v6, %v3228_v22  ;;  %v3775_v6 = vsel %vm2214_vm3, %v3765_v48, %v3774_v7 }
 0x31c   : > { %v6835_v55 = vadd.f32 %v3517_v59, %v3452_v27 }
 0x31d   : > { %v3047_v53 = vpop.f32.mrf.mxu1 }
 0x31e   : > { %v3085_v29 = vadd.f32 %v3047_v53, %v6650_v54  ;;  %3966 = vmatmul.bf16.gmra.mxu3 %v3923_v34  ;;  %v3522_v62 = vpop.f32.mrf.mxu0 }
 0x31f   : > { %v3191_v40 = vpop.f32.mrf.mxu2 }
 0x320   : > { %v3229_v63 = vadd.f32 %v3191_v40, %v3085_v29 }
 0x321   : > { %v3423_v8 = vpop.f32.mrf.mxu3 }
 0x322   : > { %v3453_v50 = vadd.f32 %v3415_v46, %v3229_v63  ;;  %v6847_v46 = vld [vmem:[#allocation2 + $0x88] sm:$0xff] }
 0x323   : > { %v3924_v10 = vrot.slane %v6847_v46, 2  ;;  %v3786_v27 = vshrl.u32 %v6847_v46, 16  ;;  %v3789_v2 = vshll.u32 %v6847_v46, 16 }
 0x324   : > { %3857 = vmatmul.bf16.gmra.mxu2 %v3775_v6  ;;  %v6841_v38 = vadd.f32 %v3519_v57, %v3453_v50 }
 0x325   : > { %v3050_v37 = vpop.f32.mrf.mxu1  ;;  %v3925_v32 = vsel %vm2454_vm2, %v3922_v49, %v3924_v10  ;;  %v3788_v53 = vrot.slane %v3786_v27, 1  ;;  %v3791_v30 = vrot.slane %v3789_v2, 2  ;;  %v6892_v2 = vld [vmem:[#allocation2 + $0xa0] sm:$0xff] }
 0x326   : > { %v3086_v44 = vadd.f32 %v3050_v37, %v6663_v9 }
 0x327   : > { %v3194_v54 = vpop.f32.mrf.mxu2  ;;  %v3792_v34 = vor.u32 %v3791_v30, %v3788_v53  ;;  %v2996_v30 = vadd.f32 %v6736_v26, %v6733_v19 }
 0x328   : > { %v3230_v56 = vadd.f32 %v3194_v54, %v3086_v44  ;;  %3683 = vmatmul.bf16.gmra.mxu1 %v3643_v33 }
 0x329   : > { %v3425_v48 = vpop.f32.mrf.mxu3 }
 0x32a   : > { %v3454_v12 = vadd.f32 %v3418_v18, %v3230_v56  ;;  %v3784_v18 = vsel %vm2214_vm3, %v3774_v7, %v3783_v25 }
 0x32c   : > { %v6850_v47 = vadd.f32 %v3522_v62, %v3454_v12  ;;  %v6877_v12 = vld [vmem:[#allocation2 + $0x98] sm:$0xff] }
 0x32d   : > { %v3052_v9 = vpop.f32.mrf.mxu1 }
 0x32e   : > { %v3087_v31 = vadd.f32 %v3052_v9, %v6672_v35  ;;  %3971 = vmatmul.bf16.gmra.mxu3 %v3925_v32  ;;  %v3645_v35 = vsel %vm1812_vm4, %v3642_v61, %v3644_v52  ;;  %v3793_v61 = vsel %vm2214_vm3, %v3783_v25, %v3792_v34 }
 0x32f   : > { %v3196_v21 = vpop.f32.mrf.mxu2 }
 0x330   : > { %v3231_v5 = vadd.f32 %v3196_v21, %v3087_v31 }
 0x331   : > { %v3428_v1 = vpop.f32.mrf.mxu3 }
 0x332   : > { %v6854_v59 = vadd.f32 %v3420_v3, %v3231_v5  ;;  %v6862_v3 = vld [vmem:[#allocation2 + $0x90] sm:$0xff] }
 0x333   : > { %v3926_v40 = vrot.slane %v6862_v3, 2  ;;  %v3795_v4 = vshrl.u32 %v6862_v3, 16  ;;  %v3798_v43 = vshll.u32 %v6862_v3, 16 }
 0x334   : > { %3862 = vmatmul.bf16.gmra.mxu2 %v3784_v18  ;;  %v3648_v18 = vrot.slane %v6862_v3, 1 }
 0x335   : > { %v3055_v58 = vpop.f32.mrf.mxu1  ;;  %v3927_v50 = vsel %vm2454_vm2, %v3924_v10, %v3926_v40  ;;  %v3797_v0 = vrot.slane %v3795_v4, 1 }
 0x336   : > { %v3088_v23 = vadd.f32 %v3055_v58, %v6684_v45 }
 0x337   : > { %v3199_v22 = vpop.f32.mrf.mxu2 }
 0x338   : > { %v3232_v39 = vadd.f32 %v3199_v22, %v3088_v23  ;;  %3688 = vmatmul.bf16.gmra.mxu1 %v3645_v35  ;;  %v3804_v22 = vshrl.u32 %v6877_v12, 16  ;;  %v3807_v35 = vshll.u32 %v6877_v12, 16 }
 0x339   : > { %v3430_v29 = vpop.f32.mrf.mxu3 }
 0x33a   : > { %v6864_v49 = vadd.f32 %v3423_v8, %v3232_v39  ;;  %v3646_v8 = vrot.slane %v6847_v46, 1  ;;  %v3800_v46 = vrot.slane %v3798_v43, 2  ;;  %v3806_v53 = vrot.slane %v3804_v22, 1 }
 0x33b   : > { %v3809_v3 = vrot.slane %v3807_v35, 2  ;;  %v3813_v43 = vshrl.u32 %v6892_v2, 16 }
 0x33c   : > { %v3801_v31 = vor.u32 %v3800_v46, %v3797_v0 }
 0x33d   : > { %v3057_v7 = vpop.f32.mrf.mxu1 }
 0x33e   : > { %v3089_v45 = vadd.f32 %v3057_v7, %v6693_v11  ;;  %3976 = vmatmul.bf16.gmra.mxu3 %v3927_v50  ;;  %v3647_v11 = vsel %vm1812_vm4, %v3644_v52, %v3646_v8  ;;  %v3802_v32 = vsel %vm2214_vm3, %v3792_v34, %v3801_v31  ;;  %v3737_v34 = vld [vmem:[#allocation2 + $0xa8] sm:$0x3] }
 0x33f   : > { %v3201_v63 = vpop.f32.mrf.mxu2 }
 0x340   : > { %v3233_v57 = vadd.f32 %v3201_v63, %v3089_v45  ;;  %v3810_v63 = vor.u32 %v3809_v3, %v3806_v53 }
 0x341   : > { %v3433_v37 = vpop.f32.mrf.mxu3 }
 0x342   : > { %v6869_v6 = vadd.f32 %v3425_v48, %v3233_v57  ;;  %v3928_v48 = vrot.slane %v6877_v12, 2 }
 0x344   : > { %3867 = vmatmul.bf16.gmra.mxu2 %v3793_v61  ;;  %v3929_v25 = vsel %vm2454_vm2, %v3926_v40, %v3928_v48 }
 0x345   : > { %v3060_v44 = vpop.f32.mrf.mxu1 }
 0x346   : > { %v3090_v54 = vadd.f32 %v3060_v44, %v6705_v17  ;;  %v3650_v44 = vrot.slane %v6877_v12, 1 }
 0x347   : > { %v3204_v33 = vpop.f32.mrf.mxu2 }
 0x348   : > { %v3234_v56 = vadd.f32 %v3204_v33, %v3090_v54  ;;  %3693 = vmatmul.bf16.gmra.mxu1 %v3647_v11  ;;  %v3651_v4 = vsel %vm1812_vm4, %v3648_v18, %v3650_v44 }
 0x349   : > { %v3435_v41 = vpop.f32.mrf.mxu3 }
 0x34a   : > { %v6879_v62 = vadd.f32 %v3428_v1, %v3234_v56  ;;  %v3816_v56 = vshll.u32 %v6892_v2, 16 }
 0x34c   : > { %v3818_v12 = vrot.slane %v3816_v56, 2 }
 0x34d   : > { %v3062_v10 = vpop.f32.mrf.mxu1 }
 0x34e   : > { %v3091_v17 = vadd.f32 %v3062_v10, %v6714_v24  ;;  %3981 = vmatmul.bf16.gmra.mxu3 %v3929_v25  ;;  %v3649_v24 = vsel %vm1812_vm4, %v3646_v8, %v3648_v18  ;;  %v3739_v8 = vunpack.c.l.b16 %v3737_v34 }
 0x34f   : > { %v3206_v9 = vpop.f32.mrf.mxu2 }
 0x350   : > { %v3235_v21 = vadd.f32 %v3206_v9, %v3091_v17  ;;  %v3740_v33 = vpack.c.b16 %v3739_v8, %v3739_v8 }
 0x351   : > { %v3438_v52 = vpop.f32.mrf.mxu3 }
 0x352   : > { %v6884_v5 = vadd.f32 %v3430_v29, %v3235_v21 }
 0x354   : > { %3872 = vmatmul.bf16.gmra.mxu2 %v3802_v32 }
 0x355   : > { %v3065_v1 = vpop.f32.mrf.mxu1 }
 0x356   : > { %v3092_v58 = vadd.f32 %v3065_v1, %v6726_v36  ;;  %v3930_v36 = vrot.slane %v6892_v2, 2 }
 0x357   : > { %v3209_v23 = vpop.f32.mrf.mxu2 }
 0x358   : > { %v3236_v27 = vadd.f32 %v3209_v23, %v3092_v58  ;;  %3698 = vmatmul.bf16.gmra.mxu1 %v3649_v24  ;;  %v3931_v50 = vsel %vm2454_vm2, %v3928_v48, %v3930_v36  ;;  %v3815_v48 = vrot.slane %v3813_v43, 1  ;;  %v3822_v23 = vshrl.u32 %v3740_v33, 16 }
 0x359   : > { %v3440_v29 = vpop.f32.mrf.mxu3  ;;  %v3825_v24 = vshll.u32 %v3740_v33, 16 }
 0x35a   : > { %v6894_v39 = vadd.f32 %v3433_v37, %v3236_v27  ;;  %v3811_v37 = vsel %vm2214_vm3, %v3801_v31, %v3810_v63  ;;  %v3819_v21 = vor.u32 %v3818_v12, %v3815_v48  ;;  %v3824_v3 = vrot.slane %v3822_v23, 1 }
 0x35c   : > { %v3820_v18 = vsel %vm2214_vm3, %v3810_v63, %v3819_v21 }
 0x35d   : > { %v3067_v40 = vpop.f32.mrf.mxu1 }
 0x35e   : > { %v3093_v7 = vadd.f32 %v3067_v40, %v2996_v30  ;;  %3986 = vmatmul.bf16.gmra.mxu3 %v3931_v50  ;;  %v3827_v30 = vrot.slane %v3825_v24, 2 }
 0x35f   : > { %v3211_v45 = vpop.f32.mrf.mxu2 }
 0x360   : > { %v3237_v57 = vadd.f32 %v3211_v45, %v3093_v7  ;;  %v3828_v7 = vor.u32 %v3827_v30, %v3824_v3 }
 0x361   : > { %v3443_v19 = vpop.f32.mrf.mxu3 }
 0x362   : > { %v6900_v61 = vadd.f32 %v3435_v41, %v3237_v57  ;;  %v3932_v41 = vrot.slane %v3740_v33, 2 }
 0x364   : > { %3877 = vmatmul.bf16.gmra.mxu2 %v3811_v37  ;;  %v5163_v37 = vld [vmem:[%s7060_s4 + $0x38] sm:$0xff] }
 0x365   : > { %v3070_v26 = vpop.f32.mrf.mxu1  ;;  %4180 = vmatpush.bf16.msra.mxu0 %v5163_v37  ;;  %v3524_v37 = vpop.f32.mrf.mxu0 }
 0x366   : > { %v3094_v54 = vadd.f32 %v3070_v26, %v6749_v15  ;;  %v3933_v15 = vsel %vm2454_vm2, %v3930_v36, %v3932_v41  ;;  %v6933_v41 = vld [vmem:[%s7059_s3] ss:$0 sm:$0xff] }
 0x367   : > { %v3214_v11 = vpop.f32.mrf.mxu2 }
 0x368   : > { %v3238_v0 = vadd.f32 %v3214_v11, %v3094_v54  ;;  %3703 = vmatmul.bf16.gmra.mxu1 %v3651_v4 }
 0x369   : > { %v3445_v10 = vpop.f32.mrf.mxu3 }
 0x36a   : > { %v6908_v46 = vadd.f32 %v3438_v52, %v3238_v0  ;;  %v3652_v52 = vrot.slane %v6892_v2, 1 }
 0x36c   : > { %v3653_v27 = vsel %vm1812_vm4, %v3650_v44, %v3652_v52 }
 0x36d   : > { %v3072_v17 = vpop.f32.mrf.mxu1 }
 0x36e   : > { %v3095_v9 = vadd.f32 %v3072_v17, %v6758_v20  ;;  %3991 = vmatmul.bf16.gmra.mxu3 %v3933_v15  ;;  %v3588_v20 = vld [vmem:[#allocation2 + $0xa8] sm:$0x1] }
 0x36f   : > { %v3216_v31 = vpop.f32.mrf.mxu2 }
 0x370   : > { %v3239_v25 = vadd.f32 %v3216_v31, %v3095_v9  ;;  %v4052_v31 = vld [vmem:[%s7062_s6 + $0x98] sm:$0xff] }
 0x371   : > { %v3952_v1 = vpop.f32.mrf.mxu3 }
 0x372   : > { %v6912_v32 = vadd.f32 %v3440_v29, %v3239_v25  ;;  %v3626_v29 = vunpack.c.l.b16 %v3588_v20 }
 0x374   : > { %3882 = vmatmul.bf16.gmra.mxu2 %v3820_v18  ;;  %v3636_v45 = vpack.c.b16 %v3626_v29, %v3626_v29 }
 0x375   : > { %v3075_v58 = vpop.f32.mrf.mxu1 }
 0x376   : > { %v3096_v22 = vadd.f32 %v3075_v58, %v6767_v51  ;;  %v3829_v51 = vsel %vm2214_vm3, %v3819_v21, %v3828_v7  ;;  %v3654_v50 = vrot.slane %v3636_v45, 1 }
 0x377   : > { %v3219_v35 = vpop.f32.mrf.mxu2 }
 0x378   : > { %v3240_v53 = vadd.f32 %v3219_v35, %v3096_v22  ;;  %3708 = vmatmul.bf16.gmra.mxu1 %v3653_v27  ;;  %v3655_v26 = vsel %vm1812_vm4, %v3652_v52, %v3654_v50  ;;  %v4053_v27 = vld [vmem:[%s7062_s6 + $0xa0] sm:$0xff] }
 0x379   : > { %v3954_v40 = vpop.f32.mrf.mxu3 }
 0x37a   : > { %v6918_v36 = vadd.f32 %v3443_v19, %v3240_v53 }
 0x37d   : > { %v3077_v2 = vpop.f32.mrf.mxu1 }
 0x37e   : > { %v3097_v63 = vadd.f32 %v3077_v2, %v6776_v42 }
 0x37f   : > { %v3221_v34 = vpop.f32.mrf.mxu2 }
 0x380   : > { %v3241_v57 = vadd.f32 %v3221_v34, %v3097_v63  ;;  %v4054_v63 = vld [vmem:[%s7062_s6 + $0xa8] sm:$0xff] }
 0x381   : > { %v3957_v44 = vpop.f32.mrf.mxu3 }
 0x382   : > { %v6922_v8 = vadd.f32 %v3445_v10, %v3241_v57 }
 0x384   : > { %3887 = vmatmul.bf16.gmra.mxu2 %v3829_v51 }
 0x385   : > { %v3674_v19 = vpop.f32.mrf.mxu1 }
 0x386   : > { %v3719_v54 = vadd.f32 %v3674_v19, %v6805_v13  ;;  %v5162_v13 = vld [vmem:[%s7060_s4 + $0x30] sm:$0xff] }
 0x387   : > { %v3848_v42 = vpop.f32.mrf.mxu2  ;;  %4181 = vmatpush.bf16.msra.mxu0 %v5162_v13 }
 0x388   : > { %v3893_v33 = vadd.f32 %v3848_v42, %v3719_v54  ;;  %3713 = vmatmul.bf16.gmra.mxu1 %v3655_v26  ;;  %v5161_v42 = vld [vmem:[%s7060_s4 + $0x28] sm:$0xff] }
 0x389   : > { %v3959_v4 = vpop.f32.mrf.mxu3 }
 0x38a   : > { %v3997_v11 = vadd.f32 %v3952_v1, %v3893_v33 }
 0x38b   : > { %4182 = vmatpush.bf16.msra.mxu0 %v5161_v42 }
 0x38c   : > { %v4015_v48 = vadd.f32 %v6933_v41, %v3997_v11  ;;  %v4055_v11 = vld [vmem:[%s7062_s6 + $0xb0] sm:$0xff] }
 0x38d   : > { %v3676_v43 = vpop.f32.mrf.mxu1 }
 0x38e   : > { %v3720_v56 = vadd.f32 %v3676_v43, %v6811_v14  ;;  %v4033_v17 = vmax.f32 %v4015_v48, 0.0  ;;  %v4051_v14 = vld [vmem:[%s7062_s6 + $0x90] sm:$0xff] }
 0x38f   : > { %v3850_v0 = vpop.f32.mrf.mxu2 }
 0x390   : > { %v3894_v12 = vadd.f32 %v3850_v0, %v3720_v56  ;;  %v4069_v1 = vmul.f32 %v4051_v14, %v4033_v17 }
 0x391   : > { %v3962_v15 = vpop.f32.mrf.mxu3 }
 0x392   : > { %v3998_v10 = vadd.f32 %v3954_v40, %v3894_v12 }
 0x394   : > { %v4016_v9 = vadd.f32 %v6933_v41, %v3998_v10  ;;  %v3527_v10 = vpop.f32.mrf.mxu0 }
 0x395   : > { %v3679_v21 = vpop.f32.mrf.mxu1 }
 0x396   : > { %v4034_v25 = vmax.f32 %v4016_v9, 0.0  ;;  %v3721_v18 = vadd.f32 %v3679_v21, %v6820_v16 }
 0x397   : > { %v3853_v52 = vpop.f32.mrf.mxu2 }
 0x398   : > { %v4070_v58 = vmul.f32 %v4052_v31, %v4034_v25  ;;  %v3895_v23 = vadd.f32 %v3853_v52, %v3721_v18 }
 0x399   : > { %v3964_v35 = vpop.f32.mrf.mxu3 }
 0x39a   : > { %v4087_v24 = vadd.f32 %v4070_v58, %v4069_v1  ;;  %v3999_v22 = vadd.f32 %v3957_v44, %v3895_v23  ;;  %v5160_v23 = vld [vmem:[%s7060_s4 + $0x20] sm:$0xff] }
 0x39b   : > { %4183 = vmatpush.bf16.msra.mxu0 %v5160_v23 }
 0x39c   : > { %v4017_v20 = vadd.f32 %v6933_v41, %v3999_v22 }
 0x39d   : > { %v3681_v53 = vpop.f32.mrf.mxu1 }
 0x39e   : > { %v4035_v3 = vmax.f32 %v4017_v20, 0.0  ;;  %v3722_v30 = vadd.f32 %v3681_v53, %v6826_v60  ;;  %v3559_v20 = vadd.f32 %v3524_v37, %v6854_v59  ;;  %v4058_v59 = vld [vmem:[%s7062_s6 + $0xc8] sm:$0xff] }
 0x39f   : > { %v3855_v29 = vpop.f32.mrf.mxu2 }
 0x3a0   : > { %v4071_v40 = vmul.f32 %v4053_v27, %v4035_v3  ;;  %v3896_v16 = vadd.f32 %v3855_v29, %v3722_v30 }
 0x3a1   : > { %v3967_v34 = vpop.f32.mrf.mxu3 }
 0x3a2   : > { %v4088_v2 = vadd.f32 %v4087_v24, %v4071_v40  ;;  %v4000_v7 = vadd.f32 %v3959_v4, %v3896_v16  ;;  %v3529_v24 = vpop.f32.mrf.mxu0 }
 0x3a4   : > { %v4018_v45 = vadd.f32 %v6933_v41, %v4000_v7 }
 0x3a5   : > { %v3684_v57 = vpop.f32.mrf.mxu1 }
 0x3a6   : > { %v4036_v51 = vmax.f32 %v4018_v45, 0.0  ;;  %v3723_v50 = vadd.f32 %v3684_v57, %v6835_v55  ;;  %v3560_v45 = vadd.f32 %v3527_v10, %v6864_v49  ;;  %v3561_v49 = vadd.f32 %v3529_v24, %v6869_v6  ;;  %v4060_v6 = vld [vmem:[%s7062_s6 + $0xd8] sm:$0xff]  ;;  %v4061_v24 = vld [vmem:[%s7062_s6 + $0xe0] sm:$0xff] }
 0x3a7   : > { %v3858_v44 = vpop.f32.mrf.mxu2 }
 0x3a8   : > { %v4072_v19 = vmul.f32 %v4054_v63, %v4036_v51  ;;  %v3897_v60 = vadd.f32 %v3858_v44, %v3723_v50 }
 0x3a9   : > { %v3969_v56 = vpop.f32.mrf.mxu3 }
 0x3aa   : > { %v4089_v26 = vadd.f32 %v4088_v2, %v4072_v19  ;;  %v4001_v54 = vadd.f32 %v3962_v15, %v3897_v60  ;;  %v4056_v15 = vld [vmem:[%s7062_s6 + $0xb8] sm:$0xff]  ;;  %v3532_v63 = vpop.f32.mrf.mxu0 }
 0x3ac   : > { %v4019_v33 = vadd.f32 %v6933_v41, %v4001_v54 }
 0x3ad   : > { %v3686_v4 = vpop.f32.mrf.mxu1 }
 0x3ae   : > { %v4037_v43 = vmax.f32 %v4019_v33, 0.0  ;;  %v3724_v55 = vadd.f32 %v3686_v4, %v6841_v38  ;;  %v4059_v33 = vld [vmem:[%s7062_s6 + $0xd0] sm:$0xff] }
 0x3af   : > { %v3860_v0 = vpop.f32.mrf.mxu2 }
 0x3b0   : > { %v4073_v48 = vmul.f32 %v4055_v11, %v4037_v43  ;;  %v3898_v12 = vadd.f32 %v3860_v0, %v3724_v55 }
 0x3b1   : > { %v3972_v52 = vpop.f32.mrf.mxu3 }
 0x3b2   : > { %v4090_v13 = vadd.f32 %v4089_v26, %v4073_v48  ;;  %v4002_v17 = vadd.f32 %v3964_v35, %v3898_v12  ;;  %v5159_v26 = vld [vmem:[%s7060_s4 + $0x18] sm:$0xff]  ;;  %v3534_v55 = vpop.f32.mrf.mxu0 }
 0x3b3   : > { %4184 = vmatpush.bf16.msra.mxu0 %v5159_v26  ;;  %v3563_v23 = vadd.f32 %v3534_v55, %v6884_v5  ;;  %v4062_v5 = vld [vmem:[%s7062_s6 + $0xe8] sm:$0xff] }
 0x3b4   : > { %v4020_v9 = vadd.f32 %v6933_v41, %v4002_v17  ;;  %v3562_v17 = vadd.f32 %v3532_v63, %v6879_v62  ;;  %v5157_v55 = vld [vmem:[%s7060_s4 + $0x8] sm:$0xff] }
 0x3b5   : > { %v3689_v14 = vpop.f32.mrf.mxu1 }
 0x3b6   : > { %v4038_v31 = vmax.f32 %v4020_v9, 0.0  ;;  %v3725_v21 = vadd.f32 %v3689_v14, %v6850_v47  ;;  %v4057_v47 = vld [vmem:[%s7062_s6 + $0xc0] sm:$0xff] }
 0x3b7   : > { %v3863_v25 = vpop.f32.mrf.mxu2 }
 0x3b8   : > { %v4074_v18 = vmul.f32 %v4056_v15, %v4038_v31  ;;  %v3899_v38 = vadd.f32 %v3863_v25, %v3725_v21 }
 0x3b9   : > { %v3974_v2 = vpop.f32.mrf.mxu3 }
 0x3ba   : > { %v4091_v1 = vadd.f32 %v4090_v13, %v4074_v18  ;;  %v4003_v58 = vadd.f32 %v3967_v34, %v3899_v38  ;;  %v3537_v38 = vpop.f32.mrf.mxu0 }
 0x3bc   : > { %v4021_v22 = vadd.f32 %v6933_v41, %v4003_v58  ;;  %v5158_v58 = vld [vmem:[%s7060_s4 + $0x10] sm:$0xff] }
 0x3bd   : > { %v3691_v35 = vpop.f32.mrf.mxu1  ;;  %4185 = vmatpush.bf16.msra.mxu0 %v5158_v58 }
 0x3be   : > { %v4039_v27 = vmax.f32 %v4021_v22, 0.0  ;;  %v3726_v53 = vadd.f32 %v3691_v35, %v3559_v20 }
 0x3bf   : > { %v3865_v3 = vpop.f32.mrf.mxu2 }
 0x3c0   : > { %v4075_v30 = vmul.f32 %v4057_v47, %v4039_v27  ;;  %v3900_v29 = vadd.f32 %v3865_v3, %v3726_v53 }
 0x3c1   : > { %v3977_v42 = vpop.f32.mrf.mxu3  ;;  %4186 = vmatpush.bf16.msra.mxu0 %v5157_v55 }
 0x3c2   : > { %v4092_v40 = vadd.f32 %v4091_v1, %v4075_v30  ;;  %v4004_v16 = vadd.f32 %v3969_v56, %v3900_v29 }
 0x3c4   : > { %v4022_v7 = vadd.f32 %v6933_v41, %v4004_v16 }
 0x3c5   : > { %v3694_v34 = vpop.f32.mrf.mxu1 }
 0x3c6   : > { %v4040_v57 = vmax.f32 %v4022_v7, 0.0  ;;  %v3727_v51 = vadd.f32 %v3694_v34, %v3560_v45 }
 0x3c7   : > { %v3868_v50 = vpop.f32.mrf.mxu2 }
 0x3c8   : > { %v4076_v37 = vmul.f32 %v4058_v59, %v4040_v57  ;;  %v3901_v44 = vadd.f32 %v3868_v50, %v3727_v51 }
 0x3c9   : > { %v3979_v31 = vpop.f32.mrf.mxu3 }
 0x3ca   : > { %v4093_v19 = vadd.f32 %v4092_v40, %v4076_v37  ;;  %v4005_v60 = vadd.f32 %v3972_v52, %v3901_v44  ;;  %v3539_v40 = vpop.f32.mrf.mxu0 }
 0x3cc   : > { %v4023_v54 = vadd.f32 %v6933_v41, %v4005_v60 }
 0x3cd   : > { %v3696_v11 = vpop.f32.mrf.mxu1 }
 0x3ce   : > { %v4041_v4 = vmax.f32 %v4023_v54, 0.0  ;;  %v3728_v43 = vadd.f32 %v3696_v11, %v3561_v49 }
 0x3cf   : > { %v3870_v56 = vpop.f32.mrf.mxu2 }
 0x3d0   : > { %v4077_v0 = vmul.f32 %v4059_v33, %v4041_v4  ;;  %v3902_v48 = vadd.f32 %v3870_v56, %v3728_v43 }
 0x3d1   : > { %v3982_v3 = vpop.f32.mrf.mxu3 }
 0x3d2   : > { %v4094_v12 = vadd.f32 %v4093_v19, %v4077_v0  ;;  %v4006_v10 = vadd.f32 %v3974_v2, %v3902_v48  ;;  %v3564_v2 = vadd.f32 %v3537_v38, %v6894_v39  ;;  %v3565_v19 = vadd.f32 %v3539_v40, %v6900_v61  ;;  %v3542_v60 = vpop.f32.mrf.mxu0  ;;  %v4063_v39 = vld [vmem:[%s7062_s6 + $0xf0] sm:$0xff]  ;;  %v4064_v48 = vld [vmem:[%s7062_s6 + $0xf8] sm:$0xff] }
 0x3d3   : > { %v3566_v61 = vadd.f32 %v3542_v60, %v6908_v46  ;;  %v4065_v46 = vld [vmem:[%s7062_s6 + $0x100] sm:$0xff]  ;;  %v2696_v60 = vrot.slane %v6800_v28, 4 }
 0x3d4   : > { %v4024_v13 = vadd.f32 %v6933_v41, %v4006_v10 }
 0x3d5   : > { %v3699_v9 = vpop.f32.mrf.mxu1 }
 0x3d6   : > { %v4042_v15 = vmax.f32 %v4024_v13, 0.0  ;;  %v3729_v14 = vadd.f32 %v3699_v9, %v3562_v17 }
 0x3d7   : > { %v3873_v21 = vpop.f32.mrf.mxu2 }
 0x3d8   : > { %v4078_v25 = vmul.f32 %v4060_v6, %v4042_v15  ;;  %v3903_v18 = vadd.f32 %v3873_v21, %v3729_v14 }
 0x3d9   : > { %v3984_v37 = vpop.f32.mrf.mxu3 }
 0x3da   : > { %v4095_v52 = vadd.f32 %v4094_v12, %v4078_v25  ;;  %v4007_v1 = vadd.f32 %v3977_v42, %v3903_v18  ;;  %v3544_v17 = vpop.f32.mrf.mxu0 }
 0x3db   : > { %v3567_v25 = vadd.f32 %v3544_v17, %v6912_v32  ;;  %v5156_v32 = vld [vmem:[%s7060_s4] sm:$0xff] }
 0x3dc   : > { %v4025_v62 = vadd.f32 %v6933_v41, %v4007_v1  ;;  %4187 = vmatpush.bf16.msra.mxu0 %v5156_v32 }
 0x3dd   : > { %v3701_v22 = vpop.f32.mrf.mxu1 }
 0x3de   : > { %v4043_v20 = vmax.f32 %v4025_v62, 0.0  ;;  %v3730_v47 = vadd.f32 %v3701_v22, %v3563_v23 }
 0x3df   : > { %v3875_v35 = vpop.f32.mrf.mxu2 }
 0x3e0   : > { %v4079_v27 = vmul.f32 %v4061_v24, %v4043_v20  ;;  %v3904_v53 = vadd.f32 %v3875_v35, %v3730_v47 }
 0x3e1   : > { %v3987_v0 = vpop.f32.mrf.mxu3 }
 0x3e2   : > { %v4096_v30 = vadd.f32 %v4095_v52, %v4079_v27  ;;  %v4008_v29 = vadd.f32 %v3979_v31, %v3904_v53  ;;  %v3547_v24 = vpop.f32.mrf.mxu0  ;;  %v4066_v27 = vld [vmem:[%s7062_s6 + $0x108] sm:$0xff] }
 0x3e3   : > { %v3568_v35 = vadd.f32 %v3547_v24, %v6918_v36 }
 0x3e4   : > { %v4026_v16 = vadd.f32 %v6933_v41, %v4008_v29 }
 0x3e5   : > { %v3704_v7 = vpop.f32.mrf.mxu1 }
 0x3e6   : > { %v4044_v45 = vmax.f32 %v4026_v16, 0.0  ;;  %v3731_v63 = vadd.f32 %v3704_v7, %v3564_v2 }
 0x3e7   : > { %v3878_v59 = vpop.f32.mrf.mxu2 }
 0x3e8   : > { %v4080_v34 = vmul.f32 %v4062_v5, %v4044_v45  ;;  %v3905_v57 = vadd.f32 %v3878_v59, %v3731_v63  ;;  %v4067_v59 = vld [vmem:[%s7062_s6 + $0x110] sm:$0xff] }
 0x3e9   : > { %v3989_v1 = vpop.f32.mrf.mxu3 }
 0x3ea   : > { %v4097_v51 = vadd.f32 %v4096_v30, %v4080_v34  ;;  %v4009_v50 = vadd.f32 %v3982_v3, %v3905_v57  ;;  %v3549_v45 = vpop.f32.mrf.mxu0 }
 0x3eb   : > { %v3569_v63 = vadd.f32 %v3549_v45, %v6922_v8  ;;  %v4068_v8 = vld [vmem:[%s7062_s6 + $0x118] sm:$0xff] }
 0x3ec   : > { %v4027_v44 = vadd.f32 %v6933_v41, %v4009_v50 }
 0x3ed   : > { %v3706_v26 = vpop.f32.mrf.mxu1 }
 0x3ee   : > { %v4045_v54 = vmax.f32 %v4027_v44, 0.0  ;;  %v3732_v49 = vadd.f32 %v3706_v26, %v3565_v19 }
 0x3ef   : > { %v3880_v42 = vpop.f32.mrf.mxu2 }
 0x3f0   : > { %v4081_v33 = vmul.f32 %v4063_v39, %v4045_v54  ;;  %v3906_v11 = vadd.f32 %v3880_v42, %v3732_v49  ;;  %v2697_v49 = vadd.f32 %v2696_v60, %v6800_v28  ;;  %v5499_v28 = vld [vmem:[%s7061_s5] ss:$0 sm:$0xff] }
 0x3f1   : > { %v3992_v29 = vpop.f32.mrf.mxu3 }
 0x3f2   : > { %v4098_v4 = vadd.f32 %v4097_v51, %v4081_v33  ;;  %v4010_v43 = vadd.f32 %v3984_v37, %v3906_v11  ;;  %v2698_v11 = vrot.slane %v2697_v49, 2 }
 0x3f4   : > { %v4028_v56 = vadd.f32 %v6933_v41, %v4010_v43  ;;  %v2699_v55 = vadd.f32 %v2698_v11, %v2697_v49 }
 0x3f5   : > { %v3709_v12 = vpop.f32.mrf.mxu1 }
 0x3f6   : > { %v4046_v10 = vmax.f32 %v4028_v56, 0.0  ;;  %v3733_v13 = vadd.f32 %v3709_v12, %v3566_v61 }
 0x3f7   : > { %v3883_v6 = vpop.f32.mrf.mxu2 }
 0x3f8   : > { %v4082_v9 = vmul.f32 %v4064_v48, %v4046_v10  ;;  %v3907_v15 = vadd.f32 %v3883_v6, %v3733_v13 }
 0x3f9   : > { %v3994_v19 = vpop.f32.mrf.mxu3 }
 0x3fa   : > { %v4099_v14 = vadd.f32 %v4098_v4, %v4082_v9  ;;  %v4011_v31 = vadd.f32 %v3987_v0, %v3907_v15  ;;  %v2700_v0 = vrot.slane %v2699_v55, 1 }
 0x3fc   : > { %v4029_v21 = vadd.f32 %v6933_v41, %v4011_v31  ;;  %v2701_v10 = vadd.f32 %v2700_v0, %v2699_v55 }
 0x3fd   : > { %v3711_v18 = vpop.f32.mrf.mxu1 }
 0x3fe   : > { %v4047_v38 = vmax.f32 %v4029_v21, 0.0  ;;  %v3734_v52 = vadd.f32 %v3711_v18, %v3567_v25 }
 0x3ff   : > { %v3885_v58 = vpop.f32.mrf.mxu2 }
 0x400   : > { %v4083_v62 = vmul.f32 %v4065_v46, %v4047_v38  ;;  %v3908_v23 = vadd.f32 %v3885_v58, %v3734_v52 }
 0x402   : > { %v4100_v22 = vadd.f32 %v4099_v14, %v4083_v62  ;;  %v4012_v20 = vadd.f32 %v3989_v1, %v3908_v23 }
 0x404   : > { %v4030_v47 = vadd.f32 %v6933_v41, %v4012_v20 }
 0x405   : > { %v3714_v53 = vpop.f32.mrf.mxu1 }
 0x406   : > { %v4048_v3 = vmax.f32 %v4030_v47, 0.0  ;;  %v3735_v30 = vadd.f32 %v3714_v53, %v3568_v35 }
 0x407   : > { %v3888_v40 = vpop.f32.mrf.mxu2 }
 0x408   : > { %v4084_v16 = vmul.f32 %v4066_v27, %v4048_v3  ;;  %v3909_v2 = vadd.f32 %v3888_v40, %v3735_v30 }
 0x40a   : > { %v4101_v5 = vadd.f32 %v4100_v22, %v4084_v16  ;;  %v4013_v7 = vadd.f32 %v3992_v29, %v3909_v2 }
 0x40c   : > { %v4031_v36 = vadd.f32 %v6933_v41, %v4013_v7 }
 0x40d   : > { %v3716_v34 = vpop.f32.mrf.mxu1 }
 0x40e   : > { %v4049_v57 = vmax.f32 %v4031_v36, 0.0  ;;  %v3736_v51 = vadd.f32 %v3716_v34, %v3569_v63 }
 0x40f   : > { %v3890_v50 = vpop.f32.mrf.mxu2 }
 0x410   : > { %v4085_v37 = vmul.f32 %v4067_v59, %v4049_v57  ;;  %v3910_v44 = vadd.f32 %v3890_v50, %v3736_v51 }
 0x412   : > { %v4102_v39 = vadd.f32 %v4101_v5, %v4085_v37  ;;  %v4014_v26 = vadd.f32 %v3994_v19, %v3910_v44 }
 0x414   : > { %v4032_v54 = vadd.f32 %v6933_v41, %v4014_v26 }
 0x416   : > { %v4050_v42 = vmax.f32 %v4032_v54, 0.0 }
 0x418   : > { %v4086_v33 = vmul.f32 %v4068_v8, %v4050_v42 }
 0x41a   : > { %v4103_v4 = vadd.f32 %v4102_v39, %v4086_v33 }
 0x41c   : > { %v4104_v43 = vrot.slane %v4103_v4, 4 }
 0x41e   : > { %v4105_v56 = vadd.f32 %v4104_v43, %v4103_v4 }
 0x420   : > { %v4106_v61 = vrot.slane %v4105_v56, 2 }
 0x422   : > { %v4107_v48 = vadd.f32 %v4106_v61, %v4105_v56 }
 0x424   : > { %v4108_v12 = vrot.slane %v4107_v48, 1 }
 0x426   : > { %v4109_v41 = vadd.f32 %v4108_v12, %v4107_v48 }
 0x428   : > { %v4110_v13 = vadd.f32 %v4109_v41, %v2701_v10 }
 0x42a   : > { %v4111_v17 = vpack.c.bf16 %v4110_v13, %v4110_v13 }
 0x42c   : > { %4188 = vmatmul.bf16.vlgmr.msra.gmra.mxu0 %v4111_v17 }
 0x4a9   : > { %v4189_v6 = vpop.f32.mrf.mxu0 }
 0x4aa   : > { %v4190_v9 = vadd.f32 %v5499_v28, %v4189_v6 }
 0x4ac   : > { %4193 = vst [vmem:[%s276_s18] sm:$0xff] %v4190_v9 }
 0x4b1   : > { %v4191_v15 = vpop.f32.mrf.mxu0 }
 0x4b2 PF: > { %s17_s24 = sadd.s32 1, %s5530_s24  }
 0x4b3   : > { %p14_p4 = scmp.ge.s32.totalorder %s17_s24, 4  }
 0x4b5   :  { %16 = sbr.rel (!%p14_p4) target bundleno = 1 (0x1), region = 86 }

</bundles_post_ra>
